<compile_context>
chip_gen: v6e
topology: v6e:2x2x1
jax: 0.10.0
libtpu: 0.0.40
codegen_flags: <defaults>
</compile_context>

<pallas_src>
import functools

import jax
import jax.numpy as jnp
from jax import lax
from jax.experimental import pallas as pl
from jax.experimental.pallas import tpu as pltpu

LANE = 128  # lane-pad feature / hidden / class dims to this width


# -----------------------------------------------------------------------------
# Fused kernel (one grid step == one chunk of whole graphs)
# -----------------------------------------------------------------------------
def mygin_fused_kernel(x_ref, adj_ref, pool_ref, inv_ref,
                       w1_ref, b1_ref, w2_ref, b2_ref, scale_ref, shift_ref,
                       lw1_ref, lb1_ref, lw2_ref, lb2_ref,
                       logp_ref, logits_ref, *, num_classes):
    """Full eval forward of MYGIN for one chunk of graphs.

    Shapes (P = LANE, Nc = nodes per chunk, Gp = padded graphs per chunk):
      x_ref    (Nc, P)  bf16     adj_ref (Nc, Nc) bf16  (block-diag A + I)
      pool_ref (Gp, Nc) bf16     (unnormalized one-hot)
      inv_ref  (Gp, P)  f32      (1/node-count, broadcast across lanes; 0 = pad row)
      w1/w2    (L, P, P) bf16    b1/b2/scale/shift (L, 1, P) f32
      lw1/lw2  (P, P)   bf16     lb1/lb2 (1, P) f32
      outputs  (Gp, P)  f32      (lane-dense; glue slices [:G, :C])
    """
    adj = adj_ref[...]                                   # resident (Nc, Nc) bf16
    num_layers = w1_ref.shape[0]

    h_mxu = x_ref[...]                                   # (Nc, P) bf16
    jk = None                                            # running JK 'max' (f32)
    for l in range(num_layers):
        # GIN aggregation: (1+eps)*x_i + sum_j x_j, eps=0  ==  (A + I) @ x
        agg = jnp.dot(adj, h_mxu, preferred_element_type=jnp.float32)
        # MLP = Linear -> ReLU -> Linear -> ReLU -> BatchNorm1d (eval, folded)
        z = jnp.dot(agg.astype(jnp.bfloat16), w1_ref[l],
                    preferred_element_type=jnp.float32) + b1_ref[l]
        z = jnp.maximum(z, 0.0)
        z = jnp.dot(z.astype(jnp.bfloat16), w2_ref[l],
                    preferred_element_type=jnp.float32) + b2_ref[l]
        z = jnp.maximum(z, 0.0)
        h = z * scale_ref[l] + shift_ref[l]              # f32 epilogue
        jk = h if jk is None else jnp.maximum(jk, h)
        h_mxu = h.astype(jnp.bfloat16)

    # global_mean_pool: bf16 one-hot matmul (exact values), f32 accumulate,
    # then f32 1/count scale on the VPU -> no emulated f32 matmul.
    inv = inv_ref[...]                                   # (Gp, P) f32
    pooled = jnp.dot(pool_ref[...], jk.astype(jnp.bfloat16),
                     preferred_element_type=jnp.float32) * inv

    # Predictor: Linear -> ReLU -> (dropout = identity in eval) -> Linear
    t = jnp.dot(pooled.astype(jnp.bfloat16), lw1_ref[...],
                preferred_element_type=jnp.float32) + lb1_ref[...]
    t = jnp.maximum(t, 0.0)
    logits = jnp.dot(t.astype(jnp.bfloat16), lw2_ref[...],
                     preferred_element_type=jnp.float32) + lb2_ref[...]
    logits = jnp.clip(logits, -10.0, 10.0)               # (Gp, P)

    # log_softmax over the first `num_classes` lanes; zero padded lanes AND
    # padded graph rows (rows where inv == 0) in both outputs.
    row_valid = inv > 0.0
    col = lax.broadcasted_iota(jnp.int32, logits.shape, 1)
    lane_valid = col < num_classes
    valid = jnp.logical_and(row_valid, lane_valid)
    masked = jnp.where(lane_valid, logits, -1e30)
    m = jnp.max(masked, axis=-1, keepdims=True)
    e = jnp.where(lane_valid, jnp.exp(masked - m), 0.0)
    lse = jnp.log(jnp.sum(e, axis=-1, keepdims=True))
    logp_ref[...] = jnp.where(valid, masked - m - lse, 0.0)
    logits_ref[...] = jnp.where(valid, logits, 0.0)


# -----------------------------------------------------------------------------
# Glue: parameter packing (hoisted, done once) + batch chunking + wrapper
# -----------------------------------------------------------------------------
def _pad2(a, rows, cols):
    out = jnp.zeros((rows, cols), jnp.float32)
    return out.at[:a.shape[0], :a.shape[1]].set(a)


def pack_params(params, lane=LANE):
    """Zero-pad every weight/bias to lane-dense width and stack per-layer.

    Call ONCE and reuse the result for every forward call (hoisted per review).
    """
    w1s, b1s, w2s, b2s, scs, shs = [], [], [], [], [], []
    for (w1, b1, w2, b2, sc, sh) in params["gin_layers"]:
        w1s.append(_pad2(w1, lane, lane))
        b1s.append(_pad2(b1, 1, lane))
        w2s.append(_pad2(w2, lane, lane))
        b2s.append(_pad2(b2, 1, lane))
        scs.append(_pad2(sc, 1, lane))
        shs.append(_pad2(sh, 1, lane))
    return {
        "w1": jnp.stack(w1s).astype(jnp.bfloat16),
        "b1": jnp.stack(b1s),
        "w2": jnp.stack(w2s).astype(jnp.bfloat16),
        "b2": jnp.stack(b2s),
        "scale": jnp.stack(scs),
        "shift": jnp.stack(shs),
        "lw1": _pad2(params["lw1"], lane, lane).astype(jnp.bfloat16),
        "lb1": _pad2(params["lb1"], 1, lane),
        "lw2": _pad2(params["lw2"], lane, lane).astype(jnp.bfloat16),
        "lb2": _pad2(params["lb2"], 1, lane),
    }


def chunk_graph_batch(x, adj, batch, num_chunks, graphs_per_chunk, lane=LANE):
    """Pack a graph batch into fixed-size node chunks for the gridded kernel.

    Assumes graphs are laid out contiguously, whole graphs fit in a chunk, and
    no edges cross chunk boundaries (true for block-diagonal graph batches).
    Returns (x_stack, adj_stack, pool_stack, inv_stack) ready for the kernel.
    """
    n = x.shape[0]
    nodes_per_chunk = n // num_chunks
    g_pad = max(8, -(-graphs_per_chunk // 8) * 8)

    x_stack = (jnp.zeros((n, lane), jnp.float32)
               .at[:, :x.shape[1]].set(x).astype(jnp.bfloat16))

    adj_blocks, pool_blocks, inv_blocks = [], [], []
    eye = jnp.eye(nodes_per_chunk, dtype=jnp.float32)
    for c in range(num_chunks):
        n0 = c * nodes_per_chunk
        g0 = c * graphs_per_chunk
        # self-loop (1+eps)*x, eps=0 folded into the adjacency: A + I
        adj_c = adj[n0:n0 + nodes_per_chunk, n0:n0 + nodes_per_chunk] + eye
        adj_blocks.append(adj_c.astype(jnp.bfloat16))

        local_batch = batch[n0:n0 + nodes_per_chunk] - g0
        onehot = (local_batch[None, :] ==
                  jnp.arange(graphs_per_chunk)[:, None]).astype(jnp.float32)
        counts = jnp.sum(onehot, axis=1, keepdims=True)
        inv = jnp.where(counts > 0, 1.0 / counts, 0.0)
        pool_c = (jnp.zeros((g_pad, nodes_per_chunk), jnp.float32)
                  .at[:graphs_per_chunk].set(onehot))
        inv_c = (jnp.zeros((g_pad, lane), jnp.float32)
                 .at[:graphs_per_chunk].set(
                     jnp.broadcast_to(inv, (graphs_per_chunk, lane))))
        pool_blocks.append(pool_c.astype(jnp.bfloat16))
        inv_blocks.append(inv_c)

    return (x_stack,
            jnp.concatenate(adj_blocks, axis=0),
            jnp.concatenate(pool_blocks, axis=0),
            jnp.concatenate(inv_blocks, axis=0))


def mygin_forward(x_stack, adj_stack, pool_stack, inv_stack, packed, *,
                  num_classes, graphs_per_chunk):
    """Gridded MYGIN forward, eval mode. Returns (log_probs, logits), (G, C)."""
    nodes_per_chunk = adj_stack.shape[1]
    num_chunks = adj_stack.shape[0] // nodes_per_chunk
    g_pad = pool_stack.shape[0] // num_chunks
    P = LANE
    L = packed["w1"].shape[0]

    kernel = functools.partial(mygin_fused_kernel, num_classes=num_classes)

    def const_spec(shape):
        # Same block index every grid step -> parameter stays VMEM-resident.
        zeros = (0,) * len(shape)
        return pl.BlockSpec(shape, lambda c: zeros)

    flops = num_chunks * (
        2 * L * nodes_per_chunk * nodes_per_chunk * P      # (A+I) @ x per layer
        + 4 * L * nodes_per_chunk * P * P                  # two MLP matmuls per layer
        + 2 * g_pad * nodes_per_chunk * P                  # mean pool
        + 4 * g_pad * P * P)                               # predictor matmuls
    bytes_accessed = int(
        sum(a.size * a.dtype.itemsize for a in
            (x_stack, adj_stack, pool_stack, inv_stack,
             packed["w1"], packed["b1"], packed["w2"], packed["b2"],
             packed["scale"], packed["shift"],
             packed["lw1"], packed["lb1"], packed["lw2"], packed["lb2"]))
        + 2 * num_chunks * g_pad * P * 4)

    logp_pad, logits_pad = pl.pallas_call(
        kernel,
        grid=(num_chunks,),
        out_shape=(jax.ShapeDtypeStruct((num_chunks * g_pad, P), jnp.float32),
                   jax.ShapeDtypeStruct((num_chunks * g_pad, P), jnp.float32)),
        in_specs=[
            pl.BlockSpec((nodes_per_chunk, P), lambda c: (c, 0)),               # x
            pl.BlockSpec((nodes_per_chunk, nodes_per_chunk), lambda c: (c, 0)),  # adj
            pl.BlockSpec((g_pad, nodes_per_chunk), lambda c: (c, 0)),            # pool
            pl.BlockSpec((g_pad, P), lambda c: (c, 0)),                          # 1/count
            const_spec(packed["w1"].shape),
            const_spec(packed["b1"].shape),
            const_spec(packed["w2"].shape),
            const_spec(packed["b2"].shape),
            const_spec(packed["scale"].shape),
            const_spec(packed["shift"].shape),
            const_spec(packed["lw1"].shape),
            const_spec(packed["lb1"].shape),
            const_spec(packed["lw2"].shape),
            const_spec(packed["lb2"].shape),
        ],
        out_specs=(pl.BlockSpec((g_pad, P), lambda c: (c, 0)),
                   pl.BlockSpec((g_pad, P), lambda c: (c, 0))),
        compiler_params=pltpu.CompilerParams(
            dimension_semantics=("parallel",),          # v7x: chunks across 2 TCs
            vmem_limit_bytes=32 * 1024 * 1024),         # explicit (v5e default = 16 MiB)
        cost_estimate=pl.CostEstimate(
            flops=flops,
            transcendentals=num_chunks * g_pad * P,
            bytes_accessed=bytes_accessed),
    )(x_stack, adj_stack, pool_stack, inv_stack,
      packed["w1"], packed["b1"], packed["w2"], packed["b2"],
      packed["scale"], packed["shift"],
      packed["lw1"], packed["lb1"], packed["lw2"], packed["lb2"])

    logp = logp_pad.reshape(num_chunks, g_pad, P)[:, :graphs_per_chunk, :num_classes]
    logits = logits_pad.reshape(num_chunks, g_pad, P)[:, :graphs_per_chunk, :num_classes]
    num_graphs = num_chunks * graphs_per_chunk
    return (logp.reshape(num_graphs, num_classes),
            logits.reshape(num_graphs, num_classes))


# -----------------------------------------------------------------------------
# Deterministic parameter construction + plain-JAX references
# -----------------------------------------------------------------------------
def init_params(key, num_features, hidden_dim, num_layers, num_classes):
    def linear(k, fan_in, fan_out):
        k1, k2 = jax.random.split(k)
        bound = 1.0 / jnp.sqrt(fan_in)
        w = jax.random.uniform(k1, (fan_in, fan_out), jnp.float32, -bound, bound)
        b = jax.random.uniform(k2, (1, fan_out), jnp.float32, -bound, bound)
        return w, b

    keys = jax.random.split(key, 2 * num_layers + 2)
    gin_layers = []
    in_dim = num_features
    for l in range(num_layers):
        w1, b1 = linear(keys[2 * l], in_dim, hidden_dim)
        w2, b2 = linear(keys[2 * l + 1], hidden_dim, hidden_dim)
        # BatchNorm1d eval-mode fold with fresh-module stats:
        # gamma=1, beta=0, running_mean=0, running_var=1, eps=1e-5
        gamma = jnp.ones((1, hidden_dim), jnp.float32)
        beta = jnp.zeros((1, hidden_dim), jnp.float32)
        rmean = jnp.zeros((1, hidden_dim), jnp.float32)
        rvar = jnp.ones((1, hidden_dim), jnp.float32)
        scale = gamma / jnp.sqrt(rvar + 1e-5)
        shift = beta - rmean * scale
        gin_layers.append((w1, b1, w2, b2, scale, shift))
        in_dim = hidden_dim

    lw1, lb1 = linear(keys[-2], hidden_dim, hidden_dim)   # jk='max' -> input = hidden
    lw2, lb2 = linear(keys[-1], hidden_dim, num_classes)
    return {"gin_layers": gin_layers, "lw1": lw1, "lb1": lb1, "lw2": lw2, "lb2": lb2}


def reference_forward(x, adj_pi, pool_onehot, inv_count, params, use_bf16):
    """Plain-JAX forward on the whole batch. use_bf16=True mirrors kernel casts."""
    def c(a):
        return a.astype(jnp.bfloat16) if use_bf16 else a

    h = x
    jk = None
    for (w1, b1, w2, b2, sc, sh) in params["gin_layers"]:
        agg = jnp.dot(c(adj_pi), c(h), preferred_element_type=jnp.float32)
        z = jnp.maximum(jnp.dot(c(agg), c(w1),
                                preferred_element_type=jnp.float32) + b1, 0.0)
        z = jnp.maximum(jnp.dot(c(z), c(w2),
                                preferred_element_type=jnp.float32) + b2, 0.0)
        h = z * sc + sh
        jk = h if jk is None else jnp.maximum(jk, h)
    pooled = jnp.dot(c(pool_onehot), c(jk),
                     preferred_element_type=jnp.float32) * inv_count
    t = jnp.maximum(jnp.dot(c(pooled), c(params["lw1"]),
                            preferred_element_type=jnp.float32) + params["lb1"], 0.0)
    logits = jnp.dot(c(t), c(params["lw2"]),
                     preferred_element_type=jnp.float32) + params["lb2"]
    logits = jnp.clip(logits, -10.0, 10.0)
    logp = logits - jax.scipy.special.logsumexp(logits, axis=-1, keepdims=True)
    return logp, logits


# -----------------------------------------------------------------------------
if __name__ == "__main__":
    NUM_FEATURES = 16
    HIDDEN_DIM = 32
    NUM_LAYERS = 3
    NUM_CLASSES = 4
    NODES_PER_GRAPH = 32
    GRAPHS_PER_CHUNK = 8                                   # multiple of 8 -> no padded rows
    NUM_CHUNKS = 2                                          # grid axis ("parallel")
    NODES_PER_CHUNK = NODES_PER_GRAPH * GRAPHS_PER_CHUNK    # 256 = one full MXU pass
    NUM_GRAPHS = GRAPHS_PER_CHUNK * NUM_CHUNKS              # 16
    N_NODES = NODES_PER_CHUNK * NUM_CHUNKS                  # 512

    root = jax.random.PRNGKey(0)
    k_x, k_adj, k_params = jax.random.split(root, 3)

    # Node features.
    x = jax.random.normal(k_x, (N_NODES, NUM_FEATURES), jnp.float32)

    # batch vector: graphs laid out contiguously, NODES_PER_GRAPH nodes each.
    batch = jnp.repeat(jnp.arange(NUM_GRAPHS, dtype=jnp.int32), NODES_PER_GRAPH)

    # Random undirected adjacency (no self loops), edges only within a graph
    # (block-diagonal), densified here (glue) so aggregation is a matmul.
    upper = (jax.random.uniform(k_adj, (N_NODES, N_NODES)) < 0.1).astype(jnp.float32)
    upper = jnp.triu(upper, k=1)
    same_graph = (batch[:, None] == batch[None, :]).astype(jnp.float32)
    adj = (upper + upper.T) * same_graph                                 # (N, N)

    params = init_params(k_params, NUM_FEATURES, HIDDEN_DIM, NUM_LAYERS, NUM_CLASSES)
    packed = pack_params(params)         # hoisted: pack/pad/cast ONCE, reuse per call

    x_stack, adj_stack, pool_stack, inv_stack = chunk_graph_batch(
        x, adj, batch, NUM_CHUNKS, GRAPHS_PER_CHUNK)

    fwd = jax.jit(functools.partial(mygin_forward, num_classes=NUM_CLASSES,
                                    graphs_per_chunk=GRAPHS_PER_CHUNK))
    log_probs, logits = fwd(x_stack, adj_stack, pool_stack, inv_stack, packed)
    jax.block_until_ready((log_probs, logits))
    assert log_probs.shape == (NUM_GRAPHS, NUM_CLASSES)
    assert logits.shape == (NUM_GRAPHS, NUM_CLASSES)

    # Full-batch references (whole adjacency + I, one-hot pool + 1/count).
    adj_pi = adj + jnp.eye(N_NODES, dtype=jnp.float32)
    onehot_full = (batch[None, :] == jnp.arange(NUM_GRAPHS)[:, None]).astype(jnp.float32)
    counts_full = jnp.sum(onehot_full, axis=1, keepdims=True)
    inv_full = 1.0 / counts_full

    # Check 1: same-precision reference (mirrors the kernel's bf16 matmul casts).
    ref_logp_bf, ref_logits_bf = reference_forward(
        x, adj_pi, onehot_full, inv_full, params, True)
    assert jnp.allclose(log_probs, ref_logp_bf, rtol=1e-2, atol=1e-2)
    assert jnp.allclose(logits, ref_logits_bf, rtol=1e-2, atol=1e-2)

    # Check 2: pure-f32 reference (module semantics), looser tolerance since the
    # kernel runs its matmuls in bf16 with f32 accumulation (per perf review).
    ref_logp_f32, ref_logits_f32 = reference_forward(
        x, adj_pi, onehot_full, inv_full, params, False)
    assert jnp.allclose(log_probs, ref_logp_f32, rtol=1e-1, atol=1e-1)
    assert jnp.allclose(logits, ref_logits_f32, rtol=1e-1, atol=1e-1)

    print("KERNEL_OK")
</pallas_src>

<mosaic_0001>
module attributes {stable_mosaic.version = 11 : i64} {
  func.func @mygin_fused_kernel(%arg0: i32, %arg1: memref<256x128xbf16, #tpu.memory_space<vmem>>, %arg2: memref<256x256xbf16, #tpu.memory_space<vmem>>, %arg3: memref<8x256xbf16, #tpu.memory_space<vmem>>, %arg4: memref<8x128xf32, #tpu.memory_space<vmem>>, %arg5: memref<3x128x128xbf16, #tpu.memory_space<vmem>>, %arg6: memref<3x1x128xf32, #tpu.memory_space<vmem>>, %arg7: memref<3x128x128xbf16, #tpu.memory_space<vmem>>, %arg8: memref<3x1x128xf32, #tpu.memory_space<vmem>>, %arg9: memref<3x1x128xf32, #tpu.memory_space<vmem>>, %arg10: memref<3x1x128xf32, #tpu.memory_space<vmem>>, %arg11: memref<128x128xbf16, #tpu.memory_space<vmem>>, %arg12: memref<1x128xf32, #tpu.memory_space<vmem>>, %arg13: memref<128x128xbf16, #tpu.memory_space<vmem>>, %arg14: memref<1x128xf32, #tpu.memory_space<vmem>>, %arg15: memref<8x128xf32, #tpu.memory_space<vmem>>, %arg16: memref<8x128xf32, #tpu.memory_space<vmem>>) attributes {dimension_semantics = [#tpu.dimension_semantics<parallel>], iteration_bounds = array<i64: 2>, scalar_prefetch = 0 : i64, scratch_operands = 0 : i64, tpu.core_type = #tpu.core_type<tc>, window_params = [{transform_indices = @transform_0, window_bounds = array<i64: 256, 128>}, {transform_indices = @transform_1, window_bounds = array<i64: 256, 256>}, {transform_indices = @transform_2, window_bounds = array<i64: 8, 256>}, {transform_indices = @transform_3, window_bounds = array<i64: 8, 128>}, {pipeline_mode = #tpu.pipeline_mode<synchronous>, transform_indices = @transform_4, window_bounds = array<i64: 3, 128, 128>}, {pipeline_mode = #tpu.pipeline_mode<synchronous>, transform_indices = @transform_5, window_bounds = array<i64: 3, 1, 128>}, {pipeline_mode = #tpu.pipeline_mode<synchronous>, transform_indices = @transform_6, window_bounds = array<i64: 3, 128, 128>}, {pipeline_mode = #tpu.pipeline_mode<synchronous>, transform_indices = @transform_7, window_bounds = array<i64: 3, 1, 128>}, {pipeline_mode = #tpu.pipeline_mode<synchronous>, transform_indices = @transform_8, window_bounds = array<i64: 3, 1, 128>}, {pipeline_mode = #tpu.pipeline_mode<synchronous>, transform_indices = @transform_9, window_bounds = array<i64: 3, 1, 128>}, {pipeline_mode = #tpu.pipeline_mode<synchronous>, transform_indices = @transform_10, window_bounds = array<i64: 128, 128>}, {pipeline_mode = #tpu.pipeline_mode<synchronous>, transform_indices = @transform_11, window_bounds = array<i64: 1, 128>}, {pipeline_mode = #tpu.pipeline_mode<synchronous>, transform_indices = @transform_12, window_bounds = array<i64: 128, 128>}, {pipeline_mode = #tpu.pipeline_mode<synchronous>, transform_indices = @transform_13, window_bounds = array<i64: 1, 128>}, {transform_indices = @transform_14, window_bounds = array<i64: 8, 128>}, {transform_indices = @transform_15, window_bounds = array<i64: 8, 128>}]} {
    %c0 = arith.constant 0 : index
    %c0_0 = arith.constant 0 : index
    %0 = vector.load %arg2[%c0, %c0_0] : memref<256x256xbf16, #tpu.memory_space<vmem>>, vector<256x256xbf16>
    %c0_1 = arith.constant 0 : index
    %c0_2 = arith.constant 0 : index
    %1 = vector.load %arg1[%c0_1, %c0_2] : memref<256x128xbf16, #tpu.memory_space<vmem>>, vector<256x128xbf16>
    %cst = arith.constant dense<0.000000e+00> : vector<256x128xf32>
    %2 = tpu.matmul %0, %1, %cst {dimension_numbers = #tpu.dot_dimension_numbers<[1], [0], [0], [1], [0, 0, 1, 1], [], []>} : vector<256x256xbf16>, vector<256x128xbf16>, vector<256x128xf32> -> vector<256x128xf32>
    %3 = arith.truncf %2 : vector<256x128xf32> to vector<256x128xbf16>
    %c0_3 = arith.constant 0 : index
    %c0_4 = arith.constant 0 : index
    %c0_5 = arith.constant 0 : index
    %4 = vector.load %arg5[%c0_3, %c0_4, %c0_5] : memref<3x128x128xbf16, #tpu.memory_space<vmem>>, vector<1x128x128xbf16>
    %5 = vector.shape_cast %4 : vector<1x128x128xbf16> to vector<128x128xbf16>
    %cst_6 = arith.constant dense<0.000000e+00> : vector<256x128xf32>
    %6 = tpu.matmul %3, %5, %cst_6 {dimension_numbers = #tpu.dot_dimension_numbers<[1], [0], [0], [1], [0, 0, 1, 1], [], []>} : vector<256x128xbf16>, vector<128x128xbf16>, vector<256x128xf32> -> vector<256x128xf32>
    %c0_7 = arith.constant 0 : index
    %c0_8 = arith.constant 0 : index
    %c0_9 = arith.constant 0 : index
    %7 = vector.load %arg6[%c0_7, %c0_8, %c0_9] : memref<3x1x128xf32, #tpu.memory_space<vmem>>, vector<1x1x128xf32>
    %8 = vector.shape_cast %7 : vector<1x1x128xf32> to vector<1x128xf32>
    %9 = vector.broadcast %8 : vector<1x128xf32> to vector<256x128xf32>
    %10 = arith.addf %6, %9 : vector<256x128xf32>
    %cst_10 = arith.constant 0.000000e+00 : f32
    %11 = vector.broadcast %cst_10 : f32 to vector<256x128xf32>
    %12 = arith.maximumf %10, %11 : vector<256x128xf32>
    %13 = arith.truncf %12 : vector<256x128xf32> to vector<256x128xbf16>
    %c0_11 = arith.constant 0 : index
    %c0_12 = arith.constant 0 : index
    %c0_13 = arith.constant 0 : index
    %14 = vector.load %arg7[%c0_11, %c0_12, %c0_13] : memref<3x128x128xbf16, #tpu.memory_space<vmem>>, vector<1x128x128xbf16>
    %15 = vector.shape_cast %14 : vector<1x128x128xbf16> to vector<128x128xbf16>
    %cst_14 = arith.constant dense<0.000000e+00> : vector<256x128xf32>
    %16 = tpu.matmul %13, %15, %cst_14 {dimension_numbers = #tpu.dot_dimension_numbers<[1], [0], [0], [1], [0, 0, 1, 1], [], []>} : vector<256x128xbf16>, vector<128x128xbf16>, vector<256x128xf32> -> vector<256x128xf32>
    %c0_15 = arith.constant 0 : index
    %c0_16 = arith.constant 0 : index
    %c0_17 = arith.constant 0 : index
    %17 = vector.load %arg8[%c0_15, %c0_16, %c0_17] : memref<3x1x128xf32, #tpu.memory_space<vmem>>, vector<1x1x128xf32>
    %18 = vector.shape_cast %17 : vector<1x1x128xf32> to vector<1x128xf32>
    %19 = vector.broadcast %18 : vector<1x128xf32> to vector<256x128xf32>
    %20 = arith.addf %16, %19 : vector<256x128xf32>
    %cst_18 = arith.constant 0.000000e+00 : f32
    %21 = vector.broadcast %cst_18 : f32 to vector<256x128xf32>
    %22 = arith.maximumf %20, %21 : vector<256x128xf32>
    %c0_19 = arith.constant 0 : index
    %c0_20 = arith.constant 0 : index
    %c0_21 = arith.constant 0 : index
    %23 = vector.load %arg9[%c0_19, %c0_20, %c0_21] : memref<3x1x128xf32, #tpu.memory_space<vmem>>, vector<1x1x128xf32>
    %24 = vector.shape_cast %23 : vector<1x1x128xf32> to vector<1x128xf32>
    %25 = vector.broadcast %24 : vector<1x128xf32> to vector<256x128xf32>
    %26 = arith.mulf %22, %25 : vector<256x128xf32>
    %c0_22 = arith.constant 0 : index
    %c0_23 = arith.constant 0 : index
    %c0_24 = arith.constant 0 : index
    %27 = vector.load %arg10[%c0_22, %c0_23, %c0_24] : memref<3x1x128xf32, #tpu.memory_space<vmem>>, vector<1x1x128xf32>
    %28 = vector.shape_cast %27 : vector<1x1x128xf32> to vector<1x128xf32>
    %29 = vector.broadcast %28 : vector<1x128xf32> to vector<256x128xf32>
    %30 = arith.addf %26, %29 : vector<256x128xf32>
    %31 = arith.truncf %30 : vector<256x128xf32> to vector<256x128xbf16>
    %cst_25 = arith.constant dense<0.000000e+00> : vector<256x128xf32>
    %32 = tpu.matmul %0, %31, %cst_25 {dimension_numbers = #tpu.dot_dimension_numbers<[1], [0], [0], [1], [0, 0, 1, 1], [], []>} : vector<256x256xbf16>, vector<256x128xbf16>, vector<256x128xf32> -> vector<256x128xf32>
    %33 = arith.truncf %32 : vector<256x128xf32> to vector<256x128xbf16>
    %c1 = arith.constant 1 : index
    %c0_26 = arith.constant 0 : index
    %c0_27 = arith.constant 0 : index
    %34 = vector.load %arg5[%c1, %c0_26, %c0_27] : memref<3x128x128xbf16, #tpu.memory_space<vmem>>, vector<1x128x128xbf16>
    %35 = vector.shape_cast %34 : vector<1x128x128xbf16> to vector<128x128xbf16>
    %cst_28 = arith.constant dense<0.000000e+00> : vector<256x128xf32>
    %36 = tpu.matmul %33, %35, %cst_28 {dimension_numbers = #tpu.dot_dimension_numbers<[1], [0], [0], [1], [0, 0, 1, 1], [], []>} : vector<256x128xbf16>, vector<128x128xbf16>, vector<256x128xf32> -> vector<256x128xf32>
    %c1_29 = arith.constant 1 : index
    %c0_30 = arith.constant 0 : index
    %c0_31 = arith.constant 0 : index
    %37 = vector.load %arg6[%c1_29, %c0_30, %c0_31] : memref<3x1x128xf32, #tpu.memory_space<vmem>>, vector<1x1x128xf32>
    %38 = vector.shape_cast %37 : vector<1x1x128xf32> to vector<1x128xf32>
    %39 = vector.broadcast %38 : vector<1x128xf32> to vector<256x128xf32>
    %40 = arith.addf %36, %39 : vector<256x128xf32>
    %cst_32 = arith.constant 0.000000e+00 : f32
    %41 = vector.broadcast %cst_32 : f32 to vector<256x128xf32>
    %42 = arith.maximumf %40, %41 : vector<256x128xf32>
    %43 = arith.truncf %42 : vector<256x128xf32> to vector<256x128xbf16>
    %c1_33 = arith.constant 1 : index
    %c0_34 = arith.constant 0 : index
    %c0_35 = arith.constant 0 : index
    %44 = vector.load %arg7[%c1_33, %c0_34, %c0_35] : memref<3x128x128xbf16, #tpu.memory_space<vmem>>, vector<1x128x128xbf16>
    %45 = vector.shape_cast %44 : vector<1x128x128xbf16> to vector<128x128xbf16>
    %cst_36 = arith.constant dense<0.000000e+00> : vector<256x128xf32>
    %46 = tpu.matmul %43, %45, %cst_36 {dimension_numbers = #tpu.dot_dimension_numbers<[1], [0], [0], [1], [0, 0, 1, 1], [], []>} : vector<256x128xbf16>, vector<128x128xbf16>, vector<256x128xf32> -> vector<256x128xf32>
    %c1_37 = arith.constant 1 : index
    %c0_38 = arith.constant 0 : index
    %c0_39 = arith.constant 0 : index
    %47 = vector.load %arg8[%c1_37, %c0_38, %c0_39] : memref<3x1x128xf32, #tpu.memory_space<vmem>>, vector<1x1x128xf32>
    %48 = vector.shape_cast %47 : vector<1x1x128xf32> to vector<1x128xf32>
    %49 = vector.broadcast %48 : vector<1x128xf32> to vector<256x128xf32>
    %50 = arith.addf %46, %49 : vector<256x128xf32>
    %cst_40 = arith.constant 0.000000e+00 : f32
    %51 = vector.broadcast %cst_40 : f32 to vector<256x128xf32>
    %52 = arith.maximumf %50, %51 : vector<256x128xf32>
    %c1_41 = arith.constant 1 : index
    %c0_42 = arith.constant 0 : index
    %c0_43 = arith.constant 0 : index
    %53 = vector.load %arg9[%c1_41, %c0_42, %c0_43] : memref<3x1x128xf32, #tpu.memory_space<vmem>>, vector<1x1x128xf32>
    %54 = vector.shape_cast %53 : vector<1x1x128xf32> to vector<1x128xf32>
    %55 = vector.broadcast %54 : vector<1x128xf32> to vector<256x128xf32>
    %56 = arith.mulf %52, %55 : vector<256x128xf32>
    %c1_44 = arith.constant 1 : index
    %c0_45 = arith.constant 0 : index
    %c0_46 = arith.constant 0 : index
    %57 = vector.load %arg10[%c1_44, %c0_45, %c0_46] : memref<3x1x128xf32, #tpu.memory_space<vmem>>, vector<1x1x128xf32>
    %58 = vector.shape_cast %57 : vector<1x1x128xf32> to vector<1x128xf32>
    %59 = vector.broadcast %58 : vector<1x128xf32> to vector<256x128xf32>
    %60 = arith.addf %56, %59 : vector<256x128xf32>
    %61 = arith.maximumf %30, %60 : vector<256x128xf32>
    %62 = arith.truncf %60 : vector<256x128xf32> to vector<256x128xbf16>
    %cst_47 = arith.constant dense<0.000000e+00> : vector<256x128xf32>
    %63 = tpu.matmul %0, %62, %cst_47 {dimension_numbers = #tpu.dot_dimension_numbers<[1], [0], [0], [1], [0, 0, 1, 1], [], []>} : vector<256x256xbf16>, vector<256x128xbf16>, vector<256x128xf32> -> vector<256x128xf32>
    %64 = arith.truncf %63 : vector<256x128xf32> to vector<256x128xbf16>
    %c2 = arith.constant 2 : index
    %c0_48 = arith.constant 0 : index
    %c0_49 = arith.constant 0 : index
    %65 = vector.load %arg5[%c2, %c0_48, %c0_49] : memref<3x128x128xbf16, #tpu.memory_space<vmem>>, vector<1x128x128xbf16>
    %66 = vector.shape_cast %65 : vector<1x128x128xbf16> to vector<128x128xbf16>
    %cst_50 = arith.constant dense<0.000000e+00> : vector<256x128xf32>
    %67 = tpu.matmul %64, %66, %cst_50 {dimension_numbers = #tpu.dot_dimension_numbers<[1], [0], [0], [1], [0, 0, 1, 1], [], []>} : vector<256x128xbf16>, vector<128x128xbf16>, vector<256x128xf32> -> vector<256x128xf32>
    %c2_51 = arith.constant 2 : index
    %c0_52 = arith.constant 0 : index
    %c0_53 = arith.constant 0 : index
    %68 = vector.load %arg6[%c2_51, %c0_52, %c0_53] : memref<3x1x128xf32, #tpu.memory_space<vmem>>, vector<1x1x128xf32>
    %69 = vector.shape_cast %68 : vector<1x1x128xf32> to vector<1x128xf32>
    %70 = vector.broadcast %69 : vector<1x128xf32> to vector<256x128xf32>
    %71 = arith.addf %67, %70 : vector<256x128xf32>
    %cst_54 = arith.constant 0.000000e+00 : f32
    %72 = vector.broadcast %cst_54 : f32 to vector<256x128xf32>
    %73 = arith.maximumf %71, %72 : vector<256x128xf32>
    %74 = arith.truncf %73 : vector<256x128xf32> to vector<256x128xbf16>
    %c2_55 = arith.constant 2 : index
    %c0_56 = arith.constant 0 : index
    %c0_57 = arith.constant 0 : index
    %75 = vector.load %arg7[%c2_55, %c0_56, %c0_57] : memref<3x128x128xbf16, #tpu.memory_space<vmem>>, vector<1x128x128xbf16>
    %76 = vector.shape_cast %75 : vector<1x128x128xbf16> to vector<128x128xbf16>
    %cst_58 = arith.constant dense<0.000000e+00> : vector<256x128xf32>
    %77 = tpu.matmul %74, %76, %cst_58 {dimension_numbers = #tpu.dot_dimension_numbers<[1], [0], [0], [1], [0, 0, 1, 1], [], []>} : vector<256x128xbf16>, vector<128x128xbf16>, vector<256x128xf32> -> vector<256x128xf32>
    %c2_59 = arith.constant 2 : index
    %c0_60 = arith.constant 0 : index
    %c0_61 = arith.constant 0 : index
    %78 = vector.load %arg8[%c2_59, %c0_60, %c0_61] : memref<3x1x128xf32, #tpu.memory_space<vmem>>, vector<1x1x128xf32>
    %79 = vector.shape_cast %78 : vector<1x1x128xf32> to vector<1x128xf32>
    %80 = vector.broadcast %79 : vector<1x128xf32> to vector<256x128xf32>
    %81 = arith.addf %77, %80 : vector<256x128xf32>
    %cst_62 = arith.constant 0.000000e+00 : f32
    %82 = vector.broadcast %cst_62 : f32 to vector<256x128xf32>
    %83 = arith.maximumf %81, %82 : vector<256x128xf32>
    %c2_63 = arith.constant 2 : index
    %c0_64 = arith.constant 0 : index
    %c0_65 = arith.constant 0 : index
    %84 = vector.load %arg9[%c2_63, %c0_64, %c0_65] : memref<3x1x128xf32, #tpu.memory_space<vmem>>, vector<1x1x128xf32>
    %85 = vector.shape_cast %84 : vector<1x1x128xf32> to vector<1x128xf32>
    %86 = vector.broadcast %85 : vector<1x128xf32> to vector<256x128xf32>
    %87 = arith.mulf %83, %86 : vector<256x128xf32>
    %c2_66 = arith.constant 2 : index
    %c0_67 = arith.constant 0 : index
    %c0_68 = arith.constant 0 : index
    %88 = vector.load %arg10[%c2_66, %c0_67, %c0_68] : memref<3x1x128xf32, #tpu.memory_space<vmem>>, vector<1x1x128xf32>
    %89 = vector.shape_cast %88 : vector<1x1x128xf32> to vector<1x128xf32>
    %90 = vector.broadcast %89 : vector<1x128xf32> to vector<256x128xf32>
    %91 = arith.addf %87, %90 : vector<256x128xf32>
    %92 = arith.maximumf %61, %91 : vector<256x128xf32>
    %c0_69 = arith.constant 0 : index
    %c0_70 = arith.constant 0 : index
    %93 = vector.load %arg4[%c0_69, %c0_70] : memref<8x128xf32, #tpu.memory_space<vmem>>, vector<8x128xf32>
    %c0_71 = arith.constant 0 : index
    %c0_72 = arith.constant 0 : index
    %94 = vector.load %arg3[%c0_71, %c0_72] : memref<8x256xbf16, #tpu.memory_space<vmem>>, vector<8x256xbf16>
    %95 = arith.truncf %92 : vector<256x128xf32> to vector<256x128xbf16>
    %cst_73 = arith.constant dense<0.000000e+00> : vector<8x128xf32>
    %96 = tpu.matmul %94, %95, %cst_73 {dimension_numbers = #tpu.dot_dimension_numbers<[1], [0], [0], [1], [0, 0, 1, 1], [], []>} : vector<8x256xbf16>, vector<256x128xbf16>, vector<8x128xf32> -> vector<8x128xf32>
    %97 = arith.mulf %96, %93 : vector<8x128xf32>
    %98 = arith.truncf %97 : vector<8x128xf32> to vector<8x128xbf16>
    %c0_74 = arith.constant 0 : index
    %c0_75 = arith.constant 0 : index
    %99 = vector.load %arg11[%c0_74, %c0_75] : memref<128x128xbf16, #tpu.memory_space<vmem>>, vector<128x128xbf16>
    %cst_76 = arith.constant dense<0.000000e+00> : vector<8x128xf32>
    %100 = tpu.matmul %98, %99, %cst_76 {dimension_numbers = #tpu.dot_dimension_numbers<[1], [0], [0], [1], [0, 0, 1, 1], [], []>} : vector<8x128xbf16>, vector<128x128xbf16>, vector<8x128xf32> -> vector<8x128xf32>
    %c0_77 = arith.constant 0 : index
    %c0_78 = arith.constant 0 : index
    %101 = vector.load %arg12[%c0_77, %c0_78] : memref<1x128xf32, #tpu.memory_space<vmem>>, vector<1x128xf32>
    %102 = vector.broadcast %101 : vector<1x128xf32> to vector<8x128xf32>
    %103 = arith.addf %100, %102 : vector<8x128xf32>
    %cst_79 = arith.constant 0.000000e+00 : f32
    %104 = vector.broadcast %cst_79 : f32 to vector<8x128xf32>
    %105 = arith.maximumf %103, %104 : vector<8x128xf32>
    %106 = arith.truncf %105 : vector<8x128xf32> to vector<8x128xbf16>
    %c0_80 = arith.constant 0 : index
    %c0_81 = arith.constant 0 : index
    %107 = vector.load %arg13[%c0_80, %c0_81] : memref<128x128xbf16, #tpu.memory_space<vmem>>, vector<128x128xbf16>
    %cst_82 = arith.constant dense<0.000000e+00> : vector<8x128xf32>
    %108 = tpu.matmul %106, %107, %cst_82 {dimension_numbers = #tpu.dot_dimension_numbers<[1], [0], [0], [1], [0, 0, 1, 1], [], []>} : vector<8x128xbf16>, vector<128x128xbf16>, vector<8x128xf32> -> vector<8x128xf32>
    %c0_83 = arith.constant 0 : index
    %c0_84 = arith.constant 0 : index
    %109 = vector.load %arg14[%c0_83, %c0_84] : memref<1x128xf32, #tpu.memory_space<vmem>>, vector<1x128xf32>
    %110 = vector.broadcast %109 : vector<1x128xf32> to vector<8x128xf32>
    %111 = arith.addf %108, %110 : vector<8x128xf32>
    %cst_85 = arith.constant -1.000000e+01 : f32
    %cst_86 = arith.constant 1.000000e+01 : f32
    %112 = vector.broadcast %cst_85 : f32 to vector<8x128xf32>
    %113 = arith.maximumf %112, %111 : vector<8x128xf32>
    %114 = vector.broadcast %cst_86 : f32 to vector<8x128xf32>
    %115 = arith.minimumf %114, %113 : vector<8x128xf32>
    %cst_87 = arith.constant 0.000000e+00 : f32
    %116 = vector.broadcast %cst_87 : f32 to vector<8x128xf32>
    %117 = arith.cmpf ogt, %93, %116 : vector<8x128xf32>
    %118 = tpu.iota {dimensions = array<i32: 1>} : vector<8x128xi32>
    %c4_i32 = arith.constant 4 : i32
    %119 = vector.broadcast %c4_i32 : i32 to vector<8x128xi32>
    %120 = arith.cmpi slt, %118, %119 : vector<8x128xi32>
    %121 = arith.andi %117, %120 : vector<8x128xi1>
    %cst_88 = arith.constant -1.000000e+30 : f32
    %122 = vector.broadcast %cst_88 : f32 to vector<8x128xf32>
    %123 = arith.select %120, %115, %122 : vector<8x128xi1>, vector<8x128xf32>
    %cst_89 = arith.constant dense<0xFF800000> : vector<8xf32>
    %124 = vector.multi_reduction <maximumf>, %123, %cst_89 [1] : vector<8x128xf32> to vector<8xf32>
    %125 = vector.shape_cast %124 : vector<8xf32> to vector<8x1xf32>
    %126 = vector.broadcast %125 : vector<8x1xf32> to vector<8x128xf32>
    %127 = arith.subf %123, %126 : vector<8x128xf32>
    %128 = math.exp %127 : vector<8x128xf32>
    %cst_90 = arith.constant 0.000000e+00 : f32
    %129 = vector.broadcast %cst_90 : f32 to vector<8x128xf32>
    %130 = arith.select %120, %128, %129 : vector<8x128xi1>, vector<8x128xf32>
    %cst_91 = arith.constant dense<0.000000e+00> : vector<8xf32>
    %131 = vector.multi_reduction <add>, %130, %cst_91 [1] : vector<8x128xf32> to vector<8xf32>
    %132 = vector.shape_cast %131 : vector<8xf32> to vector<8x1xf32>
    %133 = math.log %132 : vector<8x1xf32>
    %134 = vector.broadcast %125 : vector<8x1xf32> to vector<8x128xf32>
    %135 = arith.subf %123, %134 : vector<8x128xf32>
    %136 = vector.broadcast %133 : vector<8x1xf32> to vector<8x128xf32>
    %137 = arith.subf %135, %136 : vector<8x128xf32>
    %cst_92 = arith.constant 0.000000e+00 : f32
    %138 = vector.broadcast %cst_92 : f32 to vector<8x128xf32>
    %139 = arith.select %121, %137, %138 : vector<8x128xi1>, vector<8x128xf32>
    %c0_93 = arith.constant 0 : index
    %c0_94 = arith.constant 0 : index
    %140 = vector.load %arg15[%c0_93, %c0_94] : memref<8x128xf32, #tpu.memory_space<vmem>>, vector<8x128xf32>
    tpu.vector_store %arg15[%c0_93, %c0_94], %139 {strides = array<i32>} : memref<8x128xf32, #tpu.memory_space<vmem>>, vector<8x128xf32>,
    %cst_95 = arith.constant 0.000000e+00 : f32
    %141 = vector.broadcast %cst_95 : f32 to vector<8x128xf32>
    %142 = arith.select %121, %115, %141 : vector<8x128xi1>, vector<8x128xf32>
    %c0_96 = arith.constant 0 : index
    %c0_97 = arith.constant 0 : index
    %143 = vector.load %arg16[%c0_96, %c0_97] : memref<8x128xf32, #tpu.memory_space<vmem>>, vector<8x128xf32>
    tpu.vector_store %arg16[%c0_96, %c0_97], %142 {strides = array<i32>} : memref<8x128xf32, #tpu.memory_space<vmem>>, vector<8x128xf32>,
    return
  }
  func.func @transform_0(%arg0: i32) -> (i32, i32) {
    %c0_i32 = arith.constant 0 : i32
    %c0_i32_0 = arith.constant 0 : i32
    return %arg0, %c0_i32 : i32, i32
  }
  func.func @transform_1(%arg0: i32) -> (i32, i32) {
    %c0_i32 = arith.constant 0 : i32
    %c0_i32_0 = arith.constant 0 : i32
    return %arg0, %c0_i32 : i32, i32
  }
  func.func @transform_2(%arg0: i32) -> (i32, i32) {
    %c0_i32 = arith.constant 0 : i32
    %c0_i32_0 = arith.constant 0 : i32
    return %arg0, %c0_i32 : i32, i32
  }
  func.func @transform_3(%arg0: i32) -> (i32, i32) {
    %c0_i32 = arith.constant 0 : i32
    %c0_i32_0 = arith.constant 0 : i32
    return %arg0, %c0_i32 : i32, i32
  }
  func.func @transform_4(%arg0: i32) -> (i32, i32, i32) {
    %c0_i32 = arith.constant 0 : i32
    %c0_i32_0 = arith.constant 0 : i32
    %c0_i32_1 = arith.constant 0 : i32
    %c0_i32_2 = arith.constant 0 : i32
    return %c0_i32, %c0_i32_0, %c0_i32_1 : i32, i32, i32
  }
  func.func @transform_5(%arg0: i32) -> (i32, i32, i32) {
    %c0_i32 = arith.constant 0 : i32
    %c0_i32_0 = arith.constant 0 : i32
    %c0_i32_1 = arith.constant 0 : i32
    %c0_i32_2 = arith.constant 0 : i32
    return %c0_i32, %c0_i32_0, %c0_i32_1 : i32, i32, i32
  }
  func.func @transform_6(%arg0: i32) -> (i32, i32, i32) {
    %c0_i32 = arith.constant 0 : i32
    %c0_i32_0 = arith.constant 0 : i32
    %c0_i32_1 = arith.constant 0 : i32
    %c0_i32_2 = arith.constant 0 : i32
    return %c0_i32, %c0_i32_0, %c0_i32_1 : i32, i32, i32
  }
  func.func @transform_7(%arg0: i32) -> (i32, i32, i32) {
    %c0_i32 = arith.constant 0 : i32
    %c0_i32_0 = arith.constant 0 : i32
    %c0_i32_1 = arith.constant 0 : i32
    %c0_i32_2 = arith.constant 0 : i32
    return %c0_i32, %c0_i32_0, %c0_i32_1 : i32, i32, i32
  }
  func.func @transform_8(%arg0: i32) -> (i32, i32, i32) {
    %c0_i32 = arith.constant 0 : i32
    %c0_i32_0 = arith.constant 0 : i32
    %c0_i32_1 = arith.constant 0 : i32
    %c0_i32_2 = arith.constant 0 : i32
    return %c0_i32, %c0_i32_0, %c0_i32_1 : i32, i32, i32
  }
  func.func @transform_9(%arg0: i32) -> (i32, i32, i32) {
    %c0_i32 = arith.constant 0 : i32
    %c0_i32_0 = arith.constant 0 : i32
    %c0_i32_1 = arith.constant 0 : i32
    %c0_i32_2 = arith.constant 0 : i32
    return %c0_i32, %c0_i32_0, %c0_i32_1 : i32, i32, i32
  }
  func.func @transform_10(%arg0: i32) -> (i32, i32) {
    %c0_i32 = arith.constant 0 : i32
    %c0_i32_0 = arith.constant 0 : i32
    %c0_i32_1 = arith.constant 0 : i32
    return %c0_i32, %c0_i32_0 : i32, i32
  }
  func.func @transform_11(%arg0: i32) -> (i32, i32) {
    %c0_i32 = arith.constant 0 : i32
    %c0_i32_0 = arith.constant 0 : i32
    %c0_i32_1 = arith.constant 0 : i32
    return %c0_i32, %c0_i32_0 : i32, i32
  }
  func.func @transform_12(%arg0: i32) -> (i32, i32) {
    %c0_i32 = arith.constant 0 : i32
    %c0_i32_0 = arith.constant 0 : i32
    %c0_i32_1 = arith.constant 0 : i32
    return %c0_i32, %c0_i32_0 : i32, i32
  }
  func.func @transform_13(%arg0: i32) -> (i32, i32) {
    %c0_i32 = arith.constant 0 : i32
    %c0_i32_0 = arith.constant 0 : i32
    %c0_i32_1 = arith.constant 0 : i32
    return %c0_i32, %c0_i32_0 : i32, i32
  }
  func.func @transform_14(%arg0: i32) -> (i32, i32) {
    %c0_i32 = arith.constant 0 : i32
    %c0_i32_0 = arith.constant 0 : i32
    return %arg0, %c0_i32 : i32, i32
  }
  func.func @transform_15(%arg0: i32) -> (i32, i32) {
    %c0_i32 = arith.constant 0 : i32
    %c0_i32_0 = arith.constant 0 : i32
    return %arg0, %c0_i32 : i32, i32
  }
}

</mosaic_0001>

<bundles_post_ra>
// kernel: mygin_forward.1
= control target key start
LH: loop header
LB: loop body
LE: loop exit
PB: predicated region body
PF: predicated region fallthrough
CT: control target
= control target key end

     0   :  { %s7224_s0 = inlined_call_operand.hbm [shape: bf16[512,128], index: 0, kind: input, shape index: {}]   ;;  %s7225_s1 = inlined_call_operand.hbm [shape: bf16[512,256], index: 1, kind: input, shape index: {}]   ;;  %s7226_s2 = inlined_call_operand.hbm [shape: bf16[16,256], index: 2, kind: input, shape index: {}]   ;;  %s7227_s3 = inlined_call_operand.hbm [shape: f32[16,128], index: 3, kind: input, shape index: {}]   ;;  %s7228_s4 = inlined_call_operand.hbm [shape: bf16[3,128,128], index: 4, kind: input, shape index: {}]   ;;  %s7229_s5 = inlined_call_operand.vmem [shape: f32[3,1,128], index: 5, kind: input, shape index: {}]   ;;  %s7230_s6 = inlined_call_operand.hbm [shape: bf16[3,128,128], index: 6, kind: input, shape index: {}]   ;;  %s7231_s7 = inlined_call_operand.vmem [shape: f32[3,1,128], index: 7, kind: input, shape index: {}]   ;;  %s7232_s8 = inlined_call_operand.vmem [shape: f32[3,1,128], index: 8, kind: input, shape index: {}]   ;;  %s7233_s9 = inlined_call_operand.vmem [shape: f32[3,1,128], index: 9, kind: input, shape index: {}]   ;;  %s7234_s10 = inlined_call_operand.hbm [shape: bf16[128,128], index: 10, kind: input, shape index: {}]   ;;  %s7235_s11 = inlined_call_operand.hbm [shape: f32[1,128], index: 11, kind: input, shape index: {}]   ;;  %s7236_s12 = inlined_call_operand.hbm [shape: bf16[128,128], index: 12, kind: input, shape index: {}]   ;;  %s7237_s13 = inlined_call_operand.hbm [shape: f32[1,128], index: 13, kind: input, shape index: {}]   ;;  %s7238_s14 = inlined_call_operand.vmem [shape: f32[16,128], index: 14, kind: output, shape index: {0}]   ;;  %s7239_s15 = inlined_call_operand.vmem [shape: f32[16,128], index: 15, kind: output, shape index: {1}]  }
   0x1   :  { %7280 = sst [smem:[#allocation50_spill]] %s7225_s1 }
   0x2   :  { %7281 = sst [smem:[#allocation51_spill]] %s7228_s4 }
   0x3   :  { %7282 = sst [smem:[#allocation52_spill]] %s7230_s6 }
   0x4   :  { %7283 = sst [smem:[#allocation53_spill]] %s7233_s9 }
   0x5   :  { %7284 = sst [smem:[#allocation54_spill]] %s7234_s10 }
   0x6   :  { %7285 = sst [smem:[#allocation55_spill]] %s7235_s11 }
   0x7   :  { %7286 = sst [smem:[#allocation56_spill]] %s7236_s12 }
   0x8   :  { %7287 = sst [smem:[#allocation57_spill]] %s7238_s14 }
   0x9   :  { %7288 = sst [smem:[#allocation58_spill]] %s7239_s15 }
   0xa   :  { %21 = vsyncpa [#allocation3], 0 }
   0xb   :  { %23 = vsyncpa [#allocation3 + $0x1], 0 }
   0xc   :  { %24 = vsyncpa [#allocation5], 0 }
   0xd   :  { %26 = vsyncpa [#allocation5 + $0x1], 0 }
   0xe   :  { %27 = vsyncpa [#allocation8], 0 }
   0xf   :  { %29 = vsyncpa [#allocation8 + $0x1], 0 }
  0x10   :  { %30 = vsyncpa [#allocation11], 0 }
  0x11   :  { %31 = vsyncpa [#allocation14], 0 }
  0x12   :  { %32 = vsyncpa [#allocation17], 0  ;;  %s5848_s18 = smov 0   ;;  %s5850_s19 = smov 0  }
  0x13   :  { %s5852_s20 = smov 0   ;;  %s5854_s21 = smov 0  }
  0x14 LB: > { %7289 = sst [smem:[#allocation25_spill]] %s5746_s20  ;;  %s5752_s22 = smov [#allocation9]   ;;  %s5750_s21 = sphi %s5854_s21, %s7374_s21   ;;  %s5746_s20 = sphi %s5852_s20, %s7379_s20   ;;  %s5742_s19 = sphi %s5850_s19, %s7378_s19   ;;  %s5738_s18 = sphi %s5848_s18, %s7377_s18  }
  0x15   : > { %s421_s23 = sshll.u32 %s5752_s22, 4  ;;  %s5869_s24 = sadd.s32 4294967295, %s5750_s21   ;;  %s422_s23 = int_to_ptr.vmem [resolvable:$true] %s421_s23 }
  0x16   : > { %p4082_p0 = scmp.ge.s32.totalorder %s5750_s21, 1  ;;  %p7248_p1 = scmp.eq.s32.totalorder %s5869_s24, 0 }
  0x17   : > { %p409_p2 = scmp.lt.s32.totalorder %s5750_s21, 3  ;;  %s5753_s26 = smov [#allocation10]  }
  0x18   : > { %s437_s27 = sshll.u32 %s5753_s26, 4  ;;  %s5754_s29 = smov [#allocation13]   ;;  %s5886_s27 = int_to_ptr.vmem [resolvable:$true] %s437_s27 }
  0x19   : > { %p5874_p3 = pnand %p4082_p0, %p409_p2  ;;  %s473_s30 = sshll.u32 %s5754_s29, 4  ;;  %s5888_s30 = int_to_ptr.vmem [resolvable:$true] %s473_s30 }
  0x1a   : > { %s5435_s17 = scalar_lea.vmem %s422_s23, 3072  ;;  %p5443_p10 = scmp.lt.s32.totalorder %s422_s23, %s422_s23 }
  0x1b   : > { %s7290_s25 = scalar_select %p5874_p3, 1, 0 }
  0x1c   : > { %p5138_p4 = pneg %p5874_p3  ;;  %p5436_p7 = scmp.ne.s32.totalorder %s422_s23, %s5435_s17 }
  0x1d   : > { %p5444_p11 = scmp.lt.s32.totalorder %s5435_s17, %s5435_s17 }
  0x1e   : > { %p5882_p5 = pnand %p5138_p4, %p7248_p1 }
  0x1f   : > { %p5445_p12 = por %p5444_p11, %p5443_p10 }
  0x20   : > { %s7291_s28 = scalar_select %p5882_p5, 1, 0 }
  0x21   : > { %p5892_p6 = pneg %p5882_p5 }
  0x23   : > { %s7292_s16 = scalar_select %p5892_p6, 1, 0 }
  0x24   : > { %p5438_p8 = pnand %p5436_p7, %p5892_p6 }
  0x26   : > { %p5439_p9 = pneg %p5438_p8 }
  0x28   : > { %p5446_p13 = pnand %p5445_p12, %p5439_p9 }
  0x2a   : > { %5449 = shalt.err (!%p5446_p13)
}
  0x2b   : > { %s7240_s22 = smov 64   ;;  %s7242_s26 = smov 4  }
  0x2c   : > { %s7293_s4 = sld [smem:[#allocation51_spill]]  ;;  %s5461_s15 = scalar_lea.vmem %s5886_s27, 3072 }
  0x2d   : > { %p5462_p0 = scmp.ne.s32.totalorder %s5886_s27, %s5461_s15  ;;  %p5469_p7 = scmp.lt.s32.totalorder %s5886_s27, %s5886_s27 }
  0x2e   : > { %p5470_p8 = scmp.lt.s32.totalorder %s5461_s15, %s5461_s15 }
  0x2f   : > { %p5464_p2 = pnand %p5462_p0, %p5892_p6 }
  0x30   : > { %p5471_p9 = por %p5470_p8, %p5469_p7 }
  0x31   : > { %p5465_p4 = pneg %p5464_p2 }
  0x32   : > { %5141 = dma.hbm_to_vmem [thread:$0]  (!%p5882_p5), %s7293_s4, 3072, %s422_s23, [#allocation8], %s7240_s22, %s7240_s22, %s7242_s26  }
  0x33   : > { %p5472_p10 = pnand %p5471_p9, %p5465_p4 }
  0x35   : > { %5475 = shalt.err (!%p5472_p10)
}
  0x36   : > { %s7294_s6 = sld [smem:[#allocation52_spill]]  ;;  %s5487_s23 = scalar_lea.vmem %s5888_s30, 16 }
  0x37   : > { %p5488_p11 = scmp.ne.s32.totalorder %s5888_s30, %s5487_s23  ;;  %s5494_s15 = scalar_lea.vmem %s5888_s30, 32 }
  0x38   : > { %p5495_p0 = scmp.lt.s32.totalorder %s5888_s30, %s5888_s30  ;;  %p5496_p2 = scmp.lt.s32.totalorder %s5494_s15, %s5487_s23 }
  0x39   : > { %p5490_p12 = pnand %p5488_p11, %p5892_p6 }
  0x3a   : > { %p5497_p4 = por %p5496_p2, %p5495_p0 }
  0x3b   : > { %p5491_p13 = pneg %p5490_p12 }
  0x3c   : > { %5144 = dma.hbm_to_vmem [thread:$0]  (!%p5882_p5), %s7294_s6, 3072, %s5886_s27, [#allocation11], %s7240_s22, %s7240_s22, %s7242_s26  }
  0x3d   : > { %p5498_p7 = pnand %p5497_p4, %p5491_p13 }
  0x3f   : > { %5501 = shalt.err (!%p5498_p7)
}
  0x40   : > { %s7295_s11 = sld [smem:[#allocation55_spill]]  ;;  %s5935_s27 = sadd.s32 1, %s5750_s21  }
  0x41   : > { %7296 = sst [smem:[#allocation26_spill]] %s5935_s27  ;;  %s42_s14 = ssub.s32 %s5750_s21, %s5935_s27 }
  0x42   : > { %s45_s23 = sadd.s32 1, %s5746_s20  ;;  %p43_p8 = scmp.eq.s32.totalorder %s42_s14, 0 }
  0x43   : > { %p52_p9 = scmp.ne.s32.totalorder %s5746_s20, %s5742_s19  ;;  %p53_p10 = scmp.eq.s32.totalorder %s5750_s21, 0 }
  0x44   : > { %p58_p11 = scmp.ne.s32.totalorder %s5742_s19, %s5738_s18  ;;  %p5176_p0 = scmp.lt.s32.totalorder %s5750_s21, 2 }
  0x45   : > { %s5946_s15 = scalar_select %p43_p8, %s5746_s20, %s45_s23  }
  0x46   : > { %5150 = dma.hbm_to_vmem [thread:$0]  (!%p5882_p5), %s7295_s11, 16, %s5888_s30, [#allocation14]  }
  0x47   : > { %7297 = sst [smem:[#allocation27_spill]] %s5946_s15  ;;  %p54_p12 = por %p53_p10, %p52_p9 }
  0x48   : > { %p5950_p13 = por %p7248_p1, %p58_p11  ;;  %s5956_s30 = sand.u32 1, %s5746_s20  }
  0x49   : > { %s7247_s17 = sand.u32 1, %s5750_s21   ;;  %s4093_s22 = sshll.u32 %s5956_s30, 8 }
  0x4a   : > { %s7298_s29 = scalar_select %p5950_p13, 1, 0 }
  0x4b   : > { %p5960_p2 = pnand %p5176_p0, %p54_p12  ;;  %s4256_s18 = sshll.u32 %s5750_s21, 12 }
  0x4c   : > { %s7300_s1 = sld [smem:[#allocation50_spill]]  ;;  %s533_s6 = scalar_lea.vmem [#allocation4], %s4093_s22 }
  0x4d   : > { %s541_s11 = sshll.u32 %s533_s6, 4  ;;  %s5974_s15 = scalar_lea.sflag [#allocation5], %s7247_s17  ;;  %s5970_s11 = int_to_ptr.vmem [resolvable:$true] %s541_s11 }
  0x4e   : > { %p5980_p7 = pneg %p5960_p2 }
  0x52   : > { %s5968_s4 = scalar_lea.hbm %s7300_s1, %s4256_s18  ;;  %s5507_s6 = scalar_lea.hbm %s7300_s1, 8192 }
  0x53   : > { %s5502_s20 = scalar_lea.hbm %s5968_s4, 4096  ;;  %p5508_p10 = scmp.lt.s32.totalorder %s5968_s4, %s7300_s1 }
  0x54   : > { %p5503_p4 = scmp.ne.s32.totalorder %s5968_s4, %s5502_s20  ;;  %p5509_p11 = scmp.lt.s32.totalorder %s5507_s6, %s5502_s20 }
  0x56   : > { %p5505_p8 = pnand %p5980_p7, %p5503_p4  ;;  %p5510_p12 = por %p5509_p11, %p5508_p10 }
  0x58   : > { %p5506_p9 = pneg %p5505_p8 }
  0x5a   : > { %p5511_p0 = pnand %p5510_p12, %p5506_p9 }
  0x5c   : > { %5514 = shalt.err (!%p5511_p0)
}
  0x5d   : > { %s5515_s17 = scalar_lea.vmem %s5970_s11, 4096  ;;  %s5757_s9 = smov [#allocation4]  }
  0x5e   : > { %p5516_p1 = scmp.ne.s32.totalorder %s5970_s11, %s5515_s17  ;;  %s5520_s26 = sshll.u32 %s5757_s9, 4  ;;  %s5521_s26 = int_to_ptr.vmem [resolvable:$false] %s5520_s26 }
  0x5f   : > { %s5522_s18 = scalar_lea.vmem %s5521_s26, 8192  ;;  %p5523_p13 = scmp.lt.s32.totalorder %s5970_s11, %s5521_s26 }
  0x60   : > { %p5518_p4 = pnand %p5516_p1, %p5980_p7  ;;  %p5524_p3 = scmp.lt.s32.totalorder %s5522_s18, %s5515_s17 }
  0x62   : > { %p5519_p8 = pneg %p5518_p4  ;;  %p5525_p5 = por %p5524_p3, %p5523_p13 }
  0x64   : > { %p5526_p6 = pnand %p5525_p5, %p5519_p8 }
  0x66   : > { %5529 = shalt.err (!%p5526_p6)
}
  0x67   : > { %s5758_s20 = smov 128   ;;  %s5759_s6 = smov 8  }
  0x68   : > { %5163 = dma.hbm_to_vmem [thread:$0]  (!%p5960_p2), %s5968_s4, 4096, %s5970_s11, %s5974_s15, %s5758_s20, %s5758_s20, %s5759_s6  }
  0x69   : > { %s5760_s22 = smov [#allocation12]   ;;  %s5761_s1 = smov [#allocation15]  }
  0x6a   : > { %s459_s23 = sshll.u32 %s5760_s22, 4  ;;  %s483_s9 = sshll.u32 %s5761_s1, 4  ;;  %s460_s23 = int_to_ptr.vmem [resolvable:$true] %s459_s23  ;;  %s484_s9 = int_to_ptr.vmem [resolvable:$true] %s483_s9 }
  0x6b   : > { %s5541_s26 = scalar_lea.vmem %s460_s23, 1024  ;;  %p7302_p3 = scmp.ne.s32.totalorder %s7292_s16, 0 }
  0x6c   : > { %p5542_p1 = scmp.ne.s32.totalorder %s460_s23, %s5541_s26  ;;  %p5549_p13 = scmp.lt.s32.totalorder %s460_s23, %s460_s23 }
  0x6d   : > { %p5550_p9 = scmp.lt.s32.totalorder %s5541_s26, %s5541_s26 }
  0x6e   : > { %p5544_p5 = pnand %p5542_p1, %p7302_p3 }
  0x6f   : > { %p5551_p10 = por %p5550_p9, %p5549_p13 }
  0x70   : > { %p5545_p6 = pneg %p5544_p5 }
  0x72   : > { %p5552_p11 = pnand %p5551_p10, %p5545_p6 }
  0x74   : > { %5555 = shalt.err (!%p5552_p11)
}
  0x75   : > { %p7303_p12 = scmp.ne.s32.totalorder %s7291_s28, 0  ;;  %s7304_s17 = smov 4  }
  0x76   : > { %s7305_s4 = smov 64   ;;  %s7306_s10 = sld [smem:[#allocation54_spill]] }
  0x77   : > { %s5567_s1 = scalar_lea.vmem %s484_s9, 1024  ;;  %p5575_p1 = scmp.lt.s32.totalorder %s484_s9, %s484_s9 }
  0x78   : > { %p5568_p0 = scmp.ne.s32.totalorder %s484_s9, %s5567_s1  ;;  %p5576_p5 = scmp.lt.s32.totalorder %s5567_s1, %s5567_s1 }
  0x7a   : > { %p5570_p4 = pnand %p5568_p0, %p7302_p3  ;;  %p5577_p13 = por %p5576_p5, %p5575_p1 }
  0x7c   : > { %5147 = dma.hbm_to_vmem [thread:$0]  (!%p7303_p12), %s7306_s10, 1024, %s460_s23, [#allocation11], %s7305_s4, %s7305_s4, %s7304_s17  }
  0x7d   : > { %p5571_p8 = pneg %p5570_p4 }
  0x7f   : > { %p5578_p6 = pnand %p5577_p13, %p5571_p8 }
  0x81   : > { %5581 = shalt.err (!%p5578_p6)
}
  0x82   : > { %s7307_s12 = sld [smem:[#allocation56_spill]]  ;;  %s5762_s22 = smov [#allocation16]  }
  0x83   : > { %s497_s23 = sshll.u32 %s5762_s22, 4  ;;  %s4090_s26 = sshll.u32 %s5956_s30, 7  ;;  %s498_s23 = int_to_ptr.vmem [resolvable:$true] %s497_s23 }
  0x84   : > { %s5593_s11 = scalar_lea.vmem %s498_s23, 16  ;;  %s5600_s18 = scalar_lea.vmem %s498_s23, 32 }
  0x85   : > { %p5594_p9 = scmp.ne.s32.totalorder %s498_s23, %s5593_s11  ;;  %p5601_p0 = scmp.lt.s32.totalorder %s498_s23, %s498_s23 }
  0x86   : > { %p5602_p4 = scmp.lt.s32.totalorder %s5600_s18, %s5593_s11 }
  0x87   : > { %p5596_p10 = pnand %p5594_p9, %p7302_p3 }
  0x88   : > { %5153 = dma.hbm_to_vmem [thread:$0]  (!%p7303_p12), %s7307_s12, 1024, %s484_s9, [#allocation14], %s7305_s4, %s7305_s4, %s7304_s17  }
  0x89   : > { %p5597_p11 = pneg %p5596_p10  ;;  %p5603_p8 = por %p5602_p4, %p5601_p0 }
  0x8b   : > { %p5604_p1 = pnand %p5603_p8, %p5597_p11 }
  0x8d   : > { %5607 = shalt.err (!%p5604_p1)
}
  0x8e   : > { %5156 = dma.hbm_to_vmem [thread:$0]  (!%p7303_p12), %s7237_s13, 16, %s498_s23, [#allocation17]  }
  0x8f   : > { %s4254_s9 = sshll.u32 %s5750_s21, 11  ;;  %s512_s6 = scalar_lea.vmem [#allocation2], %s4090_s26 }
  0x90   : > { %s519_s16 = sshll.u32 %s512_s6, 4  ;;  %s6035_s12 = scalar_lea.hbm %s7224_s0, %s4254_s9  ;;  %s6037_s16 = int_to_ptr.vmem [resolvable:$true] %s519_s16 }
  0x91   : > { %s509_s28 = scalar_lea.sflag [#allocation3], %s5956_s30  ;;  %s5608_s11 = scalar_lea.hbm %s6035_s12, 2048 }
  0x92   : > { %p5609_p3 = scmp.ne.s32.totalorder %s6035_s12, %s5608_s11  ;;  %s5613_s26 = scalar_lea.hbm %s7224_s0, 4096 }
  0x93   : > { %p5614_p12 = scmp.lt.s32.totalorder %s6035_s12, %s7224_s0  ;;  %p5615_p6 = scmp.lt.s32.totalorder %s5613_s26, %s5608_s11 }
  0x94   : > { %p5611_p5 = pnand %p5609_p3, %p5980_p7 }
  0x95   : > { %p5616_p9 = por %p5615_p6, %p5614_p12 }
  0x96   : > { %p5612_p13 = pneg %p5611_p5 }
  0x98   : > { %p5617_p10 = pnand %p5616_p9, %p5612_p13 }
  0x9a   : > { %5620 = shalt.err (!%p5617_p10)
}
  0x9b   : > { %s5621_s10 = scalar_lea.vmem %s6037_s16, 2048  ;;  %s5763_s9 = smov [#allocation2]  }
  0x9c   : > { %p5622_p11 = scmp.ne.s32.totalorder %s6037_s16, %s5621_s10  ;;  %s5626_s6 = sshll.u32 %s5763_s9, 4  ;;  %s5627_s6 = int_to_ptr.vmem [resolvable:$false] %s5626_s6 }
  0x9d   : > { %s5628_s22 = scalar_lea.vmem %s5627_s6, 4096  ;;  %p5629_p8 = scmp.lt.s32.totalorder %s6037_s16, %s5627_s6 }
  0x9e   : > { %p5624_p0 = pnand %p5622_p11, %p5980_p7  ;;  %p5630_p1 = scmp.lt.s32.totalorder %s5628_s22, %s5621_s10 }
  0xa0   : > { %p5625_p4 = pneg %p5624_p0  ;;  %p5631_p3 = por %p5630_p1, %p5629_p8 }
  0xa2   : > { %p5632_p5 = pnand %p5631_p3, %p5625_p4 }
  0xa4   : > { %5635 = shalt.err (!%p5632_p5)
}
  0xa5   : > { %5160 = dma.hbm_to_vmem [thread:$0]  (!%p5960_p2), %s6035_s12, 2048, %s6037_s16, %s509_s28, %s7305_s4, %s7305_s4, %s7304_s17  }
  0xa6   : > { %s4097_s11 = sshll.u32 %s5956_s30, 3  ;;  %s4257_s23 = sshll.u32 %s5750_s21, 7 }
  0xa7   : > { %s561_s1 = scalar_lea.hbm %s7226_s2, %s4257_s23  ;;  %s555_s20 = scalar_lea.vmem [#allocation6], %s4097_s11 }
  0xa8   : > { %s563_s10 = sshll.u32 %s555_s20, 4  ;;  %s5636_s9 = scalar_lea.hbm %s561_s1, 128  ;;  %s564_s10 = int_to_ptr.vmem [resolvable:$true] %s563_s10 }
  0xa9   : > { %p5637_p13 = scmp.ne.s32.totalorder %s561_s1, %s5636_s9  ;;  %s5641_s12 = scalar_lea.hbm %s7226_s2, 256 }
  0xaa   : > { %p5642_p9 = scmp.lt.s32.totalorder %s561_s1, %s7226_s2  ;;  %p5643_p10 = scmp.lt.s32.totalorder %s5641_s12, %s5636_s9 }
  0xab   : > { %p5639_p12 = pnand %p5637_p13, %p5980_p7 }
  0xac   : > { %p5644_p11 = por %p5643_p10, %p5642_p9 }
  0xad   : > { %p5640_p6 = pneg %p5639_p12 }
  0xaf   : > { %p5645_p0 = pnand %p5644_p11, %p5640_p6 }
  0xb1   : > { %5648 = shalt.err (!%p5645_p0)
}
  0xb2   : > { %s5649_s16 = scalar_lea.vmem %s564_s10, 128  ;;  %s5764_s28 = smov [#allocation6]  }
  0xb3   : > { %p5650_p4 = scmp.ne.s32.totalorder %s564_s10, %s5649_s16  ;;  %s5654_s18 = sshll.u32 %s5764_s28, 4  ;;  %s5655_s18 = int_to_ptr.vmem [resolvable:$false] %s5654_s18 }
  0xb4   : > { %s5656_s26 = scalar_lea.vmem %s5655_s18, 256  ;;  %p5657_p3 = scmp.lt.s32.totalorder %s564_s10, %s5655_s18 }
  0xb5   : > { %p5652_p8 = pnand %p5650_p4, %p5980_p7  ;;  %p5658_p5 = scmp.lt.s32.totalorder %s5656_s26, %s5649_s16 }
  0xb7   : > { %p5653_p1 = pneg %p5652_p8  ;;  %p5659_p13 = por %p5658_p5, %p5657_p3 }
  0xb9   : > { %p5660_p12 = pnand %p5659_p13, %p5653_p1 }
  0xbb   : > { %5663 = shalt.err (!%p5660_p12)
}
  0xbc   : > { %5166 = dma.hbm_to_vmem [thread:$0]  (!%p5960_p2), %s561_s1, 128, %s564_s10, %s5974_s15  }
  0xbd   : > { %s6090_s6 = scalar_lea.hbm %s7227_s3, %s4257_s23  ;;  %s574_s22 = scalar_lea.vmem [#allocation7], %s4097_s11 }
  0xbe   : > { %s581_s12 = sshll.u32 %s574_s22, 4  ;;  %s7308_s17 = sand.u32 1, %s5750_s21   ;;  %s582_s12 = int_to_ptr.vmem [resolvable:$true] %s581_s12 }
  0xbf   : > { %s571_s4 = scalar_lea.sflag [#allocation8], %s7308_s17  ;;  %s5664_s16 = scalar_lea.hbm %s6090_s6, 128 }
  0xc0   : > { %p5665_p6 = scmp.ne.s32.totalorder %s6090_s6, %s5664_s16  ;;  %s5669_s10 = scalar_lea.hbm %s7227_s3, 256 }
  0xc1   : > { %p5670_p11 = scmp.lt.s32.totalorder %s6090_s6, %s7227_s3  ;;  %p5671_p0 = scmp.lt.s32.totalorder %s5669_s10, %s5664_s16 }
  0xc2   : > { %p5667_p9 = pnand %p5665_p6, %p5980_p7 }
  0xc3   : > { %p5672_p4 = por %p5671_p0, %p5670_p11 }
  0xc4   : > { %p5668_p10 = pneg %p5667_p9 }
  0xc6   : > { %p5673_p8 = pnand %p5672_p4, %p5668_p10 }
  0xc8   : > { %5676 = shalt.err (!%p5673_p8)
}
  0xc9   : > { %s5677_s30 = scalar_lea.vmem %s582_s12, 128  ;;  %s5765_s21 = smov [#allocation7]  }
  0xca   : > { %p5678_p1 = scmp.ne.s32.totalorder %s582_s12, %s5677_s30  ;;  %s5682_s11 = sshll.u32 %s5765_s21, 4  ;;  %s5683_s11 = int_to_ptr.vmem [resolvable:$false] %s5682_s11 }
  0xcb   : > { %s5684_s18 = scalar_lea.vmem %s5683_s11, 256  ;;  %p5685_p13 = scmp.lt.s32.totalorder %s582_s12, %s5683_s11 }
  0xcc   : > { %p5680_p3 = pnand %p5678_p1, %p5980_p7  ;;  %p5686_p12 = scmp.lt.s32.totalorder %s5684_s18, %s5677_s30 }
  0xce   : > { %p5681_p5 = pneg %p5680_p3  ;;  %p5687_p6 = por %p5686_p12, %p5685_p13 }
  0xd0   : > { %p5688_p9 = pnand %p5687_p6, %p5681_p5 }
  0xd2   : > { %5691 = shalt.err (!%p5688_p9)
}
  0xd3   : > { %5169 = dma.hbm_to_vmem [thread:$0]  (!%p5960_p2), %s6090_s6, 128, %s582_s12, %s571_s4  }
  0xd4   : > { %p7309_p10 = scmp.ne.s32.totalorder %s7290_s25, 0 }
  0xd6   : > { %590 = sbr.rel (%p7309_p10) target bundleno = 3493 (0xda5), region = 76 }
  0xdb   : > { %s592_s27 = sand.u32 1, %s5742_s19   ;;  %p7310_p7 = scmp.ne.s32.totalorder %s7298_s29, 0 }
  0xdc   : > { %s4103_s26 = sshll.u32 %s592_s27, 7  ;;  %s593_s20 = scalar_lea.sflag [#allocation3], %s592_s27 }
  0xdd   : > { %s6115_s9 = scalar_lea.vmem [#allocation2], %s4103_s26 }
  0xde   : > { %5709 = dma.done.wait (%p7310_p7), %s593_s20, 2048  }
  0xdf   : > { %5711 = vsyncadd (%p7310_p7), %s593_s20, 4294965248  ;;  %s601_s14 = sand.u32 1, %s5869_s24   ;;  %s4104_s22 = sshll.u32 %s592_s27, 8 }
  0xe0   : > { %s602_s6 = scalar_lea.sflag [#allocation5], %s601_s14  ;;  %s6122_s12 = scalar_lea.vmem [#allocation4], %s4104_s22 }
  0xe1   : > { %5713 = dma.done.wait (%p7310_p7), %s602_s6, 4224  }
  0xe2   : > { %5715 = vsyncadd (%p7310_p7), %s602_s6, 4294963072  ;;  %s4105_s25 = sshll.u32 %s592_s27, 3  ;;  %s620_s4 = scalar_lea.sflag [#allocation8], %s601_s14 }
  0xe3   : > { %s6128_s17 = scalar_lea.vmem [#allocation6], %s4105_s25  ;;  %s6130_s16 = scalar_lea.vmem [#allocation7], %s4105_s25 }
  0xe4   : > { %5717 = dma.done.wait (%p7310_p7), %s620_s4, 128  }
  0xe5   : > { %5719 = vsyncadd (%p7310_p7), %s620_s4, 4294967168  ;;  %p7311_p2 = scmp.eq.s32.totalorder %s5869_s24, 0 }
  0xe7   : > { %5721 = dma.done.wait (%p7311_p2), [#allocation8], 3072   ;;  %p7312_p11 = pmov %p7311_p2 }
  0xe8   : > { %p7313_p0 = pmov %p7311_p2 }
  0xe9   : > { %5723 = vsyncadd (%p7312_p11), [#allocation8], 4294964224 }
  0xea   : > { %5725 = dma.done.wait (%p7313_p0), [#allocation11], 4096   ;;  %p7314_p4 = pmov %p7313_p0 }
  0xeb   : > { %p7315_p8 = pmov %p7313_p0 }
  0xec   : > { %5727 = vsyncadd (%p7314_p4), [#allocation11], 4294963200 }
  0xed   : > { %5729 = dma.done.wait (%p7315_p8), [#allocation14], 1040   ;;  %p7316_p1 = pmov %p7313_p0 }
  0xee   : > { %p7317_p3 = pmov %p7313_p0 }
  0xef   : > { %5731 = vsyncadd (%p7316_p1), [#allocation14], 4294966256 }
  0xf0   : > { %5733 = dma.done.wait (%p7317_p3), [#allocation17], 16   ;;  %p7318_p5 = pmov %p7313_p0 }
  0xf1   : > { %v5227_v0 = vld [vmem:[%s6115_s9 + $0x78] sm:$0xff]   ;;  %v5229_v2 = vld [vmem:[%s6115_s9 + $0x70] sm:$0xff]   ;;  %v5231_v4 = vld [vmem:[%s6115_s9 + $0x68] sm:$0xff]   ;;  %s7319_s11 = sld [smem:[#allocation53_spill]]  ;;  %vm5767_vm0 = vmmov 0   ;;  %p714_p13 = scmp.lt.s32.totalorder %s5869_s24, 1 }
  0xf2   : > { %5735 = vsyncadd (%p7318_p5), [#allocation17], 4294967280  ;;  %v5228_v1 = vld [vmem:[%s6115_s9 + $0x38] sm:$0xff]   ;;  %4258 = vmatprep.subr.bf16.mxu0 %v5227_v0  ;;  %v5230_v3 = vld [vmem:[%s6115_s9 + $0x30] sm:$0xff]   ;;  %s7372_s30 = sld [smem:[#allocation58_spill]] }
  0xf3   : > { %4259 = vmatpush3.bf16.msra.mxu0 %v5228_v1  ;;  %v5232_v5 = vld [vmem:[%s6115_s9 + $0x28] sm:$0xff]   ;;  %v5233_v6 = vld [vmem:[%s6115_s9 + $0x60] sm:$0xff]   ;;  %v5235_v8 = vld [vmem:[%s6115_s9 + $0x58] sm:$0xff]   ;;  %s7381_s24 = smov (!%p714_p13, %s5869_s24), 1  ;;  %s7373_s27 = sld [smem:[#allocation57_spill]] }
  0xf4   : > { %4260 = vmatprep.subr.bf16.mxu0 %v5229_v2  ;;  %v5234_v7 = vld [vmem:[%s6115_s9 + $0x20] sm:$0xff]   ;;  %v5236_v9 = vld [vmem:[%s6115_s9 + $0x18] sm:$0xff]   ;;  %v5237_v10 = vld [vmem:[%s6115_s9 + $0x50] sm:$0xff]  }
  0xf5   : > { %v6164_v11 = vld [vmem:[%s6122_s12 + $0x4] ss:$8 sps:$4 sm:$0xff]   ;;  %v5238_v12 = vld [vmem:[%s6115_s9 + $0x10] sm:$0xff]   ;;  %v5245_v17 = vld [vmem:[%s6122_s12] ss:$8 sps:$4 sm:$0xff]  }
  0xf6   : > { %1075 = vmatprep.mubr.bf16.mxu0 %v6164_v11  ;;  %v5239_v13 = vld [vmem:[%s6115_s9 + $0x48] sm:$0xff]   ;;  %v5241_v15 = vld [vmem:[%s6115_s9 + $0x40] sm:$0xff]   ;;  %v5246_v18 = vld [vmem:[%s6122_s12 + $0x14] ss:$8 sps:$4 sm:$0xff]  }
  0xf7   : > { %4261 = vmatpush3.bf16.msra.mxu0 %v5230_v3  ;;  %v5240_v14 = vld [vmem:[%s6115_s9 + $0x8] sm:$0xff]   ;;  %v5242_v16 = vld [vmem:[%s6115_s9] sm:$0xff]   ;;  %v5248_v19 = vld [vmem:[%s6122_s12 + $0x10] ss:$8 sps:$4 sm:$0xff]  }
  0xf8   : > { %4262 = vmatprep.subr.bf16.mxu0 %v5231_v4  ;;  %v5249_v20 = vld [vmem:[%s6122_s12 + $0x24] ss:$8 sps:$4 sm:$0xff]   ;;  %v5291_v21 = vld [vmem:[#allocation9 + $0x38] sm:$0xff]   ;;  %v5292_v22 = vld [vmem:[#allocation9 + $0x30] sm:$0xff]  }
  0xf9   : > { %4778 = vmatprep.subr.bf16.mxu1 %v5291_v21  ;;  %v5293_v23 = vld [vmem:[#allocation9 + $0x28] sm:$0xff]   ;;  %v5294_v25 = vld [vmem:[#allocation9 + $0x20] sm:$0xff]   ;;  %v5252_v26 = vld [vmem:[%s6122_s12 + $0x34] ss:$8 sps:$4 sm:$0xff]  }
  0xfa   : > { %4779 = vmatpush3.bf16.msra.mxu1 %v5291_v21  ;;  %v5251_v24 = vld [vmem:[%s6122_s12 + $0x20] ss:$8 sps:$4 sm:$0xff]   ;;  %v5254_v27 = vld [vmem:[%s6122_s12 + $0x30] ss:$8 sps:$4 sm:$0xff]   ;;  %v5255_v28 = vld [vmem:[%s6122_s12 + $0x44] ss:$8 sps:$4 sm:$0xff]  }
  0xfb   : > { %4263 = vmatpush3.bf16.msra.mxu0 %v5232_v5  ;;  %4780 = vmatprep.subr.bf16.mxu1 %v5292_v22  ;;  %v5257_v29 = vld [vmem:[%s6122_s12 + $0x40] ss:$8 sps:$4 sm:$0xff]   ;;  %v5258_v30 = vld [vmem:[%s6122_s12 + $0x54] ss:$8 sps:$4 sm:$0xff]   ;;  %v5260_v31 = vld [vmem:[%s6122_s12 + $0x50] ss:$8 sps:$4 sm:$0xff]  }
  0xfc   : > { %4264 = vmatprep.subr.bf16.mxu0 %v5233_v6  ;;  %v5261_v32 = vld [vmem:[%s6122_s12 + $0x64] ss:$8 sps:$4 sm:$0xff]   ;;  %v5263_v33 = vld [vmem:[%s6122_s12 + $0x60] ss:$8 sps:$4 sm:$0xff]   ;;  %v5264_v34 = vld [vmem:[%s6122_s12 + $0x74] ss:$8 sps:$4 sm:$0xff]  }
  0xfd   : > { %v5266_v35 = vld [vmem:[%s6122_s12 + $0x70] ss:$8 sps:$4 sm:$0xff]   ;;  %v5267_v36 = vld [vmem:[%s6122_s12 + $0x84] ss:$8 sps:$4 sm:$0xff]   ;;  %v5269_v37 = vld [vmem:[%s6122_s12 + $0x80] ss:$8 sps:$4 sm:$0xff]  }
  0xfe   : > { %4781 = vmatpush3.bf16.msra.mxu1 %v5292_v22  ;;  %v5270_v38 = vld [vmem:[%s6122_s12 + $0x94] ss:$8 sps:$4 sm:$0xff]   ;;  %v5272_v40 = vld [vmem:[%s6122_s12 + $0x90] ss:$8 sps:$4 sm:$0xff]   ;;  %v5273_v41 = vld [vmem:[%s6122_s12 + $0xa4] ss:$8 sps:$4 sm:$0xff]  }
  0xff   : > { %4265 = vmatpush3.bf16.msra.mxu0 %v5234_v7  ;;  %4782 = vmatprep.subr.bf16.mxu1 %v5293_v23  ;;  %v5295_v39 = vld [vmem:[#allocation9 + $0x18] sm:$0xff]   ;;  %v5296_v42 = vld [vmem:[#allocation9 + $0x10] sm:$0xff]   ;;  %v5297_v43 = vld [vmem:[#allocation9 + $0x8] sm:$0xff]  }
 0x100   : > { %4266 = vmatprep.subr.bf16.mxu0 %v5235_v8  ;;  %v5275_v44 = vld [vmem:[%s6122_s12 + $0xa0] ss:$8 sps:$4 sm:$0xff]   ;;  %v5276_v45 = vld [vmem:[%s6122_s12 + $0xb4] ss:$8 sps:$4 sm:$0xff]   ;;  %v5278_v47 = vld [vmem:[%s6122_s12 + $0xb0] ss:$8 sps:$4 sm:$0xff]  }
 0x101   : > { %v5298_v46 = vld [vmem:[#allocation9] sm:$0xff]   ;;  %v5282_v50 = vld [vmem:[%s6122_s12 + $0xd4] ss:$8 sps:$4 sm:$0xff]   ;;  %v5284_v51 = vld [vmem:[%s6122_s12 + $0xd0] ss:$8 sps:$4 sm:$0xff]  }
 0x102   : > { %4783 = vmatpush3.bf16.msra.mxu1 %v5293_v23  ;;  %v5279_v48 = vld [vmem:[%s6122_s12 + $0xc4] ss:$8 sps:$4 sm:$0xff]   ;;  %v5281_v49 = vld [vmem:[%s6122_s12 + $0xc0] ss:$8 sps:$4 sm:$0xff]   ;;  %v5288_v54 = vld [vmem:[%s6122_s12 + $0xf4] ss:$8 sps:$4 sm:$0xff]  }
 0x103   : > { %4267 = vmatpush3.bf16.msra.mxu0 %v5236_v9  ;;  %4784 = vmatprep.subr.bf16.mxu1 %v5294_v25  ;;  %v5285_v52 = vld [vmem:[%s6122_s12 + $0xe4] ss:$8 sps:$4 sm:$0xff]   ;;  %v5287_v53 = vld [vmem:[%s6122_s12 + $0xe0] ss:$8 sps:$4 sm:$0xff]   ;;  %v5290_v55 = vld [vmem:[%s6122_s12 + $0xf0] ss:$8 sps:$4 sm:$0xff]  }
 0x104   : > { %4268 = vmatprep.subr.bf16.mxu0 %v5237_v10  ;;  %v5299_v58 = vld [vmem:[#allocation10 + $0x38] sm:$0xff]   ;;  %v5300_v8 = vld [vmem:[#allocation10 + $0x30] sm:$0xff]  }
 0x106   : > { %4785 = vmatpush3.bf16.msra.mxu1 %v5294_v25 }
 0x107   : > { %4269 = vmatpush3.bf16.msra.mxu0 %v5238_v12  ;;  %4786 = vmatprep.subr.bf16.mxu1 %v5295_v39 }
 0x108   : > { %4270 = vmatprep.subr.bf16.mxu0 %v5239_v13 }
 0x10a   : > { %4787 = vmatpush3.bf16.msra.mxu1 %v5295_v39 }
 0x10b   : > { %4271 = vmatpush3.bf16.msra.mxu0 %v5240_v14  ;;  %4788 = vmatprep.subr.bf16.mxu1 %v5296_v42 }
 0x10c   : > { %4272 = vmatprep.subr.bf16.mxu0 %v5241_v15 }
 0x10e   : > { %4789 = vmatpush3.bf16.msra.mxu1 %v5296_v42 }
 0x10f   : > { %4273 = vmatpush3.bf16.msra.mxu0 %v5242_v16  ;;  %4790 = vmatprep.subr.bf16.mxu1 %v5297_v43 }
 0x112   : > { %1076 = vmatmul.mubr.bf16.vlgmr.msra.gmra.mxu0 %v5245_v17  ;;  %4791 = vmatpush3.bf16.msra.mxu1 %v5297_v43  ;;  %v5302_v17 = vld [vmem:[#allocation10 + $0x20] sm:$0xff]  }
 0x113   : > { %1083 = vmatprep.mubr.bf16.mxu0 %v5246_v18  ;;  %4792 = vmatprep.subr.bf16.mxu1 %v5298_v46 }
 0x116   : > { %4793 = vmatpush3.bf16.msra.mxu1 %v5298_v46 }
 0x117   : > { %4826 = vmatprep.subr.bf16.mxu1 %v5299_v58 }
 0x11a   : > { %1084 = vmatmul.mubr.bf16.gmra.mxu0 %v5248_v19 }
 0x11b   : > { %1091 = vmatprep.mubr.bf16.mxu0 %v5249_v20  ;;  %v5303_v20 = vld [vmem:[#allocation10 + $0x18] sm:$0xff]  }
 0x122   : > { %1092 = vmatmul.mubr.bf16.gmra.mxu0 %v5251_v24 }
 0x123   : > { %1099 = vmatprep.mubr.bf16.mxu0 %v5252_v26 }
 0x12a   : > { %1100 = vmatmul.mubr.bf16.gmra.mxu0 %v5254_v27 }
 0x12b   : > { %1107 = vmatprep.mubr.bf16.mxu0 %v5255_v28 }
 0x132   : > { %1108 = vmatmul.mubr.bf16.gmra.mxu0 %v5257_v29 }
 0x133   : > { %1115 = vmatprep.mubr.bf16.mxu0 %v5258_v30 }
 0x13a   : > { %1116 = vmatmul.mubr.bf16.gmra.mxu0 %v5260_v31 }
 0x13b   : > { %1123 = vmatprep.mubr.bf16.mxu0 %v5261_v32 }
 0x142   : > { %1124 = vmatmul.mubr.bf16.gmra.mxu0 %v5263_v33 }
 0x143   : > { %1131 = vmatprep.mubr.bf16.mxu0 %v5264_v34 }
 0x14a   : > { %1132 = vmatmul.mubr.bf16.gmra.mxu0 %v5266_v35 }
 0x14b   : > { %1139 = vmatprep.mubr.bf16.mxu0 %v5267_v36 }
 0x152   : > { %1140 = vmatmul.mubr.bf16.gmra.mxu0 %v5269_v37 }
 0x153   : > { %1147 = vmatprep.mubr.bf16.mxu0 %v5270_v38 }
 0x15a   : > { %1148 = vmatmul.mubr.bf16.gmra.mxu0 %v5272_v40 }
 0x15b   : > { %1155 = vmatprep.mubr.bf16.mxu0 %v5273_v41 }
 0x162   : > { %1156 = vmatmul.mubr.bf16.gmra.mxu0 %v5275_v44 }
 0x163   : > { %1163 = vmatprep.mubr.bf16.mxu0 %v5276_v45 }
 0x16a   : > { %1164 = vmatmul.mubr.bf16.gmra.mxu0 %v5278_v47 }
 0x16b   : > { %1171 = vmatprep.mubr.bf16.mxu0 %v5279_v48 }
 0x172   : > { %1172 = vmatmul.mubr.bf16.gmra.mxu0 %v5281_v49 }
 0x173   : > { %1179 = vmatprep.mubr.bf16.mxu0 %v5282_v50 }
 0x17a   : > { %1180 = vmatmul.mubr.bf16.gmra.mxu0 %v5284_v51 }
 0x17b   : > { %1187 = vmatprep.mubr.bf16.mxu0 %v5285_v52 }
 0x182   : > { %1188 = vmatmul.mubr.bf16.gmra.mxu0 %v5287_v53 }
 0x183   : > { %1195 = vmatprep.mubr.bf16.mxu0 %v5288_v54 }
 0x18a   : > { %1196 = vmatmul.mubr.bf16.gmra.mxu0 %v5290_v55 }
 0x18b   : > { %1890 = vmatprep.mubr.bf16.mxu0 %v6164_v11  ;;  %v5301_v11 = vld [vmem:[#allocation10 + $0x28] sm:$0xff]  }
 0x1d2   : > { %v4274_v56 = vpop.f32.mrf.mxu0 }
 0x1d4   : > { %v4275_v57 = vpop.f32.mrf.mxu0 }
 0x1d5   : > { %v4276_v61 = vadd.f32 %v4275_v57, %v4274_v56 }
 0x1d6   : > { %v4277_v59 = vpop.f32.mrf.mxu0 }
 0x1d8   : > { %v4278_v60 = vpop.f32.mrf.mxu0 }
 0x1d9   : > { %v4279_v62 = vadd.f32 %v4278_v60, %v4277_v59 }
 0x1da   : > { %v4280_v63 = vpop.f32.mrf.mxu0 }
 0x1db   : > { %v1204_v0 = vpack.c.bf16 %v4279_v62, %v4276_v61 }
 0x1dc   : > { %v4281_v1 = vpop.f32.mrf.mxu0 }
 0x1dd   : > { %4794 = vmatprep.mubr.bf16.mxu1 %v1204_v0  ;;  %v4282_v4 = vadd.f32 %v4281_v1, %v4280_v63 }
 0x1de   : > { %v4283_v2 = vpop.f32.mrf.mxu0 }
 0x1e0   : > { %v4284_v3 = vpop.f32.mrf.mxu0 }
 0x1e1   : > { %v4285_v5 = vadd.f32 %v4284_v3, %v4283_v2 }
 0x1e2   : > { %v4286_v6 = vpop.f32.mrf.mxu0 }
 0x1e3   : > { %v1205_v7 = vpack.c.bf16 %v4285_v5, %v4282_v4  ;;  %v5304_v5 = vld [vmem:[#allocation10 + $0x10] sm:$0xff]  }
 0x1e4   : > { %v4287_v9 = vpop.f32.mrf.mxu0 }
 0x1e5   : > { %4795 = vmatmul.mubr.bf16.vlgmr.msra.gmra.mxu1 %v1205_v7  ;;  %v4288_v13 = vadd.f32 %v4287_v9, %v4286_v6 }
 0x1e6   : > { %v4289_v10 = vpop.f32.mrf.mxu0  ;;  %4827 = vmatpush3.bf16.msra.mxu1 %v5299_v58 }
 0x1e7   : > { %4828 = vmatprep.subr.bf16.mxu1 %v5300_v8 }
 0x1e8   : > { %v4290_v12 = vpop.f32.mrf.mxu0 }
 0x1e9   : > { %v4291_v14 = vadd.f32 %v4290_v12, %v4289_v10  ;;  %v5305_v10 = vld [vmem:[#allocation10 + $0x8] sm:$0xff]  }
 0x1ea   : > { %v4292_v15 = vpop.f32.mrf.mxu0  ;;  %4829 = vmatpush3.bf16.msra.mxu1 %v5300_v8 }
 0x1eb   : > { %v1206_v16 = vpack.c.bf16 %v4291_v14, %v4288_v13  ;;  %4830 = vmatprep.subr.bf16.mxu1 %v5301_v11  ;;  %v5306_v14 = vld [vmem:[#allocation10] sm:$0xff]  }
 0x1ec   : > { %v4293_v18 = vpop.f32.mrf.mxu0 }
 0x1ed   : > { %4798 = vmatprep.mubr.bf16.mxu1 %v1206_v16  ;;  %v4294_v22 = vadd.f32 %v4293_v18, %v4292_v15 }
 0x1ee   : > { %v4295_v19 = vpop.f32.mrf.mxu0  ;;  %4831 = vmatpush3.bf16.msra.mxu1 %v5301_v11 }
 0x1ef   : > { %4832 = vmatprep.subr.bf16.mxu1 %v5302_v17 }
 0x1f0   : > { %v4296_v21 = vpop.f32.mrf.mxu0 }
 0x1f1   : > { %v4297_v23 = vadd.f32 %v4296_v21, %v4295_v19 }
 0x1f2   : > { %v4298_v24 = vpop.f32.mrf.mxu0  ;;  %4833 = vmatpush3.bf16.msra.mxu1 %v5302_v17 }
 0x1f3   : > { %v1207_v25 = vpack.c.bf16 %v4297_v23, %v4294_v22  ;;  %4834 = vmatprep.subr.bf16.mxu1 %v5303_v20 }
 0x1f4   : > { %v4299_v26 = vpop.f32.mrf.mxu0 }
 0x1f5   : > { %4799 = vmatmul.mubr.bf16.gmra.mxu1 %v1207_v25  ;;  %v4300_v29 = vadd.f32 %v4299_v26, %v4298_v24 }
 0x1f6   : > { %v4301_v27 = vpop.f32.mrf.mxu0  ;;  %4835 = vmatpush3.bf16.msra.mxu1 %v5303_v20 }
 0x1f7   : > { %4836 = vmatprep.subr.bf16.mxu1 %v5304_v5 }
 0x1f8   : > { %v4302_v28 = vpop.f32.mrf.mxu0 }
 0x1f9   : > { %v4303_v30 = vadd.f32 %v4302_v28, %v4301_v27 }
 0x1fa   : > { %v4304_v31 = vpop.f32.mrf.mxu0  ;;  %4837 = vmatpush3.bf16.msra.mxu1 %v5304_v5 }
 0x1fb   : > { %v1208_v32 = vpack.c.bf16 %v4303_v30, %v4300_v29  ;;  %4838 = vmatprep.subr.bf16.mxu1 %v5305_v10 }
 0x1fc   : > { %v4305_v33 = vpop.f32.mrf.mxu0 }
 0x1fd   : > { %4802 = vmatprep.mubr.bf16.mxu1 %v1208_v32  ;;  %v4306_v36 = vadd.f32 %v4305_v33, %v4304_v31 }
 0x1fe   : > { %v4307_v34 = vpop.f32.mrf.mxu0  ;;  %4839 = vmatpush3.bf16.msra.mxu1 %v5305_v10 }
 0x1ff   : > { %4840 = vmatprep.subr.bf16.mxu1 %v5306_v14 }
 0x200   : > { %v4308_v35 = vpop.f32.mrf.mxu0 }
 0x201   : > { %v4309_v37 = vadd.f32 %v4308_v35, %v4307_v34 }
 0x202   : > { %v4310_v38 = vpop.f32.mrf.mxu0  ;;  %4841 = vmatpush3.bf16.msra.mxu1 %v5306_v14 }
 0x203   : > { %v1209_v39 = vpack.c.bf16 %v4309_v37, %v4306_v36 }
 0x204   : > { %v4311_v40 = vpop.f32.mrf.mxu0 }
 0x205   : > { %4803 = vmatmul.mubr.bf16.gmra.mxu1 %v1209_v39  ;;  %v4312_v43 = vadd.f32 %v4311_v40, %v4310_v38 }
 0x206   : > { %v4313_v41 = vpop.f32.mrf.mxu0 }
 0x208   : > { %v4314_v42 = vpop.f32.mrf.mxu0 }
 0x209   : > { %v4315_v44 = vadd.f32 %v4314_v42, %v4313_v41 }
 0x20a   : > { %v4316_v45 = vpop.f32.mrf.mxu0 }
 0x20b   : > { %v1210_v46 = vpack.c.bf16 %v4315_v44, %v4312_v43 }
 0x20c   : > { %v4317_v47 = vpop.f32.mrf.mxu0 }
 0x20d   : > { %4806 = vmatprep.mubr.bf16.mxu1 %v1210_v46  ;;  %v4318_v50 = vadd.f32 %v4317_v47, %v4316_v45 }
 0x20e   : > { %v4319_v48 = vpop.f32.mrf.mxu0 }
 0x210   : > { %v4320_v49 = vpop.f32.mrf.mxu0 }
 0x211   : > { %v4321_v51 = vadd.f32 %v4320_v49, %v4319_v48 }
 0x212   : > { %v4322_v52 = vpop.f32.mrf.mxu0 }
 0x213   : > { %v1211_v53 = vpack.c.bf16 %v4321_v51, %v4318_v50  ;;  %v6207_v50 = vld [vmem:[%s7229_s5] ss:$0 sm:$0xff] }
 0x214   : > { %v4323_v54 = vpop.f32.mrf.mxu0 }
 0x215   : > { %4807 = vmatmul.mubr.bf16.gmra.mxu1 %v1211_v53  ;;  %v4324_v57 = vadd.f32 %v4323_v54, %v4322_v52 }
 0x216   : > { %v4325_v55 = vpop.f32.mrf.mxu0 }
 0x218   : > { %v4326_v56 = vpop.f32.mrf.mxu0 }
 0x219   : > { %v4327_v58 = vadd.f32 %v4326_v56, %v4325_v55 }
 0x21a   : > { %v4328_v59 = vpop.f32.mrf.mxu0 }
 0x21b   : > { %v1212_v60 = vpack.c.bf16 %v4327_v58, %v4324_v57 }
 0x21c   : > { %v4329_v61 = vpop.f32.mrf.mxu0 }
 0x21d   : > { %4810 = vmatprep.mubr.bf16.mxu1 %v1212_v60  ;;  %v4330_v0 = vadd.f32 %v4329_v61, %v4328_v59 }
 0x21e   : > { %v4331_v62 = vpop.f32.mrf.mxu0 }
 0x220   : > { %v4332_v63 = vpop.f32.mrf.mxu0 }
 0x221   : > { %v4333_v1 = vadd.f32 %v4332_v63, %v4331_v62 }
 0x222   : > { %v4334_v2 = vpop.f32.mrf.mxu0 }
 0x223   : > { %v1213_v3 = vpack.c.bf16 %v4333_v1, %v4330_v0 }
 0x224   : > { %v4335_v4 = vpop.f32.mrf.mxu0 }
 0x225   : > { %4811 = vmatmul.mubr.bf16.gmra.mxu1 %v1213_v3  ;;  %v4336_v8 = vadd.f32 %v4335_v4, %v4334_v2 }
 0x226   : > { %v4337_v6 = vpop.f32.mrf.mxu0 }
 0x228   : > { %v4338_v7 = vpop.f32.mrf.mxu0 }
 0x229   : > { %v4339_v9 = vadd.f32 %v4338_v7, %v4337_v6 }
 0x22a   : > { %v4340_v11 = vpop.f32.mrf.mxu0 }
 0x22b   : > { %v1214_v12 = vpack.c.bf16 %v4339_v9, %v4336_v8 }
 0x22c   : > { %v4341_v13 = vpop.f32.mrf.mxu0 }
 0x22d   : > { %4814 = vmatprep.mubr.bf16.mxu1 %v1214_v12  ;;  %v4342_v17 = vadd.f32 %v4341_v13, %v4340_v11 }
 0x22e   : > { %v4343_v15 = vpop.f32.mrf.mxu0 }
 0x230   : > { %v4344_v16 = vpop.f32.mrf.mxu0 }
 0x231   : > { %v4345_v18 = vadd.f32 %v4344_v16, %v4343_v15 }
 0x232   : > { %v4346_v19 = vpop.f32.mrf.mxu0 }
 0x233   : > { %v1215_v20 = vpack.c.bf16 %v4345_v18, %v4342_v17 }
 0x234   : > { %v4347_v21 = vpop.f32.mrf.mxu0 }
 0x235   : > { %4815 = vmatmul.mubr.bf16.gmra.mxu1 %v1215_v20  ;;  %v4348_v24 = vadd.f32 %v4347_v21, %v4346_v19 }
 0x236   : > { %v4349_v22 = vpop.f32.mrf.mxu0 }
 0x238   : > { %v4350_v23 = vpop.f32.mrf.mxu0 }
 0x239   : > { %v4351_v25 = vadd.f32 %v4350_v23, %v4349_v22 }
 0x23a   : > { %v4352_v26 = vpop.f32.mrf.mxu0 }
 0x23b   : > { %v1216_v27 = vpack.c.bf16 %v4351_v25, %v4348_v24 }
 0x23c   : > { %v4353_v28 = vpop.f32.mrf.mxu0 }
 0x23d   : > { %4818 = vmatprep.mubr.bf16.mxu1 %v1216_v27  ;;  %v4354_v31 = vadd.f32 %v4353_v28, %v4352_v26 }
 0x23e   : > { %v4355_v29 = vpop.f32.mrf.mxu0 }
 0x240   : > { %v4356_v30 = vpop.f32.mrf.mxu0 }
 0x241   : > { %v4357_v32 = vadd.f32 %v4356_v30, %v4355_v29 }
 0x242   : > { %v4358_v33 = vpop.f32.mrf.mxu0 }
 0x243   : > { %v1217_v34 = vpack.c.bf16 %v4357_v32, %v4354_v31 }
 0x244   : > { %v4359_v35 = vpop.f32.mrf.mxu0 }
 0x245   : > { %4819 = vmatmul.mubr.bf16.gmra.mxu1 %v1217_v34  ;;  %v4360_v38 = vadd.f32 %v4359_v35, %v4358_v33 }
 0x246   : > { %v4361_v36 = vpop.f32.mrf.mxu0 }
 0x248   : > { %v4362_v37 = vpop.f32.mrf.mxu0 }
 0x249   : > { %v4363_v39 = vadd.f32 %v4362_v37, %v4361_v36 }
 0x24a   : > { %v4364_v40 = vpop.f32.mrf.mxu0 }
 0x24b   : > { %v1218_v41 = vpack.c.bf16 %v4363_v39, %v4360_v38 }
 0x24c   : > { %v4365_v42 = vpop.f32.mrf.mxu0 }
 0x24d   : > { %4822 = vmatprep.mubr.bf16.mxu1 %v1218_v41  ;;  %v4366_v45 = vadd.f32 %v4365_v42, %v4364_v40 }
 0x24e   : > { %v4367_v43 = vpop.f32.mrf.mxu0 }
 0x250   : > { %v4368_v44 = vpop.f32.mrf.mxu0 }
 0x251   : > { %v4369_v46 = vadd.f32 %v4368_v44, %v4367_v43 }
 0x253   : > { %v1219_v47 = vpack.c.bf16 %v4369_v46, %v4366_v45 }
 0x255   : > { %4823 = vmatmul.mubr.bf16.gmra.mxu1 %v1219_v47 }
 0x2a5   : > { %v4796_v48 = vpop.f32.mrf.mxu1 }
 0x2a6   : > { %v1334_v54 = vadd.f32 %v4796_v48, %v6207_v50 }
 0x2a7   : > { %v1325_v49 = vpop.f32.mrf.mxu1 }
 0x2a8   : > { %v1326_v52 = vadd.f32 %v6207_v50, %v1325_v49  ;;  %v1454_v60 = vmax.f32 %v1334_v54, 0.0 }
 0x2a9   : > { %v4797_v51 = vpop.f32.mrf.mxu1 }
 0x2aa   : > { %v1337_v53 = vadd.f32 %v4797_v51, %v6207_v50  ;;  %v1452_v58 = vmax.f32 %v1326_v52, 0.0 }
 0x2ab   : > { %v1328_v55 = vpop.f32.mrf.mxu1 }
 0x2ac   : > { %v1329_v56 = vadd.f32 %v6207_v50, %v1328_v55  ;;  %v1455_v57 = vmax.f32 %v1337_v53, 0.0 }
 0x2ae   : > { %v1453_v59 = vmax.f32 %v1329_v56, 0.0  ;;  %v1485_v62 = vpack.c.bf16 %v1455_v57, %v1454_v60 }
 0x2b0   : > { %v1484_v61 = vpack.c.bf16 %v1453_v59, %v1452_v58 }
 0x2b2   : > { %4842 = vmatprep.mubr.bf16.mxu1 %v1484_v61 }
 0x2b3   : > { %4843 = vmatmul.mubr.bf16.vlgmr.msra.gmra.mxu1 %v1485_v62 }
 0x2b5   : > { %v4800_v63 = vpop.f32.mrf.mxu1 }
 0x2b6   : > { %v1350_v4 = vadd.f32 %v4800_v63, %v6207_v50 }
 0x2b7   : > { %v1341_v0 = vpop.f32.mrf.mxu1 }
 0x2b8   : > { %v1342_v2 = vadd.f32 %v6207_v50, %v1341_v0  ;;  %v1458_v10 = vmax.f32 %v1350_v4, 0.0 }
 0x2b9   : > { %v4801_v1 = vpop.f32.mrf.mxu1 }
 0x2ba   : > { %v1353_v3 = vadd.f32 %v4801_v1, %v6207_v50  ;;  %v1456_v8 = vmax.f32 %v1342_v2, 0.0 }
 0x2bb   : > { %v1344_v5 = vpop.f32.mrf.mxu1 }
 0x2bc   : > { %v1345_v6 = vadd.f32 %v6207_v50, %v1344_v5  ;;  %v1459_v7 = vmax.f32 %v1353_v3, 0.0 }
 0x2be   : > { %v1457_v9 = vmax.f32 %v1345_v6, 0.0  ;;  %v1487_v12 = vpack.c.bf16 %v1459_v7, %v1458_v10 }
 0x2c0   : > { %v1486_v11 = vpack.c.bf16 %v1457_v9, %v1456_v8 }
 0x2c2   : > { %4846 = vmatprep.mubr.bf16.mxu1 %v1486_v11 }
 0x2c3   : > { %4847 = vmatmul.mubr.bf16.gmra.mxu1 %v1487_v12 }
 0x2c5   : > { %v4804_v13 = vpop.f32.mrf.mxu1 }
 0x2c6   : > { %v1366_v18 = vadd.f32 %v4804_v13, %v6207_v50 }
 0x2c7   : > { %v1357_v14 = vpop.f32.mrf.mxu1 }
 0x2c8   : > { %v1358_v16 = vadd.f32 %v6207_v50, %v1357_v14  ;;  %v1462_v24 = vmax.f32 %v1366_v18, 0.0 }
 0x2c9   : > { %v4805_v15 = vpop.f32.mrf.mxu1 }
 0x2ca   : > { %v1369_v17 = vadd.f32 %v4805_v15, %v6207_v50  ;;  %v1460_v22 = vmax.f32 %v1358_v16, 0.0 }
 0x2cb   : > { %v1360_v19 = vpop.f32.mrf.mxu1 }
 0x2cc   : > { %v1361_v20 = vadd.f32 %v6207_v50, %v1360_v19  ;;  %v1463_v21 = vmax.f32 %v1369_v17, 0.0 }
 0x2ce   : > { %v1461_v23 = vmax.f32 %v1361_v20, 0.0  ;;  %v1489_v26 = vpack.c.bf16 %v1463_v21, %v1462_v24 }
 0x2d0   : > { %v1488_v25 = vpack.c.bf16 %v1461_v23, %v1460_v22 }
 0x2d2   : > { %4850 = vmatprep.mubr.bf16.mxu1 %v1488_v25 }
 0x2d3   : > { %4851 = vmatmul.mubr.bf16.gmra.mxu1 %v1489_v26 }
 0x2d5   : > { %v4808_v27 = vpop.f32.mrf.mxu1 }
 0x2d6   : > { %v1382_v32 = vadd.f32 %v4808_v27, %v6207_v50 }
 0x2d7   : > { %v1373_v28 = vpop.f32.mrf.mxu1 }
 0x2d8   : > { %v1374_v30 = vadd.f32 %v6207_v50, %v1373_v28  ;;  %v1466_v38 = vmax.f32 %v1382_v32, 0.0 }
 0x2d9   : > { %v4809_v29 = vpop.f32.mrf.mxu1 }
 0x2da   : > { %v1385_v31 = vadd.f32 %v4809_v29, %v6207_v50  ;;  %v1464_v36 = vmax.f32 %v1374_v30, 0.0 }
 0x2db   : > { %v1376_v33 = vpop.f32.mrf.mxu1 }
 0x2dc   : > { %v1377_v34 = vadd.f32 %v6207_v50, %v1376_v33  ;;  %v1467_v35 = vmax.f32 %v1385_v31, 0.0 }
 0x2de   : > { %v1465_v37 = vmax.f32 %v1377_v34, 0.0  ;;  %v1491_v40 = vpack.c.bf16 %v1467_v35, %v1466_v38 }
 0x2e0   : > { %v1490_v39 = vpack.c.bf16 %v1465_v37, %v1464_v36 }
 0x2e2   : > { %4854 = vmatprep.mubr.bf16.mxu1 %v1490_v39 }
 0x2e3   : > { %4855 = vmatmul.mubr.bf16.gmra.mxu1 %v1491_v40 }
 0x2e5   : > { %v4812_v41 = vpop.f32.mrf.mxu1 }
 0x2e6   : > { %v1398_v46 = vadd.f32 %v4812_v41, %v6207_v50 }
 0x2e7   : > { %v1389_v42 = vpop.f32.mrf.mxu1 }
 0x2e8   : > { %v1390_v44 = vadd.f32 %v6207_v50, %v1389_v42  ;;  %v1470_v53 = vmax.f32 %v1398_v46, 0.0 }
 0x2e9   : > { %v4813_v43 = vpop.f32.mrf.mxu1 }
 0x2ea   : > { %v1401_v45 = vadd.f32 %v4813_v43, %v6207_v50  ;;  %v1468_v51 = vmax.f32 %v1390_v44, 0.0 }
 0x2eb   : > { %v1392_v47 = vpop.f32.mrf.mxu1 }
 0x2ec   : > { %v1393_v48 = vadd.f32 %v6207_v50, %v1392_v47  ;;  %v1471_v49 = vmax.f32 %v1401_v45, 0.0 }
 0x2ee   : > { %v1469_v52 = vmax.f32 %v1393_v48, 0.0  ;;  %v1493_v55 = vpack.c.bf16 %v1471_v49, %v1470_v53 }
 0x2f0   : > { %v1492_v54 = vpack.c.bf16 %v1469_v52, %v1468_v51 }
 0x2f2   : > { %4858 = vmatprep.mubr.bf16.mxu1 %v1492_v54 }
 0x2f3   : > { %4859 = vmatmul.mubr.bf16.gmra.mxu1 %v1493_v55 }
 0x2f5   : > { %v4816_v56 = vpop.f32.mrf.mxu1 }
 0x2f6   : > { %v1414_v61 = vadd.f32 %v4816_v56, %v6207_v50 }
 0x2f7   : > { %v1405_v57 = vpop.f32.mrf.mxu1 }
 0x2f8   : > { %v1406_v59 = vadd.f32 %v6207_v50, %v1405_v57  ;;  %v1474_v3 = vmax.f32 %v1414_v61, 0.0  ;;  %v6266_v61 = vld [vmem:[%s7231_s7] ss:$0 sm:$0xff] }
 0x2f9   : > { %v4817_v58 = vpop.f32.mrf.mxu1 }
 0x2fa   : > { %v1417_v60 = vadd.f32 %v4817_v58, %v6207_v50  ;;  %v1472_v1 = vmax.f32 %v1406_v59, 0.0 }
 0x2fb   : > { %v1408_v62 = vpop.f32.mrf.mxu1 }
 0x2fc   : > { %v1409_v63 = vadd.f32 %v6207_v50, %v1408_v62  ;;  %v1475_v0 = vmax.f32 %v1417_v60, 0.0 }
 0x2fe   : > { %v1473_v2 = vmax.f32 %v1409_v63, 0.0  ;;  %v1495_v5 = vpack.c.bf16 %v1475_v0, %v1474_v3 }
 0x300   : > { %v1494_v4 = vpack.c.bf16 %v1473_v2, %v1472_v1 }
 0x302   : > { %4862 = vmatprep.mubr.bf16.mxu1 %v1494_v4 }
 0x303   : > { %4863 = vmatmul.mubr.bf16.gmra.mxu1 %v1495_v5 }
 0x305   : > { %v4820_v6 = vpop.f32.mrf.mxu1 }
 0x306   : > { %v1430_v11 = vadd.f32 %v4820_v6, %v6207_v50 }
 0x307   : > { %v1421_v7 = vpop.f32.mrf.mxu1 }
 0x308   : > { %v1422_v9 = vadd.f32 %v6207_v50, %v1421_v7  ;;  %v1478_v17 = vmax.f32 %v1430_v11, 0.0 }
 0x309   : > { %v4821_v8 = vpop.f32.mrf.mxu1 }
 0x30a   : > { %v1433_v10 = vadd.f32 %v4821_v8, %v6207_v50  ;;  %v1476_v15 = vmax.f32 %v1422_v9, 0.0 }
 0x30b   : > { %v1424_v12 = vpop.f32.mrf.mxu1 }
 0x30c   : > { %v1425_v13 = vadd.f32 %v6207_v50, %v1424_v12  ;;  %v1479_v14 = vmax.f32 %v1433_v10, 0.0 }
 0x30e   : > { %v1477_v16 = vmax.f32 %v1425_v13, 0.0  ;;  %v1497_v19 = vpack.c.bf16 %v1479_v14, %v1478_v17 }
 0x310   : > { %v1496_v18 = vpack.c.bf16 %v1477_v16, %v1476_v15 }
 0x312   : > { %4866 = vmatprep.mubr.bf16.mxu1 %v1496_v18 }
 0x313   : > { %4867 = vmatmul.mubr.bf16.gmra.mxu1 %v1497_v19 }
 0x315   : > { %v4824_v20 = vpop.f32.mrf.mxu1 }
 0x316   : > { %v1446_v25 = vadd.f32 %v4824_v20, %v6207_v50 }
 0x317   : > { %v1437_v21 = vpop.f32.mrf.mxu1 }
 0x318   : > { %v1438_v23 = vadd.f32 %v6207_v50, %v1437_v21  ;;  %v1482_v31 = vmax.f32 %v1446_v25, 0.0 }
 0x319   : > { %v4825_v22 = vpop.f32.mrf.mxu1 }
 0x31a   : > { %v1449_v24 = vadd.f32 %v4825_v22, %v6207_v50  ;;  %v1480_v29 = vmax.f32 %v1438_v23, 0.0  ;;  %v6297_v22 = vld [vmem:[%s7232_s8] ss:$0 sm:$0xff] }
 0x31b   : > { %v1440_v26 = vpop.f32.mrf.mxu1 }
 0x31c   : > { %v1441_v27 = vadd.f32 %v6207_v50, %v1440_v26  ;;  %v1483_v28 = vmax.f32 %v1449_v24, 0.0 }
 0x31e   : > { %v1481_v30 = vmax.f32 %v1441_v27, 0.0  ;;  %v1499_v33 = vpack.c.bf16 %v1483_v28, %v1482_v31 }
 0x320   : > { %v1498_v32 = vpack.c.bf16 %v1481_v30, %v1480_v29 }
 0x322   : > { %4870 = vmatprep.mubr.bf16.mxu1 %v1498_v32 }
 0x323   : > { %4871 = vmatmul.mubr.bf16.gmra.mxu1 %v1499_v33 }
 0x373   : > { %v4844_v34 = vpop.f32.mrf.mxu1 }
 0x374   : > { %v6278_v5 = vadd.f32 %v4844_v34, %v6266_v61 }
 0x375   : > { %v6241_v35 = vpop.f32.mrf.mxu1 }
 0x377   : > { %v4845_v36 = vpop.f32.mrf.mxu1 }
 0x378   : > { %v6285_v8 = vadd.f32 %v4845_v36, %v6266_v61 }
 0x379   : > { %v6243_v37 = vpop.f32.mrf.mxu1 }
 0x383   : > { %v4848_v38 = vpop.f32.mrf.mxu1 }
 0x384   : > { %v6270_v0 = vadd.f32 %v4848_v38, %v6266_v61 }
 0x385   : > { %v6245_v39 = vpop.f32.mrf.mxu1 }
 0x386   : > { %v1738_v13 = vmax.f32 %v6270_v0, 0.0  ;;  %v1609_v0 = vadd.f32 %v6266_v61, %v6243_v37  ;;  %v1606_v37 = vadd.f32 %v6266_v61, %v6241_v35 }
 0x387   : > { %v4849_v40 = vpop.f32.mrf.mxu1 }
 0x388   : > { %v6273_v1 = vadd.f32 %v4849_v40, %v6266_v61 }
 0x389   : > { %v6247_v41 = vpop.f32.mrf.mxu1 }
 0x38a   : > { %v1739_v14 = vmax.f32 %v6273_v1, 0.0 }
 0x393   : > { %v4852_v50 = vpop.f32.mrf.mxu1 }
 0x394   : > { %v6281_v6 = vadd.f32 %v4852_v50, %v6266_v61 }
 0x395   : > { %v1637_v42 = vpop.f32.mrf.mxu1 }
 0x396   : > { %v1742_v23 = vmax.f32 %v6281_v6, 0.0  ;;  %v6301_v24 = vadd.f32 %v6266_v61, %v1637_v42 }
 0x397   : > { %v4853_v43 = vpop.f32.mrf.mxu1 }
 0x398   : > { %v1649_v2 = vadd.f32 %v4853_v43, %v6266_v61  ;;  %v6314_v43 = vld [vmem:[%s7319_s11] ss:$0 sm:$0xff] }
 0x399   : > { %v1640_v44 = vpop.f32.mrf.mxu1 }
 0x39a   : > { %v1743_v17 = vmax.f32 %v1649_v2, 0.0  ;;  %v1641_v27 = vadd.f32 %v6266_v61, %v1640_v44 }
 0x39c   : > { %v1782_v38 = vmul.f32 %v6297_v22, %v1743_v17 }
 0x3a3   : > { %v4856_v45 = vpop.f32.mrf.mxu1 }
 0x3a4   : > { %v1662_v3 = vadd.f32 %v4856_v45, %v6266_v61 }
 0x3a5   : > { %v1653_v46 = vpop.f32.mrf.mxu1 }
 0x3a6   : > { %v1746_v18 = vmax.f32 %v1662_v3, 0.0  ;;  %v1654_v19 = vadd.f32 %v6266_v61, %v1653_v46 }
 0x3a7   : > { %v4857_v47 = vpop.f32.mrf.mxu1 }
 0x3a8   : > { %v1665_v62 = vadd.f32 %v4857_v47, %v6266_v61  ;;  %v1785_v40 = vmul.f32 %v6297_v22, %v1746_v18  ;;  %v1744_v50 = vmax.f32 %v1654_v19, 0.0 }
 0x3a9   : > { %v1656_v48 = vpop.f32.mrf.mxu1 }
 0x3aa   : > { %v1747_v9 = vmax.f32 %v1665_v62, 0.0  ;;  %v1657_v10 = vadd.f32 %v6266_v61, %v1656_v48  ;;  %v1783_v6 = vmul.f32 %v6297_v22, %v1744_v50 }
 0x3ac   : > { %v1786_v28 = vmul.f32 %v6297_v22, %v1747_v9  ;;  %v1745_v29 = vmax.f32 %v1657_v10, 0.0 }
 0x3ae   : > { %v6320_v48 = vadd.f32 %v6314_v43, %v1786_v28  ;;  %v6365_v28 = vadd.f32 %v6314_v43, %v1783_v6 }
 0x3b3   : > { %v6249_v49 = vpop.f32.mrf.mxu1 }
 0x3b5   : > { %v6251_v51 = vpop.f32.mrf.mxu1 }
 0x3b7   : > { %v6253_v52 = vpop.f32.mrf.mxu1 }
 0x3b9   : > { %v6255_v53 = vpop.f32.mrf.mxu1 }
 0x3c3   : > { %v6257_v54 = vpop.f32.mrf.mxu1 }
 0x3c5   : > { %v6259_v55 = vpop.f32.mrf.mxu1 }
 0x3c7   : > { %v4865_v56 = vpop.f32.mrf.mxu1 }
 0x3c9   : > { %v6261_v57 = vpop.f32.mrf.mxu1 }
 0x3ca   : > { %v1689_v18 = vadd.f32 %v6266_v61, %v6261_v57 }
 0x3d3   : > { %v4868_v58 = vpop.f32.mrf.mxu1 }
 0x3d4   : > { %v1710_v20 = vadd.f32 %v4868_v58, %v6266_v61  ;;  %v1784_v58 = vmul.f32 %v6297_v22, %v1745_v29  ;;  %v1686_v29 = vadd.f32 %v6266_v61, %v6259_v55  ;;  %v1753_v55 = vmax.f32 %v1689_v18, 0.0 }
 0x3d5   : > { %v1701_v59 = vpop.f32.mrf.mxu1 }
 0x3d6   : > { %v1758_v42 = vmax.f32 %v1710_v20, 0.0  ;;  %v1702_v44 = vadd.f32 %v6266_v61, %v1701_v59  ;;  %v6350_v17 = vadd.f32 %v6314_v43, %v1784_v58  ;;  %v1673_v58 = vadd.f32 %v6266_v61, %v6255_v53 }
 0x3d7   : > { %v4869_v60 = vpop.f32.mrf.mxu1 }
 0x3d8   : > { %v1713_v11 = vadd.f32 %v4869_v60, %v6266_v61  ;;  %v1697_v60 = vadd.f32 %v4865_v56, %v6266_v61  ;;  %v1797_v56 = vmul.f32 %v6297_v22, %v1758_v42  ;;  %v1756_v9 = vmax.f32 %v1702_v44, 0.0 }
 0x3d9   : > { %v1704_v63 = vpop.f32.mrf.mxu1  ;;  %v1678_v42 = vadd.f32 %v6249_v49, %v6266_v61 }
 0x3da   : > { %v1759_v30 = vmax.f32 %v1713_v11, 0.0  ;;  %v1705_v32 = vadd.f32 %v6266_v61, %v1704_v63 }
 0x3db   : > { %v1750_v53 = vmax.f32 %v1678_v42, 0.0 }
 0x3dc   : > { %v1798_v62 = vmul.f32 %v6297_v22, %v1759_v30  ;;  %v1757_v63 = vmax.f32 %v1705_v32, 0.0  ;;  %v6370_v30 = vadd.f32 %v6314_v43, %v1797_v56  ;;  %v1848_v32 = vpack.c.bf16 %v6350_v17, %v6365_v28 }
 0x3dd   : > { %v1670_v56 = vadd.f32 %v6266_v61, %v6251_v51  ;;  %v1749_v51 = vmax.f32 %v1673_v58, 0.0 }
 0x3de   : > { %v6355_v19 = vadd.f32 %v6314_v43, %v1798_v62  ;;  %v1796_v20 = vmul.f32 %v6297_v22, %v1757_v63  ;;  %7325 = vst [vmem:[#allocation33_spill] sm:$0xff] %v6370_v30  ;;  %v1735_v63 = vmax.f32 %v6285_v8, 0.0 }
 0x3e0   : > { %7324 = vst [vmem:[#allocation32_spill] sm:$0xff] %v6355_v19 }
 0x3e3   : > { %v4872_v4 = vpop.f32.mrf.mxu1 }
 0x3e4   : > { %v1726_v7 = vadd.f32 %v4872_v4, %v6266_v61  ;;  %v6333_v4 = vadd.f32 %v6314_v43, %v1785_v40  ;;  %v1778_v40 = vmul.f32 %v6297_v22, %v1739_v14 }
 0x3e5   : > { %v1717_v12 = vpop.f32.mrf.mxu1 }
 0x3e6   : > { %v1762_v15 = vmax.f32 %v1726_v7, 0.0  ;;  %v1718_v16 = vadd.f32 %v6266_v61, %v1717_v12  ;;  %v1694_v7 = vadd.f32 %v6257_v54, %v6266_v61  ;;  %v1755_v54 = vmax.f32 %v1697_v60, 0.0 }
 0x3e7   : > { %v4873_v21 = vpop.f32.mrf.mxu1  ;;  %v1792_v60 = vmul.f32 %v6297_v22, %v1753_v55  ;;  %v6431_v8 = vadd.f32 %v6314_v43, %v1778_v40 }
 0x3e8   : > { %v1760_v25 = vmax.f32 %v1718_v16, 0.0  ;;  %v1729_v26 = vadd.f32 %v4873_v21, %v6266_v61  ;;  %v1801_v33 = vmul.f32 %v6297_v22, %v1762_v15  ;;  %v1741_v15 = vmax.f32 %v1641_v27, 0.0 }
 0x3e9   : > { %v1720_v31 = vpop.f32.mrf.mxu1  ;;  %v1849_v16 = vpack.c.bf16 %v6320_v48, %v6333_v4  ;;  %v1740_v27 = vmax.f32 %v6301_v24, 0.0  ;;  %v1754_v57 = vmax.f32 %v1694_v7, 0.0  ;;  %v1681_v24 = vadd.f32 %v6253_v52, %v6266_v61 }
 0x3ea   : > { %v1763_v34 = vmax.f32 %v1729_v26, 0.0  ;;  %v1721_v36 = vadd.f32 %v6266_v61, %v1720_v31  ;;  %v1799_v45 = vmul.f32 %v6297_v22, %v1760_v25  ;;  %v6326_v2 = vadd.f32 %v6314_v43, %v1801_v33 }
 0x3eb   : > { %v1625_v25 = vadd.f32 %v6266_v61, %v6247_v41  ;;  %v1781_v26 = vmul.f32 %v6297_v22, %v1742_v23  ;;  %v1795_v31 = vmul.f32 %v6297_v22, %v1756_v9  ;;  %v6374_v41 = vadd.f32 %v6314_v43, %v1782_v38 }
 0x3ec   : > { %v1802_v46 = vmul.f32 %v6297_v22, %v1763_v34  ;;  %v1761_v47 = vmax.f32 %v1721_v36, 0.0  ;;  %7320 = vst [vmem:[#allocation28_spill] sm:$0xff] %v6326_v2  ;;  %v6340_v10 = vadd.f32 %v6314_v43, %v1799_v45  ;;  %v1780_v23 = vmul.f32 %v6297_v22, %v1741_v15 }
 0x3ed   : > { %v1794_v33 = vmul.f32 %v6297_v22, %v1755_v54  ;;  %v1855_v34 = vpack.c.bf16 %v6355_v19, %v6370_v30  ;;  %v6385_v36 = vadd.f32 %v6314_v43, %v1796_v20  ;;  %v1622_v38 = vadd.f32 %v6266_v61, %v6245_v39 }
 0x3ee   : > { %v6329_v59 = vadd.f32 %v6314_v43, %v1802_v46  ;;  %v1800_v3 = vmul.f32 %v6297_v22, %v1761_v47  ;;  %7322 = vst [vmem:[#allocation30_spill] sm:$0xff] %v6340_v10  ;;  %v6393_v52 = vadd.f32 %v6314_v43, %v1781_v26  ;;  %v1779_v50 = vmul.f32 %v6297_v22, %v1740_v27 }
 0x3ef   : > { %7326 = vst [vmem:[#allocation34_spill] sm:$0xff] %v6385_v36  ;;  %v1793_v44 = vmul.f32 %v6297_v22, %v1754_v57  ;;  %v1752_v45 = vmax.f32 %v1686_v29, 0.0  ;;  %v6400_v46 = vadd.f32 %v6314_v43, %v1795_v31  ;;  %v1737_v39 = vmax.f32 %v1625_v25, 0.0 }
 0x3f0   : > { %7321 = vst [vmem:[#allocation29_spill] sm:$0xff] %v6329_v59  ;;  %v1857_v11 = vpack.c.bf16 %v6329_v59, %v6326_v2  ;;  %v6345_v12 = vadd.f32 %v6314_v43, %v1800_v3  ;;  %v1847_v1 = vpack.c.bf16 %v6374_v41, %v6393_v52  ;;  %v6405_v14 = vadd.f32 %v6314_v43, %v1780_v23 }
 0x3f1   : > { %7327 = vst [vmem:[#allocation35_spill] sm:$0xff] %v6400_v46  ;;  %v1751_v47 = vmax.f32 %v1681_v24, 0.0  ;;  %v6410_v49 = vadd.f32 %v6314_v43, %v1794_v33  ;;  %v1854_v62 = vpack.c.bf16 %v6385_v36, %v6400_v46  ;;  %v1777_v3 = vmul.f32 %v6297_v22, %v1738_v13 }
 0x3f2   : > { %7323 = vst [vmem:[#allocation31_spill] sm:$0xff] %v6345_v12  ;;  %4418 = vmatprep.subr.bf16.mxu0 %v1857_v11  ;;  %v1856_v21 = vpack.c.bf16 %v6345_v12, %v6340_v10  ;;  %v1736_v6 = vmax.f32 %v1622_v38, 0.0  ;;  %v6420_v7 = vadd.f32 %v6314_v43, %v1779_v50  ;;  %v6425_v9 = vadd.f32 %v6314_v43, %v1793_v44 }
 0x3f3   : > { %4419 = vmatpush3.bf16.msra.mxu0 %v1849_v16  ;;  %7328 = vst [vmem:[#allocation36_spill] sm:$0xff] %v6410_v49  ;;  %v1791_v11 = vmul.f32 %v6297_v22, %v1752_v45  ;;  %v1776_v13 = vmul.f32 %v6297_v22, %v1737_v39  ;;  %v1790_v16 = vmul.f32 %v6297_v22, %v1751_v47  ;;  %v1734_v20 = vmax.f32 %v6278_v5, 0.0 }
 0x3f4   : > { %4420 = vmatprep.subr.bf16.mxu0 %v1856_v21  ;;  %7329 = vst [vmem:[#allocation37_spill] sm:$0xff] %v6425_v9  ;;  %v1846_v15 = vpack.c.bf16 %v6405_v14, %v6420_v7  ;;  %v1853_v54 = vpack.c.bf16 %v6410_v49, %v6425_v9  ;;  %v6440_v18 = vadd.f32 %v6314_v43, %v1792_v60  ;;  %v1748_v27 = vmax.f32 %v1670_v56, 0.0  ;;  %v5361_v56 = vld [vmem:[%s6122_s12] ss:$8 sps:$4 sm:$0xff]  }
 0x3f5   : > { %v6446_v21 = vadd.f32 %v6314_v43, %v1777_v3  ;;  %v1775_v25 = vmul.f32 %v6297_v22, %v1736_v6  ;;  %v1789_v26 = vmul.f32 %v6297_v22, %v1750_v53  ;;  %v6451_v57 = vadd.f32 %v6314_v43, %v1791_v11  ;;  %v5308_v3 = vld [vmem:[#allocation9 + $0x70] sm:$0xff]   ;;  %v5309_v53 = vld [vmem:[#allocation9 + $0x68] sm:$0xff]  }
 0x3f6   : > { %7330 = vst [vmem:[#allocation38_spill] sm:$0xff] %v6440_v18  ;;  %v1774_v29 = vmul.f32 %v6297_v22, %v1735_v63  ;;  %v1733_v31 = vmax.f32 %v1609_v0, 0.0  ;;  %v6457_v35 = vadd.f32 %v6314_v43, %v1776_v13  ;;  %v6460_v61 = vadd.f32 %v6314_v43, %v1790_v16  ;;  %v5307_v63 = vld [vmem:[#allocation9 + $0x78] sm:$0xff]   ;;  %v5364_v13 = vld [vmem:[%s6122_s12 + $0x24] ss:$8 sps:$4 sm:$0xff]  }
 0x3f7   : > { %4421 = vmatpush3.bf16.msra.mxu0 %v1848_v32  ;;  %7331 = vst [vmem:[#allocation39_spill] sm:$0xff] %v6451_v57  ;;  %v1845_v5 = vpack.c.bf16 %v6431_v8, %v6446_v21  ;;  %v1788_v23 = vmul.f32 %v6297_v22, %v1749_v51  ;;  %v1852_v24 = vpack.c.bf16 %v6440_v18, %v6451_v57  ;;  %v1732_v33 = vmax.f32 %v1606_v37, 0.0  ;;  %v5362_v11 = vld [vmem:[%s6122_s12 + $0x14] ss:$8 sps:$4 sm:$0xff]   ;;  %v5363_v0 = vld [vmem:[%s6122_s12 + $0x10] ss:$8 sps:$4 sm:$0xff]  }
 0x3f8   : > { %4422 = vmatprep.subr.bf16.mxu0 %v1855_v34  ;;  %7332 = vst [vmem:[#allocation40_spill] sm:$0xff] %v6460_v61  ;;  %v1773_v32 = vmul.f32 %v6297_v22, %v1734_v20  ;;  %v6467_v55 = vadd.f32 %v6314_v43, %v1775_v25  ;;  %v6470_v34 = vadd.f32 %v6314_v43, %v1789_v26  ;;  %v5366_v16 = vld [vmem:[%s6122_s12 + $0x34] ss:$8 sps:$4 sm:$0xff]   ;;  %v5367_v51 = vld [vmem:[%s6122_s12 + $0x30] ss:$8 sps:$4 sm:$0xff]  }
 0x3f9   : > { %v1787_v38 = vmul.f32 %v6297_v22, %v1748_v27  ;;  %v6474_v40 = vadd.f32 %v6314_v43, %v1774_v29  ;;  %v1772_v50 = vmul.f32 %v6297_v22, %v1733_v31  ;;  %v6482_v45 = vadd.f32 %v6314_v43, %v1788_v23  ;;  %4874 = vmatprep.subr.bf16.mxu1 %v5307_v63  ;;  %v5369_v20 = vld [vmem:[%s6122_s12 + $0x40] ss:$8 sps:$4 sm:$0xff]   ;;  %v5370_v37 = vld [vmem:[%s6122_s12 + $0x54] ss:$8 sps:$4 sm:$0xff]   ;;  %v5371_v25 = vld [vmem:[%s6122_s12 + $0x50] ss:$8 sps:$4 sm:$0xff]  }
 0x3fa   : > { %v1844_v42 = vpack.c.bf16 %v6457_v35, %v6467_v55  ;;  %v1851_v44 = vpack.c.bf16 %v6460_v61, %v6470_v34  ;;  %v6485_v39 = vadd.f32 %v6314_v43, %v1773_v32  ;;  %4875 = vmatpush3.bf16.msra.mxu1 %v5307_v63  ;;  %v5372_v26 = vld [vmem:[%s6122_s12 + $0x64] ss:$8 sps:$4 sm:$0xff]   ;;  %v5373_v27 = vld [vmem:[%s6122_s12 + $0x60] ss:$8 sps:$4 sm:$0xff]   ;;  %v5374_v29 = vld [vmem:[%s6122_s12 + $0x74] ss:$8 sps:$4 sm:$0xff]  }
 0x3fb   : > { %4423 = vmatpush3.bf16.msra.mxu0 %v1847_v1  ;;  %7333 = vst [vmem:[#allocation41_spill] sm:$0xff] %v6482_v45  ;;  %v1771_v1 = vmul.f32 %v6297_v22, %v1732_v33  ;;  %v6489_v47 = vadd.f32 %v6314_v43, %v1787_v38  ;;  %v6494_v60 = vadd.f32 %v6314_v43, %v1772_v50  ;;  %v5375_v31 = vld [vmem:[%s6122_s12 + $0x70] ss:$8 sps:$4 sm:$0xff]   ;;  %v5377_v23 = vld [vmem:[%s6122_s12 + $0x80] ss:$8 sps:$4 sm:$0xff]  }
 0x3fc   : > { %4424 = vmatprep.subr.bf16.mxu0 %v1854_v62  ;;  %v1843_v58 = vpack.c.bf16 %v6474_v40, %v6485_v39  ;;  %4876 = vmatprep.subr.bf16.mxu1 %v5308_v3  ;;  %v5311_v32 = vld [vmem:[#allocation9 + $0x58] sm:$0xff]   ;;  %v5312_v33 = vld [vmem:[#allocation9 + $0x50] sm:$0xff]   ;;  %v5380_v50 = vld [vmem:[%s6122_s12 + $0xa4] ss:$8 sps:$4 sm:$0xff]  }
 0x3fd   : > { %7334 = vst [vmem:[#allocation42_spill] sm:$0xff] %v6489_v47  ;;  %v1850_v62 = vpack.c.bf16 %v6482_v45, %v6489_v47  ;;  %v6499_v22 = vadd.f32 %v6314_v43, %v1771_v1  ;;  %v5310_v43 = vld [vmem:[#allocation9 + $0x60] sm:$0xff]   ;;  %v5379_v38 = vld [vmem:[%s6122_s12 + $0x90] ss:$8 sps:$4 sm:$0xff]  }
 0x3fe   : > { %4877 = vmatpush3.bf16.msra.mxu1 %v5308_v3  ;;  %v5381_v1 = vld [vmem:[%s6122_s12 + $0xa0] ss:$8 sps:$4 sm:$0xff]   ;;  %v5384_v63 = vld [vmem:[%s6122_s12 + $0xc4] ss:$8 sps:$4 sm:$0xff]  }
 0x3ff   : > { %4425 = vmatpush3.bf16.msra.mxu0 %v1846_v15  ;;  %v1842_v6 = vpack.c.bf16 %v6494_v60, %v6499_v22  ;;  %4878 = vmatprep.subr.bf16.mxu1 %v5309_v53  ;;  %v5365_v15 = vld [vmem:[%s6122_s12 + $0x20] ss:$8 sps:$4 sm:$0xff]  }
 0x400   : > { %4426 = vmatprep.subr.bf16.mxu0 %v1853_v54  ;;  %v5368_v54 = vld [vmem:[%s6122_s12 + $0x44] ss:$8 sps:$4 sm:$0xff]   ;;  %v5385_v3 = vld [vmem:[%s6122_s12 + $0xc0] ss:$8 sps:$4 sm:$0xff]  }
 0x402   : > { %4879 = vmatpush3.bf16.msra.mxu1 %v5309_v53  ;;  %v5387_v53 = vld [vmem:[%s6122_s12 + $0xd0] ss:$8 sps:$4 sm:$0xff]  }
 0x403   : > { %4427 = vmatpush3.bf16.msra.mxu0 %v1845_v5  ;;  %4880 = vmatprep.subr.bf16.mxu1 %v5310_v43  ;;  %v5376_v5 = vld [vmem:[%s6122_s12 + $0x84] ss:$8 sps:$4 sm:$0xff]  }
 0x404   : > { %4428 = vmatprep.subr.bf16.mxu0 %v1852_v24  ;;  %v5378_v24 = vld [vmem:[%s6122_s12 + $0x94] ss:$8 sps:$4 sm:$0xff]  }
 0x406   : > { %4881 = vmatpush3.bf16.msra.mxu1 %v5310_v43  ;;  %v5389_v43 = vld [vmem:[%s6122_s12 + $0xe0] ss:$8 sps:$4 sm:$0xff]  }
 0x407   : > { %4429 = vmatpush3.bf16.msra.mxu0 %v1844_v42  ;;  %4882 = vmatprep.subr.bf16.mxu1 %v5311_v32  ;;  %v5313_v42 = vld [vmem:[#allocation9 + $0x48] sm:$0xff]  }
 0x408   : > { %4430 = vmatprep.subr.bf16.mxu0 %v1851_v44  ;;  %v5314_v44 = vld [vmem:[#allocation9 + $0x40] sm:$0xff]  }
 0x40a   : > { %4883 = vmatpush3.bf16.msra.mxu1 %v5311_v32 }
 0x40b   : > { %4431 = vmatpush3.bf16.msra.mxu0 %v1843_v58  ;;  %4884 = vmatprep.subr.bf16.mxu1 %v5312_v33  ;;  %v5382_v58 = vld [vmem:[%s6122_s12 + $0xb4] ss:$8 sps:$4 sm:$0xff]  }
 0x40c   : > { %4432 = vmatprep.subr.bf16.mxu0 %v1850_v62  ;;  %v5383_v62 = vld [vmem:[%s6122_s12 + $0xb0] ss:$8 sps:$4 sm:$0xff]  }
 0x40e   : > { %4885 = vmatpush3.bf16.msra.mxu1 %v5312_v33 }
 0x40f   : > { %4433 = vmatpush3.bf16.msra.mxu0 %v1842_v6  ;;  %4886 = vmatprep.subr.bf16.mxu1 %v5313_v42  ;;  %v5386_v6 = vld [vmem:[%s6122_s12 + $0xd4] ss:$8 sps:$4 sm:$0xff]  }
 0x412   : > { %1891 = vmatmul.mubr.bf16.vlgmr.msra.gmra.mxu0 %v5361_v56  ;;  %4887 = vmatpush3.bf16.msra.mxu1 %v5313_v42  ;;  %v5388_v56 = vld [vmem:[%s6122_s12 + $0xe4] ss:$8 sps:$4 sm:$0xff]  }
 0x413   : > { %1898 = vmatprep.mubr.bf16.mxu0 %v5362_v11  ;;  %4888 = vmatprep.subr.bf16.mxu1 %v5314_v44  ;;  %v5390_v11 = vld [vmem:[%s6122_s12 + $0xf4] ss:$8 sps:$4 sm:$0xff]  }
 0x416   : > { %4889 = vmatpush3.bf16.msra.mxu1 %v5314_v44  ;;  %v5317_v44 = vld [vmem:[#allocation10 + $0x68] sm:$0xff]  }
 0x41a   : > { %1899 = vmatmul.mubr.bf16.gmra.mxu0 %v5363_v0  ;;  %v5391_v0 = vld [vmem:[%s6122_s12 + $0xf0] ss:$8 sps:$4 sm:$0xff]  }
 0x41b   : > { %1906 = vmatprep.mubr.bf16.mxu0 %v5364_v13  ;;  %v5392_v13 = vld [vmem:[%s6122_s12 + $0x4] ss:$8 sps:$4 sm:$0xff]  }
 0x422   : > { %1907 = vmatmul.mubr.bf16.gmra.mxu0 %v5365_v15 }
 0x423   : > { %1914 = vmatprep.mubr.bf16.mxu0 %v5366_v16 }
 0x42a   : > { %1915 = vmatmul.mubr.bf16.gmra.mxu0 %v5367_v51  ;;  %v5315_v51 = vld [vmem:[#allocation10 + $0x78] sm:$0xff]  }
 0x42b   : > { %1922 = vmatprep.mubr.bf16.mxu0 %v5368_v54  ;;  %4922 = vmatprep.subr.bf16.mxu1 %v5315_v51 }
 0x432   : > { %1923 = vmatmul.mubr.bf16.gmra.mxu0 %v5369_v20 }
 0x433   : > { %1930 = vmatprep.mubr.bf16.mxu0 %v5370_v37 }
 0x43a   : > { %1931 = vmatmul.mubr.bf16.gmra.mxu0 %v5371_v25 }
 0x43b   : > { %1938 = vmatprep.mubr.bf16.mxu0 %v5372_v26 }
 0x442   : > { %1939 = vmatmul.mubr.bf16.gmra.mxu0 %v5373_v27 }
 0x443   : > { %1946 = vmatprep.mubr.bf16.mxu0 %v5374_v29 }
 0x44a   : > { %1947 = vmatmul.mubr.bf16.gmra.mxu0 %v5375_v31 }
 0x44b   : > { %1954 = vmatprep.mubr.bf16.mxu0 %v5376_v5 }
 0x452   : > { %1955 = vmatmul.mubr.bf16.gmra.mxu0 %v5377_v23 }
 0x453   : > { %1962 = vmatprep.mubr.bf16.mxu0 %v5378_v24 }
 0x45a   : > { %1963 = vmatmul.mubr.bf16.gmra.mxu0 %v5379_v38  ;;  %v5316_v38 = vld [vmem:[#allocation10 + $0x70] sm:$0xff]  }
 0x45b   : > { %1970 = vmatprep.mubr.bf16.mxu0 %v5380_v50 }
 0x462   : > { %1971 = vmatmul.mubr.bf16.gmra.mxu0 %v5381_v1 }
 0x463   : > { %1978 = vmatprep.mubr.bf16.mxu0 %v5382_v58 }
 0x46a   : > { %1979 = vmatmul.mubr.bf16.gmra.mxu0 %v5383_v62 }
 0x46b   : > { %1986 = vmatprep.mubr.bf16.mxu0 %v5384_v63 }
 0x472   : > { %1987 = vmatmul.mubr.bf16.gmra.mxu0 %v5385_v3 }
 0x473   : > { %1994 = vmatprep.mubr.bf16.mxu0 %v5386_v6  ;;  %v5318_v6 = vld [vmem:[#allocation10 + $0x60] sm:$0xff]  }
 0x47a   : > { %1995 = vmatmul.mubr.bf16.gmra.mxu0 %v5387_v53 }
 0x47b   : > { %2002 = vmatprep.mubr.bf16.mxu0 %v5388_v56 }
 0x482   : > { %2003 = vmatmul.mubr.bf16.gmra.mxu0 %v5389_v43  ;;  %v5319_v43 = vld [vmem:[#allocation10 + $0x58] sm:$0xff]  }
 0x483   : > { %2010 = vmatprep.mubr.bf16.mxu0 %v5390_v11 }
 0x48a   : > { %2011 = vmatmul.mubr.bf16.gmra.mxu0 %v5391_v0 }
 0x48b   : > { %2743 = vmatprep.mubr.bf16.mxu0 %v5392_v13 }
 0x4d2   : > { %v4434_v15 = vpop.f32.mrf.mxu0 }
 0x4d4   : > { %v4435_v16 = vpop.f32.mrf.mxu0 }
 0x4d5   : > { %v4436_v37 = vadd.f32 %v4435_v16, %v4434_v15 }
 0x4d6   : > { %v4437_v54 = vpop.f32.mrf.mxu0 }
 0x4d8   : > { %v4438_v20 = vpop.f32.mrf.mxu0 }
 0x4d9   : > { %v4439_v25 = vadd.f32 %v4438_v20, %v4437_v54 }
 0x4da   : > { %v4440_v26 = vpop.f32.mrf.mxu0 }
 0x4db   : > { %v2019_v27 = vpack.c.bf16 %v4439_v25, %v4436_v37 }
 0x4dc   : > { %v4441_v29 = vpop.f32.mrf.mxu0 }
 0x4dd   : > { %4890 = vmatprep.mubr.bf16.mxu1 %v2019_v27  ;;  %v4442_v23 = vadd.f32 %v4441_v29, %v4440_v26 }
 0x4de   : > { %v4443_v31 = vpop.f32.mrf.mxu0 }
 0x4e0   : > { %v4444_v5 = vpop.f32.mrf.mxu0 }
 0x4e1   : > { %v4445_v24 = vadd.f32 %v4444_v5, %v4443_v31 }
 0x4e2   : > { %v4446_v32 = vpop.f32.mrf.mxu0 }
 0x4e3   : > { %v2020_v33 = vpack.c.bf16 %v4445_v24, %v4442_v23 }
 0x4e4   : > { %v4447_v50 = vpop.f32.mrf.mxu0 }
 0x4e5   : > { %4891 = vmatmul.mubr.bf16.vlgmr.msra.gmra.mxu1 %v2020_v33  ;;  %v4448_v58 = vadd.f32 %v4447_v50, %v4446_v32 }
 0x4e6   : > { %v4449_v42 = vpop.f32.mrf.mxu0  ;;  %4923 = vmatpush3.bf16.msra.mxu1 %v5315_v51 }
 0x4e7   : > { %4924 = vmatprep.subr.bf16.mxu1 %v5316_v38 }
 0x4e8   : > { %v4450_v1 = vpop.f32.mrf.mxu0 }
 0x4e9   : > { %v4451_v62 = vadd.f32 %v4450_v1, %v4449_v42 }
 0x4ea   : > { %v4452_v63 = vpop.f32.mrf.mxu0  ;;  %4925 = vmatpush3.bf16.msra.mxu1 %v5316_v38 }
 0x4eb   : > { %v2021_v3 = vpack.c.bf16 %v4451_v62, %v4448_v58  ;;  %4926 = vmatprep.subr.bf16.mxu1 %v5317_v44 }
 0x4ec   : > { %v4453_v53 = vpop.f32.mrf.mxu0 }
 0x4ed   : > { %4894 = vmatprep.mubr.bf16.mxu1 %v2021_v3  ;;  %v4454_v0 = vadd.f32 %v4453_v53, %v4452_v63 }
 0x4ee   : > { %v4455_v56 = vpop.f32.mrf.mxu0  ;;  %4927 = vmatpush3.bf16.msra.mxu1 %v5317_v44 }
 0x4ef   : > { %4928 = vmatprep.subr.bf16.mxu1 %v5318_v6 }
 0x4f0   : > { %v4456_v11 = vpop.f32.mrf.mxu0 }
 0x4f1   : > { %v4457_v13 = vadd.f32 %v4456_v11, %v4455_v56 }
 0x4f2   : > { %v4458_v15 = vpop.f32.mrf.mxu0  ;;  %4929 = vmatpush3.bf16.msra.mxu1 %v5318_v6 }
 0x4f3   : > { %v2022_v16 = vpack.c.bf16 %v4457_v13, %v4454_v0  ;;  %4930 = vmatprep.subr.bf16.mxu1 %v5319_v43 }
 0x4f4   : > { %v4459_v51 = vpop.f32.mrf.mxu0 }
 0x4f5   : > { %4895 = vmatmul.mubr.bf16.gmra.mxu1 %v2022_v16  ;;  %v4460_v37 = vadd.f32 %v4459_v51, %v4458_v15 }
 0x4f6   : > { %v4461_v54 = vpop.f32.mrf.mxu0  ;;  %4931 = vmatpush3.bf16.msra.mxu1 %v5319_v43 }
 0x4f8   : > { %v4462_v20 = vpop.f32.mrf.mxu0 }
 0x4f9   : > { %v4463_v25 = vadd.f32 %v4462_v20, %v4461_v54 }
 0x4fa   : > { %v4464_v26 = vpop.f32.mrf.mxu0 }
 0x4fb   : > { %v2023_v27 = vpack.c.bf16 %v4463_v25, %v4460_v37 }
 0x4fc   : > { %v4465_v29 = vpop.f32.mrf.mxu0 }
 0x4fd   : > { %4898 = vmatprep.mubr.bf16.mxu1 %v2023_v27  ;;  %v4466_v23 = vadd.f32 %v4465_v29, %v4464_v26 }
 0x4fe   : > { %v4467_v31 = vpop.f32.mrf.mxu0 }
 0x500   : > { %v4468_v5 = vpop.f32.mrf.mxu0 }
 0x501   : > { %v4469_v24 = vadd.f32 %v4468_v5, %v4467_v31 }
 0x502   : > { %v4470_v32 = vpop.f32.mrf.mxu0 }
 0x503   : > { %v2024_v33 = vpack.c.bf16 %v4469_v24, %v4466_v23  ;;  %v5320_v24 = vld [vmem:[#allocation10 + $0x50] sm:$0xff]  }
 0x504   : > { %v4471_v38 = vpop.f32.mrf.mxu0  ;;  %4932 = vmatprep.subr.bf16.mxu1 %v5320_v24 }
 0x505   : > { %4899 = vmatmul.mubr.bf16.gmra.mxu1 %v2024_v33  ;;  %v4472_v44 = vadd.f32 %v4471_v38, %v4470_v32 }
 0x506   : > { %v4473_v50 = vpop.f32.mrf.mxu0  ;;  %4933 = vmatpush3.bf16.msra.mxu1 %v5320_v24 }
 0x508   : > { %v4474_v42 = vpop.f32.mrf.mxu0 }
 0x509   : > { %v4475_v1 = vadd.f32 %v4474_v42, %v4473_v50  ;;  %v5321_v42 = vld [vmem:[#allocation10 + $0x48] sm:$0xff]  }
 0x50a   : > { %v4476_v58 = vpop.f32.mrf.mxu0  ;;  %4934 = vmatprep.subr.bf16.mxu1 %v5321_v42 }
 0x50b   : > { %v2025_v62 = vpack.c.bf16 %v4475_v1, %v4472_v44  ;;  %4935 = vmatpush3.bf16.msra.mxu1 %v5321_v42 }
 0x50c   : > { %v4477_v63 = vpop.f32.mrf.mxu0 }
 0x50d   : > { %4902 = vmatprep.mubr.bf16.mxu1 %v2025_v62  ;;  %v4478_v53 = vadd.f32 %v4477_v63, %v4476_v58  ;;  %v5322_v62 = vld [vmem:[#allocation10 + $0x40] sm:$0xff]  }
 0x50e   : > { %v4479_v3 = vpop.f32.mrf.mxu0  ;;  %4936 = vmatprep.subr.bf16.mxu1 %v5322_v62 }
 0x50f   : > { %4937 = vmatpush3.bf16.msra.mxu1 %v5322_v62 }
 0x510   : > { %v4480_v6 = vpop.f32.mrf.mxu0 }
 0x511   : > { %v4481_v56 = vadd.f32 %v4480_v6, %v4479_v3 }
 0x512   : > { %v4482_v43 = vpop.f32.mrf.mxu0 }
 0x513   : > { %v2026_v11 = vpack.c.bf16 %v4481_v56, %v4478_v53 }
 0x514   : > { %v4483_v0 = vpop.f32.mrf.mxu0 }
 0x515   : > { %4903 = vmatmul.mubr.bf16.gmra.mxu1 %v2026_v11  ;;  %v4484_v16 = vadd.f32 %v4483_v0, %v4482_v43 }
 0x516   : > { %v4485_v13 = vpop.f32.mrf.mxu0 }
 0x518   : > { %v4486_v15 = vpop.f32.mrf.mxu0 }
 0x519   : > { %v4487_v51 = vadd.f32 %v4486_v15, %v4485_v13 }
 0x51a   : > { %v4488_v54 = vpop.f32.mrf.mxu0 }
 0x51b   : > { %v2027_v20 = vpack.c.bf16 %v4487_v51, %v4484_v16 }
 0x51c   : > { %v4489_v37 = vpop.f32.mrf.mxu0 }
 0x51d   : > { %4906 = vmatprep.mubr.bf16.mxu1 %v2027_v20  ;;  %v4490_v27 = vadd.f32 %v4489_v37, %v4488_v54 }
 0x51e   : > { %v4491_v25 = vpop.f32.mrf.mxu0 }
 0x520   : > { %v4492_v26 = vpop.f32.mrf.mxu0 }
 0x521   : > { %v4493_v29 = vadd.f32 %v4492_v26, %v4491_v25 }
 0x522   : > { %v4494_v31 = vpop.f32.mrf.mxu0 }
 0x523   : > { %v2028_v5 = vpack.c.bf16 %v4493_v29, %v4490_v27 }
 0x524   : > { %v4495_v23 = vpop.f32.mrf.mxu0 }
 0x525   : > { %4907 = vmatmul.mubr.bf16.gmra.mxu1 %v2028_v5  ;;  %v4496_v38 = vadd.f32 %v4495_v23, %v4494_v31 }
 0x526   : > { %v4497_v32 = vpop.f32.mrf.mxu0 }
 0x528   : > { %v4498_v33 = vpop.f32.mrf.mxu0 }
 0x529   : > { %v4499_v50 = vadd.f32 %v4498_v33, %v4497_v32 }
 0x52a   : > { %v4500_v44 = vpop.f32.mrf.mxu0 }
 0x52b   : > { %v2029_v1 = vpack.c.bf16 %v4499_v50, %v4496_v38 }
 0x52c   : > { %v4501_v58 = vpop.f32.mrf.mxu0 }
 0x52d   : > { %4910 = vmatprep.mubr.bf16.mxu1 %v2029_v1  ;;  %v4502_v6 = vadd.f32 %v4501_v58, %v4500_v44 }
 0x52e   : > { %v4503_v63 = vpop.f32.mrf.mxu0 }
 0x530   : > { %v4504_v3 = vpop.f32.mrf.mxu0 }
 0x531   : > { %v4505_v53 = vadd.f32 %v4504_v3, %v4503_v63 }
 0x532   : > { %v4506_v56 = vpop.f32.mrf.mxu0 }
 0x533   : > { %v2030_v43 = vpack.c.bf16 %v4505_v53, %v4502_v6  ;;  %v6538_v53 = vld [vmem:[%s7229_s5 + $0x1] ss:$0 sm:$0xff] }
 0x534   : > { %v4507_v11 = vpop.f32.mrf.mxu0 }
 0x535   : > { %4911 = vmatmul.mubr.bf16.gmra.mxu1 %v2030_v43  ;;  %v4508_v15 = vadd.f32 %v4507_v11, %v4506_v56 }
 0x536   : > { %v4509_v0 = vpop.f32.mrf.mxu0 }
 0x538   : > { %v4510_v13 = vpop.f32.mrf.mxu0 }
 0x539   : > { %v4511_v16 = vadd.f32 %v4510_v13, %v4509_v0 }
 0x53a   : > { %v4512_v51 = vpop.f32.mrf.mxu0 }
 0x53b   : > { %v2031_v54 = vpack.c.bf16 %v4511_v16, %v4508_v15 }
 0x53c   : > { %v4513_v20 = vpop.f32.mrf.mxu0 }
 0x53d   : > { %4914 = vmatprep.mubr.bf16.mxu1 %v2031_v54  ;;  %v4514_v26 = vadd.f32 %v4513_v20, %v4512_v51 }
 0x53e   : > { %v4515_v37 = vpop.f32.mrf.mxu0 }
 0x540   : > { %v4516_v25 = vpop.f32.mrf.mxu0 }
 0x541   : > { %v4517_v27 = vadd.f32 %v4516_v25, %v4515_v37 }
 0x542   : > { %v4518_v29 = vpop.f32.mrf.mxu0 }
 0x543   : > { %v2032_v31 = vpack.c.bf16 %v4517_v27, %v4514_v26 }
 0x544   : > { %v4519_v5 = vpop.f32.mrf.mxu0 }
 0x545   : > { %4915 = vmatmul.mubr.bf16.gmra.mxu1 %v2032_v31  ;;  %v4520_v32 = vadd.f32 %v4519_v5, %v4518_v29 }
 0x546   : > { %v4521_v23 = vpop.f32.mrf.mxu0 }
 0x548   : > { %v4522_v24 = vpop.f32.mrf.mxu0 }
 0x549   : > { %v4523_v33 = vadd.f32 %v4522_v24, %v4521_v23 }
 0x54a   : > { %v4524_v38 = vpop.f32.mrf.mxu0 }
 0x54b   : > { %v2033_v50 = vpack.c.bf16 %v4523_v33, %v4520_v32 }
 0x54c   : > { %v4525_v42 = vpop.f32.mrf.mxu0 }
 0x54d   : > { %4918 = vmatprep.mubr.bf16.mxu1 %v2033_v50  ;;  %v4526_v58 = vadd.f32 %v4525_v42, %v4524_v38 }
 0x54e   : > { %v4527_v44 = vpop.f32.mrf.mxu0 }
 0x550   : > { %v4528_v1 = vpop.f32.mrf.mxu0 }
 0x551   : > { %v4529_v62 = vadd.f32 %v4528_v1, %v4527_v44 }
 0x553   : > { %v2034_v63 = vpack.c.bf16 %v4529_v62, %v4526_v58 }
 0x555   : > { %4919 = vmatmul.mubr.bf16.gmra.mxu1 %v2034_v63 }
 0x5a5   : > { %v4892_v3 = vpop.f32.mrf.mxu1 }
 0x5a6   : > { %v2151_v0 = vadd.f32 %v4892_v3, %v6538_v53 }
 0x5a7   : > { %v2142_v6 = vpop.f32.mrf.mxu1 }
 0x5a8   : > { %v2143_v43 = vadd.f32 %v6538_v53, %v2142_v6  ;;  %v2271_v20 = vmax.f32 %v2151_v0, 0.0 }
 0x5a9   : > { %v4893_v56 = vpop.f32.mrf.mxu1 }
 0x5aa   : > { %v2154_v11 = vadd.f32 %v4893_v56, %v6538_v53  ;;  %v2269_v51 = vmax.f32 %v2143_v43, 0.0 }
 0x5ab   : > { %v2145_v13 = vpop.f32.mrf.mxu1 }
 0x5ac   : > { %v2146_v15 = vadd.f32 %v6538_v53, %v2145_v13  ;;  %v2272_v16 = vmax.f32 %v2154_v11, 0.0 }
 0x5ae   : > { %v2270_v54 = vmax.f32 %v2146_v15, 0.0  ;;  %v2302_v25 = vpack.c.bf16 %v2272_v16, %v2271_v20 }
 0x5b0   : > { %v2301_v37 = vpack.c.bf16 %v2270_v54, %v2269_v51 }
 0x5b2   : > { %4938 = vmatprep.mubr.bf16.mxu1 %v2301_v37 }
 0x5b3   : > { %4939 = vmatmul.mubr.bf16.vlgmr.msra.gmra.mxu1 %v2302_v25 }
 0x5b5   : > { %v4896_v26 = vpop.f32.mrf.mxu1 }
 0x5b6   : > { %v2167_v23 = vadd.f32 %v4896_v26, %v6538_v53 }
 0x5b7   : > { %v2158_v27 = vpop.f32.mrf.mxu1 }
 0x5b8   : > { %v2159_v31 = vadd.f32 %v6538_v53, %v2158_v27  ;;  %v2275_v42 = vmax.f32 %v2167_v23, 0.0 }
 0x5b9   : > { %v4897_v29 = vpop.f32.mrf.mxu1 }
 0x5ba   : > { %v2170_v5 = vadd.f32 %v4897_v29, %v6538_v53  ;;  %v2273_v38 = vmax.f32 %v2159_v31, 0.0 }
 0x5bb   : > { %v2161_v24 = vpop.f32.mrf.mxu1 }
 0x5bc   : > { %v2162_v32 = vadd.f32 %v6538_v53, %v2161_v24  ;;  %v2276_v33 = vmax.f32 %v2170_v5, 0.0 }
 0x5be   : > { %v2274_v50 = vmax.f32 %v2162_v32, 0.0  ;;  %v2304_v1 = vpack.c.bf16 %v2276_v33, %v2275_v42 }
 0x5c0   : > { %v2303_v44 = vpack.c.bf16 %v2274_v50, %v2273_v38 }
 0x5c2   : > { %4942 = vmatprep.mubr.bf16.mxu1 %v2303_v44 }
 0x5c3   : > { %4943 = vmatmul.mubr.bf16.gmra.mxu1 %v2304_v1 }
 0x5c5   : > { %v4900_v58 = vpop.f32.mrf.mxu1 }
 0x5c6   : > { %v2183_v56 = vadd.f32 %v4900_v58, %v6538_v53 }
 0x5c7   : > { %v2174_v62 = vpop.f32.mrf.mxu1 }
 0x5c8   : > { %v2175_v3 = vadd.f32 %v6538_v53, %v2174_v62  ;;  %v2279_v16 = vmax.f32 %v2183_v56, 0.0 }
 0x5c9   : > { %v4901_v63 = vpop.f32.mrf.mxu1 }
 0x5ca   : > { %v2186_v6 = vadd.f32 %v4901_v63, %v6538_v53  ;;  %v2277_v13 = vmax.f32 %v2175_v3, 0.0 }
 0x5cb   : > { %v2177_v43 = vpop.f32.mrf.mxu1 }
 0x5cc   : > { %v2178_v11 = vadd.f32 %v6538_v53, %v2177_v43  ;;  %v2280_v0 = vmax.f32 %v2186_v6, 0.0 }
 0x5ce   : > { %v2278_v15 = vmax.f32 %v2178_v11, 0.0  ;;  %v2306_v54 = vpack.c.bf16 %v2280_v0, %v2279_v16 }
 0x5d0   : > { %v2305_v51 = vpack.c.bf16 %v2278_v15, %v2277_v13 }
 0x5d2   : > { %4946 = vmatprep.mubr.bf16.mxu1 %v2305_v51 }
 0x5d3   : > { %4947 = vmatmul.mubr.bf16.gmra.mxu1 %v2306_v54 }
 0x5d5   : > { %v4904_v20 = vpop.f32.mrf.mxu1 }
 0x5d6   : > { %v2199_v29 = vadd.f32 %v4904_v20, %v6538_v53 }
 0x5d7   : > { %v2190_v37 = vpop.f32.mrf.mxu1 }
 0x5d8   : > { %v2191_v26 = vadd.f32 %v6538_v53, %v2190_v37  ;;  %v2283_v33 = vmax.f32 %v2199_v29, 0.0 }
 0x5d9   : > { %v4905_v25 = vpop.f32.mrf.mxu1 }
 0x5da   : > { %v2202_v27 = vadd.f32 %v4905_v25, %v6538_v53  ;;  %v2281_v24 = vmax.f32 %v2191_v26, 0.0 }
 0x5db   : > { %v2193_v31 = vpop.f32.mrf.mxu1 }
 0x5dc   : > { %v2194_v5 = vadd.f32 %v6538_v53, %v2193_v31  ;;  %v2284_v23 = vmax.f32 %v2202_v27, 0.0 }
 0x5de   : > { %v2282_v32 = vmax.f32 %v2194_v5, 0.0  ;;  %v2308_v50 = vpack.c.bf16 %v2284_v23, %v2283_v33 }
 0x5e0   : > { %v2307_v38 = vpack.c.bf16 %v2282_v32, %v2281_v24 }
 0x5e2   : > { %4950 = vmatprep.mubr.bf16.mxu1 %v2307_v38 }
 0x5e3   : > { %4951 = vmatmul.mubr.bf16.gmra.mxu1 %v2308_v50 }
 0x5e5   : > { %v4908_v42 = vpop.f32.mrf.mxu1 }
 0x5e6   : > { %v2215_v63 = vadd.f32 %v4908_v42, %v6538_v53 }
 0x5e7   : > { %v2206_v44 = vpop.f32.mrf.mxu1 }
 0x5e8   : > { %v2207_v58 = vadd.f32 %v6538_v53, %v2206_v44  ;;  %v2287_v0 = vmax.f32 %v2215_v63, 0.0 }
 0x5e9   : > { %v4909_v1 = vpop.f32.mrf.mxu1 }
 0x5ea   : > { %v2218_v62 = vadd.f32 %v4909_v1, %v6538_v53  ;;  %v2285_v43 = vmax.f32 %v2207_v58, 0.0 }
 0x5eb   : > { %v2209_v3 = vpop.f32.mrf.mxu1 }
 0x5ec   : > { %v2210_v6 = vadd.f32 %v6538_v53, %v2209_v3  ;;  %v2288_v56 = vmax.f32 %v2218_v62, 0.0 }
 0x5ee   : > { %v2286_v11 = vmax.f32 %v2210_v6, 0.0  ;;  %v2310_v15 = vpack.c.bf16 %v2288_v56, %v2287_v0 }
 0x5f0   : > { %v2309_v13 = vpack.c.bf16 %v2286_v11, %v2285_v43 }
 0x5f2   : > { %4954 = vmatprep.mubr.bf16.mxu1 %v2309_v13 }
 0x5f3   : > { %4955 = vmatmul.mubr.bf16.gmra.mxu1 %v2310_v15 }
 0x5f5   : > { %v4912_v16 = vpop.f32.mrf.mxu1 }
 0x5f6   : > { %v2231_v25 = vadd.f32 %v4912_v16, %v6538_v53 }
 0x5f7   : > { %v2222_v51 = vpop.f32.mrf.mxu1 }
 0x5f8   : > { %v2223_v20 = vadd.f32 %v6538_v53, %v2222_v51  ;;  %v2291_v23 = vmax.f32 %v2231_v25, 0.0 }
 0x5f9   : > { %v4913_v54 = vpop.f32.mrf.mxu1 }
 0x5fa   : > { %v2234_v37 = vadd.f32 %v4913_v54, %v6538_v53  ;;  %v2289_v31 = vmax.f32 %v2223_v20, 0.0 }
 0x5fb   : > { %v2225_v26 = vpop.f32.mrf.mxu1 }
 0x5fc   : > { %v2226_v27 = vadd.f32 %v6538_v53, %v2225_v26  ;;  %v2292_v29 = vmax.f32 %v2234_v37, 0.0 }
 0x5fe   : > { %v2290_v5 = vmax.f32 %v2226_v27, 0.0  ;;  %v2312_v32 = vpack.c.bf16 %v2292_v29, %v2291_v23  ;;  %v6575_v23 = vld [vmem:[%s7231_s7 + $0x1] ss:$0 sm:$0xff] }
 0x600   : > { %v2311_v24 = vpack.c.bf16 %v2290_v5, %v2289_v31 }
 0x602   : > { %4958 = vmatprep.mubr.bf16.mxu1 %v2311_v24 }
 0x603   : > { %4959 = vmatmul.mubr.bf16.gmra.mxu1 %v2312_v32 }
 0x605   : > { %v4916_v33 = vpop.f32.mrf.mxu1 }
 0x606   : > { %v2247_v1 = vadd.f32 %v4916_v33, %v6538_v53 }
 0x607   : > { %v2238_v38 = vpop.f32.mrf.mxu1 }
 0x608   : > { %v2239_v42 = vadd.f32 %v6538_v53, %v2238_v38  ;;  %v2295_v56 = vmax.f32 %v2247_v1, 0.0 }
 0x609   : > { %v4917_v50 = vpop.f32.mrf.mxu1 }
 0x60a   : > { %v2250_v44 = vadd.f32 %v4917_v50, %v6538_v53  ;;  %v2293_v3 = vmax.f32 %v2239_v42, 0.0  ;;  %v6582_v50 = vld [vmem:[%s7232_s8 + $0x1] ss:$0 sm:$0xff] }
 0x60b   : > { %v2241_v58 = vpop.f32.mrf.mxu1 }
 0x60c   : > { %v2242_v62 = vadd.f32 %v6538_v53, %v2241_v58  ;;  %v2296_v63 = vmax.f32 %v2250_v44, 0.0 }
 0x60e   : > { %v2294_v6 = vmax.f32 %v2242_v62, 0.0  ;;  %v2314_v11 = vpack.c.bf16 %v2296_v63, %v2295_v56 }
 0x610   : > { %v2313_v43 = vpack.c.bf16 %v2294_v6, %v2293_v3  ;;  %v6590_v6 = vld [vmem:[%s7319_s11 + $0x1] ss:$0 sm:$0xff] }
 0x612   : > { %4962 = vmatprep.mubr.bf16.mxu1 %v2313_v43 }
 0x613   : > { %4963 = vmatmul.mubr.bf16.gmra.mxu1 %v2314_v11 }
 0x615   : > { %v4920_v0 = vpop.f32.mrf.mxu1 }
 0x616   : > { %v2263_v54 = vadd.f32 %v4920_v0, %v6538_v53 }
 0x617   : > { %v2254_v13 = vpop.f32.mrf.mxu1 }
 0x618   : > { %v2255_v16 = vadd.f32 %v6538_v53, %v2254_v13  ;;  %v2299_v29 = vmax.f32 %v2263_v54, 0.0 }
 0x619   : > { %v4921_v15 = vpop.f32.mrf.mxu1 }
 0x61a   : > { %v2266_v51 = vadd.f32 %v4921_v15, %v6538_v53  ;;  %v2297_v26 = vmax.f32 %v2255_v16, 0.0 }
 0x61b   : > { %v2257_v20 = vpop.f32.mrf.mxu1 }
 0x61c   : > { %v2258_v37 = vadd.f32 %v6538_v53, %v2257_v20  ;;  %v2300_v25 = vmax.f32 %v2266_v51, 0.0 }
 0x61e   : > { %v2298_v27 = vmax.f32 %v2258_v37, 0.0  ;;  %v2316_v5 = vpack.c.bf16 %v2300_v25, %v2299_v29 }
 0x620   : > { %v2315_v31 = vpack.c.bf16 %v2298_v27, %v2297_v26 }
 0x622   : > { %4966 = vmatprep.mubr.bf16.mxu1 %v2315_v31 }
 0x623   : > { %4967 = vmatmul.mubr.bf16.gmra.mxu1 %v2316_v5 }
 0x673   : > { %v4940_v24 = vpop.f32.mrf.mxu1 }
 0x674   : > { %v2433_v32 = vadd.f32 %v4940_v24, %v6575_v23 }
 0x675   : > { %v2424_v33 = vpop.f32.mrf.mxu1 }
 0x676   : > { %v2553_v38 = vmax.f32 %v2433_v32, 0.0  ;;  %v2425_v53 = vadd.f32 %v6575_v23, %v2424_v33 }
 0x677   : > { %v4941_v42 = vpop.f32.mrf.mxu1 }
 0x678   : > { %v2551_v44 = vmax.f32 %v2425_v53, 0.0  ;;  %v2436_v1 = vadd.f32 %v4941_v42, %v6575_v23  ;;  %v2593_v62 = vmul.f32 %v6582_v50, %v2553_v38 }
 0x679   : > { %v2427_v58 = vpop.f32.mrf.mxu1 }
 0x67a   : > { %v2554_v63 = vmax.f32 %v2436_v1, 0.0  ;;  %v2428_v3 = vadd.f32 %v6575_v23, %v2427_v58  ;;  %v2591_v56 = vmul.f32 %v6582_v50, %v2551_v44  ;;  %v6595_v0 = vadd.f32 %v6590_v6, %v2593_v62 }
 0x67c   : > { %v2594_v43 = vmul.f32 %v6582_v50, %v2554_v63  ;;  %v2552_v11 = vmax.f32 %v2428_v3, 0.0  ;;  %v6602_v16 = vadd.f32 %v6590_v6, %v2591_v56 }
 0x67e   : > { %v6598_v13 = vadd.f32 %v6590_v6, %v2594_v43  ;;  %v2592_v15 = vmul.f32 %v6582_v50, %v2552_v11 }
 0x680   : > { %v6607_v54 = vadd.f32 %v6590_v6, %v2592_v15 }
 0x683   : > { %v4944_v37 = vpop.f32.mrf.mxu1 }
 0x684   : > { %v2449_v25 = vadd.f32 %v4944_v37, %v6575_v23 }
 0x685   : > { %v2440_v26 = vpop.f32.mrf.mxu1 }
 0x686   : > { %v2557_v27 = vmax.f32 %v2449_v25, 0.0  ;;  %v2441_v29 = vadd.f32 %v6575_v23, %v2440_v26 }
 0x687   : > { %v4945_v31 = vpop.f32.mrf.mxu1 }
 0x688   : > { %v2555_v5 = vmax.f32 %v2441_v29, 0.0  ;;  %v2452_v24 = vadd.f32 %v4945_v31, %v6575_v23  ;;  %v2597_v33 = vmul.f32 %v6582_v50, %v2557_v27 }
 0x689   : > { %v2443_v32 = vpop.f32.mrf.mxu1 }
 0x68a   : > { %v2558_v38 = vmax.f32 %v2452_v24, 0.0  ;;  %v2444_v53 = vadd.f32 %v6575_v23, %v2443_v32  ;;  %v2595_v42 = vmul.f32 %v6582_v50, %v2555_v5  ;;  %v6619_v58 = vadd.f32 %v6590_v6, %v2597_v33 }
 0x68c   : > { %v2598_v44 = vmul.f32 %v6582_v50, %v2558_v38  ;;  %v2556_v1 = vmax.f32 %v2444_v53, 0.0  ;;  %v6626_v3 = vadd.f32 %v6590_v6, %v2595_v42 }
 0x68e   : > { %v6622_v62 = vadd.f32 %v6590_v6, %v2598_v44  ;;  %v2596_v63 = vmul.f32 %v6582_v50, %v2556_v1 }
 0x690   : > { %v6631_v43 = vadd.f32 %v6590_v6, %v2596_v63 }
 0x693   : > { %v4948_v15 = vpop.f32.mrf.mxu1 }
 0x694   : > { %v2465_v2 = vadd.f32 %v4948_v15, %v6575_v23 }
 0x695   : > { %v2456_v37 = vpop.f32.mrf.mxu1 }
 0x696   : > { %v2561_v47 = vmax.f32 %v2465_v2, 0.0  ;;  %v6658_v15 = vadd.f32 %v6575_v23, %v2456_v37 }
 0x697   : > { %v4949_v25 = vpop.f32.mrf.mxu1 }
 0x698   : > { %v2468_v12 = vadd.f32 %v4949_v25, %v6575_v23 }
 0x699   : > { %v2459_v26 = vpop.f32.mrf.mxu1 }
 0x6a3   : > { %v4952_v27 = vpop.f32.mrf.mxu1 }
 0x6a4   : > { %v2481_v10 = vadd.f32 %v4952_v27, %v6575_v23 }
 0x6a5   : > { %v2472_v29 = vpop.f32.mrf.mxu1 }
 0x6a6   : > { %v2565_v9 = vmax.f32 %v2481_v10, 0.0  ;;  %v2473_v25 = vadd.f32 %v6575_v23, %v2472_v29 }
 0x6a7   : > { %v4953_v31 = vpop.f32.mrf.mxu1 }
 0x6a8   : > { %v2484_v11 = vadd.f32 %v4953_v31, %v6575_v23  ;;  %v2562_v31 = vmax.f32 %v2468_v12, 0.0  ;;  %v2563_v61 = vmax.f32 %v2473_v25, 0.0 }
 0x6a9   : > { %v2475_v5 = vpop.f32.mrf.mxu1 }
 0x6aa   : > { %v2566_v46 = vmax.f32 %v2484_v11, 0.0  ;;  %v2476_v19 = vadd.f32 %v6575_v23, %v2475_v5  ;;  %v2602_v37 = vmul.f32 %v6582_v50, %v2562_v31 }
 0x6ac   : > { %v2564_v5 = vmax.f32 %v2476_v19, 0.0 }
 0x6b3   : > { %v6635_v24 = vpop.f32.mrf.mxu1 }
 0x6b5   : > { %v6637_v32 = vpop.f32.mrf.mxu1 }
 0x6b7   : > { %v6639_v33 = vpop.f32.mrf.mxu1 }
 0x6b9   : > { %v6641_v38 = vpop.f32.mrf.mxu1 }
 0x6c3   : > { %v4960_v53 = vpop.f32.mrf.mxu1 }
 0x6c5   : > { %v6643_v42 = vpop.f32.mrf.mxu1 }
 0x6c7   : > { %v4961_v44 = vpop.f32.mrf.mxu1 }
 0x6c9   : > { %v6645_v1 = vpop.f32.mrf.mxu1 }
 0x6d3   : > { %v4964_v63 = vpop.f32.mrf.mxu1 }
 0x6d4   : > { %v2529_v27 = vadd.f32 %v4964_v63, %v6575_v23 }
 0x6d5   : > { %v2520_v20 = vpop.f32.mrf.mxu1 }
 0x6d7   : > { %v4965_v51 = vpop.f32.mrf.mxu1 }
 0x6d8   : > { %v2532_v30 = vadd.f32 %v4965_v51, %v6575_v23  ;;  %v2460_v51 = vadd.f32 %v6575_v23, %v2459_v26  ;;  %v2521_v26 = vadd.f32 %v6575_v23, %v2520_v20 }
 0x6d9   : > { %v2523_v56 = vpop.f32.mrf.mxu1 }
 0x6da   : > { %v2524_v10 = vadd.f32 %v6575_v23, %v2523_v56 }
 0x6e3   : > { %v4968_v59 = vpop.f32.mrf.mxu1 }
 0x6e4   : > { %v2545_v36 = vadd.f32 %v4968_v59, %v6575_v23 }
 0x6e5   : > { %v2536_v18 = vpop.f32.mrf.mxu1 }
 0x6e6   : > { %v2581_v57 = vmax.f32 %v2545_v36, 0.0  ;;  %v2537_v49 = vadd.f32 %v6575_v23, %v2536_v18  ;;  %v2606_v36 = vmul.f32 %v6582_v50, %v2566_v46  ;;  %v2578_v18 = vmax.f32 %v2532_v30, 0.0 }
 0x6e7   : > { %v4969_v45 = vpop.f32.mrf.mxu1 }
 0x6e8   : > { %v2579_v59 = vmax.f32 %v2537_v49, 0.0  ;;  %v2548_v11 = vadd.f32 %v4969_v45, %v6575_v23  ;;  %v2621_v29 = vmul.f32 %v6582_v50, %v2581_v57  ;;  %v2605_v49 = vmul.f32 %v6582_v50, %v2565_v9 }
 0x6e9   : > { %v2539_v12 = vpop.f32.mrf.mxu1  ;;  %v2577_v45 = vmax.f32 %v2529_v27, 0.0  ;;  %v6672_v56 = vadd.f32 %v6590_v6, %v2606_v36  ;;  %v2604_v57 = vmul.f32 %v6582_v50, %v2564_v5  ;;  %v2618_v31 = vmul.f32 %v6582_v50, %v2578_v18 }
 0x6ea   : > { %v2582_v63 = vmax.f32 %v2548_v11, 0.0  ;;  %v2540_v2 = vadd.f32 %v6575_v23, %v2539_v12  ;;  %v2619_v46 = vmul.f32 %v6582_v50, %v2579_v59  ;;  %v2516_v11 = vadd.f32 %v4961_v44, %v6575_v23 }
 0x6eb   : > { %v2576_v12 = vmax.f32 %v2524_v10, 0.0  ;;  %v6678_v9 = vadd.f32 %v6590_v6, %v2621_v29  ;;  %v6685_v27 = vadd.f32 %v6590_v6, %v2605_v49  ;;  %v2603_v59 = vmul.f32 %v6582_v50, %v2563_v61 }
 0x6ec   : > { %v2622_v19 = vmul.f32 %v6582_v50, %v2582_v63  ;;  %v2580_v30 = vmax.f32 %v2540_v2, 0.0  ;;  %v2513_v36 = vadd.f32 %v4960_v53, %v6575_v23  ;;  %v2617_v44 = vmul.f32 %v6582_v50, %v2577_v45 }
 0x6ed   : > { %7335 = vst [vmem:[#allocation43_spill] sm:$0xff] %v6678_v9  ;;  %v2575_v5 = vmax.f32 %v2521_v26, 0.0  ;;  %v6691_v18 = vadd.f32 %v6590_v6, %v2619_v46  ;;  %v2560_v63 = vmax.f32 %v2460_v51, 0.0  ;;  %v2702_v2 = vpack.c.bf16 %v6672_v56, %v6685_v27 }
 0x6ee   : > { %v6681_v20 = vadd.f32 %v6590_v6, %v2622_v19  ;;  %v2620_v25 = vmul.f32 %v6582_v50, %v2580_v30  ;;  %v6701_v61 = vadd.f32 %v6590_v6, %v2604_v57  ;;  %v2574_v53 = vmax.f32 %v2516_v11, 0.0 }
 0x6ef   : > { %7337 = vst [vmem:[#allocation45_spill] sm:$0xff] %v6691_v18  ;;  %v2508_v49 = vadd.f32 %v6575_v23, %v6645_v1  ;;  %v6706_v45 = vadd.f32 %v6590_v6, %v2618_v31  ;;  %v2616_v26 = vmul.f32 %v6582_v50, %v2576_v12  ;;  %v2601_v51 = vmul.f32 %v6582_v50, %v2561_v47 }
 0x6f0   : > { %7336 = vst [vmem:[#allocation44_spill] sm:$0xff] %v6681_v20  ;;  %v6694_v10 = vadd.f32 %v6590_v6, %v2620_v25  ;;  %v2710_v29 = vpack.c.bf16 %v6681_v20, %v6678_v9  ;;  %v2559_v19 = vmax.f32 %v6658_v15, 0.0  ;;  %v6714_v30 = vadd.f32 %v6590_v6, %v2603_v59  ;;  %v5332_v20 = vld [vmem:[#allocation10 + $0xb0] sm:$0xff]  }
 0x6f1   : > { %7339 = vst [vmem:[#allocation47_spill] sm:$0xff] %v6706_v45  ;;  %v2573_v57 = vmax.f32 %v2513_v36, 0.0  ;;  %v2505_v1 = vadd.f32 %v6575_v23, %v6643_v42  ;;  %v6719_v11 = vadd.f32 %v6590_v6, %v2617_v44  ;;  %v2615_v31 = vmul.f32 %v6582_v50, %v2575_v5 }
 0x6f2   : > { %7338 = vst [vmem:[#allocation46_spill] sm:$0xff] %v6694_v10  ;;  %4578 = vmatprep.subr.bf16.mxu0 %v2710_v29  ;;  %v2709_v46 = vpack.c.bf16 %v6694_v10, %v6691_v18  ;;  %v6723_v12 = vadd.f32 %v6590_v6, %v2602_v37  ;;  %v2600_v47 = vmul.f32 %v6582_v50, %v2560_v63  ;;  %v2572_v42 = vmax.f32 %v2508_v49, 0.0 }
 0x6f3   : > { %4579 = vmatpush3.bf16.msra.mxu0 %v2702_v2  ;;  %v2701_v15 = vpack.c.bf16 %v6701_v61, %v6714_v30  ;;  %v2500_v25 = vadd.f32 %v6639_v33, %v6575_v23  ;;  %v2614_v59 = vmul.f32 %v6582_v50, %v2574_v53  ;;  %v6732_v36 = vadd.f32 %v6590_v6, %v2616_v26 }
 0x6f4   : > { %4580 = vmatprep.subr.bf16.mxu0 %v2709_v46  ;;  %v2708_v44 = vpack.c.bf16 %v6706_v45, %v6719_v11  ;;  %v6737_v37 = vadd.f32 %v6590_v6, %v2601_v51  ;;  %v2599_v5 = vmul.f32 %v6582_v50, %v2559_v19  ;;  %v2497_v29 = vadd.f32 %v6635_v24, %v6575_v23 }
 0x6f5   : > { %7340 = vst [vmem:[#allocation48_spill] sm:$0xff] %v6732_v36  ;;  %v2613_v33 = vmul.f32 %v6582_v50, %v2573_v57  ;;  %v2571_v63 = vmax.f32 %v2505_v1, 0.0  ;;  %v6744_v2 = vadd.f32 %v6590_v6, %v2615_v31  ;;  %v6749_v49 = vadd.f32 %v6590_v6, %v2600_v47 }
 0x6f6   : > { %v2700_v53 = vpack.c.bf16 %v6723_v12, %v6737_v37  ;;  %v2570_v26 = vmax.f32 %v2500_v25, 0.0  ;;  %v2492_v46 = vadd.f32 %v6575_v23, %v6641_v38  ;;  %v6754_v51 = vadd.f32 %v6590_v6, %v2614_v59 }
 0x6f7   : > { %4581 = vmatpush3.bf16.msra.mxu0 %v2701_v15  ;;  %7341 = vst [vmem:[#allocation49_spill] sm:$0xff] %v6744_v2  ;;  %v2612_v24 = vmul.f32 %v6582_v50, %v2572_v42  ;;  %v2707_v19 = vpack.c.bf16 %v6732_v36, %v6744_v2  ;;  %v6760_v57 = vadd.f32 %v6590_v6, %v2599_v5  ;;  %v2569_v1 = vmax.f32 %v2497_v29, 0.0  ;;  %v5333_v36 = vld [vmem:[#allocation10 + $0xa8] sm:$0xff]  }
 0x6f8   : > { %4582 = vmatprep.subr.bf16.mxu0 %v2708_v44  ;;  %v2489_v31 = vadd.f32 %v6575_v23, %v6637_v32  ;;  %v6765_v47 = vadd.f32 %v6590_v6, %v2613_v33  ;;  %v2611_v38 = vmul.f32 %v6582_v50, %v2571_v63  ;;  %v2610_v25 = vmul.f32 %v6582_v50, %v2570_v26 }
 0x6f9   : > { %v2699_v15 = vpack.c.bf16 %v6749_v49, %v6760_v57  ;;  %v2568_v59 = vmax.f32 %v2492_v46, 0.0  ;;  %v6772_v42 = vadd.f32 %v6590_v6, %v2612_v24  ;;  %v2609_v23 = vmul.f32 %v6582_v50, %v2569_v1 }
 0x6fa   : > { %v2706_v44 = vpack.c.bf16 %v6754_v51, %v6765_v47  ;;  %v2567_v32 = vmax.f32 %v2489_v31, 0.0  ;;  %v6778_v5 = vadd.f32 %v6590_v6, %v2611_v38  ;;  %v6781_v29 = vadd.f32 %v6590_v6, %v2610_v25  ;;  %v5323_v38 = vld [vmem:[#allocation9 + $0xb8] sm:$0xff]  }
 0x6fb   : > { %4583 = vmatpush3.bf16.msra.mxu0 %v2700_v53  ;;  %v2608_v33 = vmul.f32 %v6582_v50, %v2568_v59  ;;  %v7342_v53 = vpack.c.bf16 %v6622_v62, %v6619_v58  ;;  %v6790_v26 = vadd.f32 %v6590_v6, %v2609_v23  ;;  %v7343_v1 = vpack.c.bf16 %v6631_v43, %v6626_v3  ;;  %v5325_v59 = vld [vmem:[#allocation9 + $0xa8] sm:$0xff]   ;;  %v5326_v23 = vld [vmem:[#allocation9 + $0xa0] sm:$0xff]  }
 0x6fc   : > { %4584 = vmatprep.subr.bf16.mxu0 %v2707_v19  ;;  %v2705_v63 = vpack.c.bf16 %v6772_v42, %v6778_v5  ;;  %v2607_v46 = vmul.f32 %v6582_v50, %v2567_v32  ;;  %v7344_v25 = vpack.c.bf16 %v6598_v13, %v6595_v0  ;;  %4970 = vmatprep.subr.bf16.mxu1 %v5323_v38  ;;  %v5394_v32 = vld [vmem:[%s6122_s12 + $0x14] ss:$8 sps:$4 sm:$0xff]  }
 0x6fd   : > { %v6794_v24 = vadd.f32 %v6590_v6, %v2608_v33  ;;  %v2704_v19 = vpack.c.bf16 %v6781_v29, %v6790_v26  ;;  %4971 = vmatpush3.bf16.msra.mxu1 %v5323_v38  ;;  %v5395_v33 = vld [vmem:[%s6122_s12 + $0x10] ss:$8 sps:$4 sm:$0xff]   ;;  %v5402_v38 = vld [vmem:[%s6122_s12 + $0x54] ss:$8 sps:$4 sm:$0xff]  }
 0x6fe   : > { %v6802_v31 = vadd.f32 %v6590_v6, %v2607_v46  ;;  %v7345_v6 = vpack.c.bf16 %v6607_v54, %v6602_v16  ;;  %v5398_v46 = vld [vmem:[%s6122_s12 + $0x34] ss:$8 sps:$4 sm:$0xff]  }
 0x6ff   : > { %4585 = vmatpush3.bf16.msra.mxu0 %v2699_v15  ;;  %v5324_v15 = vld [vmem:[#allocation9 + $0xb0] sm:$0xff]  }
 0x700   : > { %4586 = vmatprep.subr.bf16.mxu0 %v2706_v44  ;;  %v2703_v50 = vpack.c.bf16 %v6794_v24, %v6802_v31  ;;  %4972 = vmatprep.subr.bf16.mxu1 %v5324_v15  ;;  %v5393_v44 = vld [vmem:[%s6122_s12] ss:$8 sps:$4 sm:$0xff]  }
 0x701   : > { %4973 = vmatpush3.bf16.msra.mxu1 %v5324_v15  ;;  %v5403_v15 = vld [vmem:[%s6122_s12 + $0x50] ss:$8 sps:$4 sm:$0xff]  }
 0x702   : > { %4974 = vmatprep.subr.bf16.mxu1 %v5325_v59 }
 0x703   : > { %4587 = vmatpush3.bf16.msra.mxu0 %v7342_v53  ;;  %v5397_v53 = vld [vmem:[%s6122_s12 + $0x20] ss:$8 sps:$4 sm:$0xff]  }
 0x704   : > { %4588 = vmatprep.subr.bf16.mxu0 %v2705_v63  ;;  %v5396_v63 = vld [vmem:[%s6122_s12 + $0x24] ss:$8 sps:$4 sm:$0xff]  }
 0x705   : > { %4975 = vmatpush3.bf16.msra.mxu1 %v5325_v59  ;;  %v5405_v59 = vld [vmem:[%s6122_s12 + $0x60] ss:$8 sps:$4 sm:$0xff]  }
 0x706   : > { %4976 = vmatprep.subr.bf16.mxu1 %v5326_v23 }
 0x707   : > { %4589 = vmatpush3.bf16.msra.mxu0 %v7343_v1  ;;  %v5400_v1 = vld [vmem:[%s6122_s12 + $0x44] ss:$8 sps:$4 sm:$0xff]  }
 0x708   : > { %4590 = vmatprep.subr.bf16.mxu0 %v2704_v19  ;;  %v5399_v19 = vld [vmem:[%s6122_s12 + $0x30] ss:$8 sps:$4 sm:$0xff]  }
 0x709   : > { %4977 = vmatpush3.bf16.msra.mxu1 %v5326_v23  ;;  %v5408_v23 = vld [vmem:[%s6122_s12 + $0x84] ss:$8 sps:$4 sm:$0xff]  }
 0x70b   : > { %4591 = vmatpush3.bf16.msra.mxu0 %v7344_v25  ;;  %v5404_v25 = vld [vmem:[%s6122_s12 + $0x64] ss:$8 sps:$4 sm:$0xff]  }
 0x70c   : > { %4592 = vmatprep.subr.bf16.mxu0 %v2703_v50  ;;  %v5401_v50 = vld [vmem:[%s6122_s12 + $0x40] ss:$8 sps:$4 sm:$0xff]  }
 0x70f   : > { %4593 = vmatpush3.bf16.msra.mxu0 %v7345_v6  ;;  %v5406_v6 = vld [vmem:[%s6122_s12 + $0x74] ss:$8 sps:$4 sm:$0xff]  }
 0x712   : > { %2744 = vmatmul.mubr.bf16.vlgmr.msra.gmra.mxu0 %v5393_v44  ;;  %v5407_v44 = vld [vmem:[%s6122_s12 + $0x70] ss:$8 sps:$4 sm:$0xff]  }
 0x713   : > { %2751 = vmatprep.mubr.bf16.mxu0 %v5394_v32  ;;  %v5409_v32 = vld [vmem:[%s6122_s12 + $0x80] ss:$8 sps:$4 sm:$0xff]  }
 0x71a   : > { %2752 = vmatmul.mubr.bf16.gmra.mxu0 %v5395_v33  ;;  %v5410_v33 = vld [vmem:[%s6122_s12 + $0x94] ss:$8 sps:$4 sm:$0xff]  }
 0x71b   : > { %2759 = vmatprep.mubr.bf16.mxu0 %v5396_v63  ;;  %v5327_v63 = vld [vmem:[#allocation9 + $0x98] sm:$0xff]  }
 0x71c   : > { %4978 = vmatprep.subr.bf16.mxu1 %v5327_v63 }
 0x71d   : > { %4979 = vmatpush3.bf16.msra.mxu1 %v5327_v63  ;;  %v5422_v63 = vld [vmem:[%s6122_s12 + $0xf4] ss:$8 sps:$4 sm:$0xff]  }
 0x722   : > { %2760 = vmatmul.mubr.bf16.gmra.mxu0 %v5397_v53  ;;  %v5328_v53 = vld [vmem:[#allocation9 + $0x90] sm:$0xff]  }
 0x723   : > { %2767 = vmatprep.mubr.bf16.mxu0 %v5398_v46  ;;  %4980 = vmatprep.subr.bf16.mxu1 %v5328_v53  ;;  %v5411_v46 = vld [vmem:[%s6122_s12 + $0x90] ss:$8 sps:$4 sm:$0xff]  }
 0x724   : > { %4981 = vmatpush3.bf16.msra.mxu1 %v5328_v53  ;;  %v5423_v53 = vld [vmem:[%s6122_s12 + $0xf0] ss:$8 sps:$4 sm:$0xff]  }
 0x72a   : > { %2768 = vmatmul.mubr.bf16.gmra.mxu0 %v5399_v19  ;;  %v5412_v19 = vld [vmem:[%s6122_s12 + $0xa4] ss:$8 sps:$4 sm:$0xff]  }
 0x72b   : > { %2775 = vmatprep.mubr.bf16.mxu0 %v5400_v1  ;;  %v5329_v1 = vld [vmem:[#allocation9 + $0x88] sm:$0xff]  }
 0x72c   : > { %4982 = vmatprep.subr.bf16.mxu1 %v5329_v1 }
 0x72d   : > { %4983 = vmatpush3.bf16.msra.mxu1 %v5329_v1  ;;  %v5331_v1 = vld [vmem:[#allocation10 + $0xb8] sm:$0xff]  }
 0x732   : > { %2776 = vmatmul.mubr.bf16.gmra.mxu0 %v5401_v50  ;;  %v5330_v50 = vld [vmem:[#allocation9 + $0x80] sm:$0xff]  }
 0x733   : > { %2783 = vmatprep.mubr.bf16.mxu0 %v5402_v38  ;;  %4984 = vmatprep.subr.bf16.mxu1 %v5330_v50  ;;  %v5413_v38 = vld [vmem:[%s6122_s12 + $0xa0] ss:$8 sps:$4 sm:$0xff]  }
 0x734   : > { %4985 = vmatpush3.bf16.msra.mxu1 %v5330_v50 }
 0x735   : > { %5018 = vmatprep.subr.bf16.mxu1 %v5331_v1 }
 0x73a   : > { %2784 = vmatmul.mubr.bf16.gmra.mxu0 %v5403_v15  ;;  %v5414_v15 = vld [vmem:[%s6122_s12 + $0xb4] ss:$8 sps:$4 sm:$0xff]  }
 0x73b   : > { %2791 = vmatprep.mubr.bf16.mxu0 %v5404_v25  ;;  %v5415_v25 = vld [vmem:[%s6122_s12 + $0xb0] ss:$8 sps:$4 sm:$0xff]  }
 0x742   : > { %2792 = vmatmul.mubr.bf16.gmra.mxu0 %v5405_v59  ;;  %v5416_v59 = vld [vmem:[%s6122_s12 + $0xc4] ss:$8 sps:$4 sm:$0xff]  }
 0x743   : > { %2799 = vmatprep.mubr.bf16.mxu0 %v5406_v6  ;;  %v5417_v6 = vld [vmem:[%s6122_s12 + $0xc0] ss:$8 sps:$4 sm:$0xff]  }
 0x74a   : > { %2800 = vmatmul.mubr.bf16.gmra.mxu0 %v5407_v44  ;;  %v5418_v44 = vld [vmem:[%s6122_s12 + $0xd4] ss:$8 sps:$4 sm:$0xff]  }
 0x74b   : > { %2807 = vmatprep.mubr.bf16.mxu0 %v5408_v23  ;;  %v5419_v23 = vld [vmem:[%s6122_s12 + $0xd0] ss:$8 sps:$4 sm:$0xff]  }
 0x752   : > { %2808 = vmatmul.mubr.bf16.gmra.mxu0 %v5409_v32  ;;  %v5420_v32 = vld [vmem:[%s6122_s12 + $0xe4] ss:$8 sps:$4 sm:$0xff]  }
 0x753   : > { %2815 = vmatprep.mubr.bf16.mxu0 %v5410_v33  ;;  %v5421_v33 = vld [vmem:[%s6122_s12 + $0xe0] ss:$8 sps:$4 sm:$0xff]  }
 0x75a   : > { %2816 = vmatmul.mubr.bf16.gmra.mxu0 %v5411_v46 }
 0x75b   : > { %2823 = vmatprep.mubr.bf16.mxu0 %v5412_v19 }
 0x762   : > { %2824 = vmatmul.mubr.bf16.gmra.mxu0 %v5413_v38 }
 0x763   : > { %2831 = vmatprep.mubr.bf16.mxu0 %v5414_v15 }
 0x76a   : > { %2832 = vmatmul.mubr.bf16.gmra.mxu0 %v5415_v25 }
 0x76b   : > { %2839 = vmatprep.mubr.bf16.mxu0 %v5416_v59 }
 0x772   : > { %2840 = vmatmul.mubr.bf16.gmra.mxu0 %v5417_v6 }
 0x773   : > { %2847 = vmatprep.mubr.bf16.mxu0 %v5418_v44 }
 0x77a   : > { %2848 = vmatmul.mubr.bf16.gmra.mxu0 %v5419_v23 }
 0x77b   : > { %2855 = vmatprep.mubr.bf16.mxu0 %v5420_v32 }
 0x782   : > { %2856 = vmatmul.mubr.bf16.gmra.mxu0 %v5421_v33 }
 0x783   : > { %2863 = vmatprep.mubr.bf16.mxu0 %v5422_v63 }
 0x78a   : > { %2864 = vmatmul.mubr.bf16.gmra.mxu0 %v5423_v53 }
 0x7d2   : > { %v4594_v46 = vpop.f32.mrf.mxu0 }
 0x7d4   : > { %v4595_v19 = vpop.f32.mrf.mxu0 }
 0x7d5   : > { %v4596_v15 = vadd.f32 %v4595_v19, %v4594_v46 }
 0x7d6   : > { %v4597_v50 = vpop.f32.mrf.mxu0 }
 0x7d8   : > { %v4598_v38 = vpop.f32.mrf.mxu0 }
 0x7d9   : > { %v4599_v25 = vadd.f32 %v4598_v38, %v4597_v50 }
 0x7da   : > { %v4600_v59 = vpop.f32.mrf.mxu0 }
 0x7db   : > { %v2872_v6 = vpack.c.bf16 %v4599_v25, %v4596_v15  ;;  %v5334_v15 = vld [vmem:[#allocation10 + $0xa0] sm:$0xff]  }
 0x7dc   : > { %v4601_v44 = vpop.f32.mrf.mxu0 }
 0x7dd   : > { %4986 = vmatprep.mubr.bf16.mxu1 %v2872_v6  ;;  %v4602_v10 = vadd.f32 %v4601_v44, %v4600_v59 }
 0x7de   : > { %v4603_v23 = vpop.f32.mrf.mxu0 }
 0x7e0   : > { %v4604_v32 = vpop.f32.mrf.mxu0 }
 0x7e1   : > { %v4605_v33 = vadd.f32 %v4604_v32, %v4603_v23 }
 0x7e2   : > { %v4606_v18 = vpop.f32.mrf.mxu0 }
 0x7e3   : > { %v2873_v63 = vpack.c.bf16 %v4605_v33, %v4602_v10  ;;  %v5335_v10 = vld [vmem:[#allocation10 + $0x98] sm:$0xff]  }
 0x7e4   : > { %v4607_v53 = vpop.f32.mrf.mxu0 }
 0x7e5   : > { %4987 = vmatmul.mubr.bf16.vlgmr.msra.gmra.mxu1 %v2873_v63  ;;  %v4608_v46 = vadd.f32 %v4607_v53, %v4606_v18 }
 0x7e6   : > { %v4609_v9 = vpop.f32.mrf.mxu0  ;;  %5019 = vmatpush3.bf16.msra.mxu1 %v5331_v1 }
 0x7e7   : > { %5020 = vmatprep.subr.bf16.mxu1 %v5332_v20 }
 0x7e8   : > { %v4610_v2 = vpop.f32.mrf.mxu0 }
 0x7e9   : > { %v4611_v19 = vadd.f32 %v4610_v2, %v4609_v9 }
 0x7ea   : > { %v4612_v50 = vpop.f32.mrf.mxu0  ;;  %5021 = vmatpush3.bf16.msra.mxu1 %v5332_v20 }
 0x7eb   : > { %v2874_v38 = vpack.c.bf16 %v4611_v19, %v4608_v46  ;;  %5022 = vmatprep.subr.bf16.mxu1 %v5333_v36 }
 0x7ec   : > { %v4613_v25 = vpop.f32.mrf.mxu0 }
 0x7ed   : > { %4990 = vmatprep.mubr.bf16.mxu1 %v2874_v38  ;;  %v4614_v44 = vadd.f32 %v4613_v25, %v4612_v50 }
 0x7ee   : > { %v4615_v59 = vpop.f32.mrf.mxu0  ;;  %5023 = vmatpush3.bf16.msra.mxu1 %v5333_v36 }
 0x7ef   : > { %5024 = vmatprep.subr.bf16.mxu1 %v5334_v15 }
 0x7f0   : > { %v4616_v6 = vpop.f32.mrf.mxu0 }
 0x7f1   : > { %v4617_v23 = vadd.f32 %v4616_v6, %v4615_v59 }
 0x7f2   : > { %v4618_v1 = vpop.f32.mrf.mxu0  ;;  %5025 = vmatpush3.bf16.msra.mxu1 %v5334_v15 }
 0x7f3   : > { %v2875_v32 = vpack.c.bf16 %v4617_v23, %v4614_v44  ;;  %5026 = vmatprep.subr.bf16.mxu1 %v5335_v10 }
 0x7f4   : > { %v4619_v18 = vpop.f32.mrf.mxu0 }
 0x7f5   : > { %4991 = vmatmul.mubr.bf16.gmra.mxu1 %v2875_v32  ;;  %v4620_v2 = vadd.f32 %v4619_v18, %v4618_v1 }
 0x7f6   : > { %v4621_v9 = vpop.f32.mrf.mxu0  ;;  %5027 = vmatpush3.bf16.msra.mxu1 %v5335_v10 }
 0x7f8   : > { %v4622_v20 = vpop.f32.mrf.mxu0 }
 0x7f9   : > { %v4623_v33 = vadd.f32 %v4622_v20, %v4621_v9 }
 0x7fa   : > { %v4624_v63 = vpop.f32.mrf.mxu0 }
 0x7fb   : > { %v2876_v53 = vpack.c.bf16 %v4623_v33, %v4620_v2 }
 0x7fc   : > { %v4625_v46 = vpop.f32.mrf.mxu0 }
 0x7fd   : > { %4994 = vmatprep.mubr.bf16.mxu1 %v2876_v53  ;;  %v4626_v38 = vadd.f32 %v4625_v46, %v4624_v63 }
 0x7fe   : > { %v4627_v36 = vpop.f32.mrf.mxu0 }
 0x800   : > { %v4628_v19 = vpop.f32.mrf.mxu0 }
 0x801   : > { %v4629_v50 = vadd.f32 %v4628_v19, %v4627_v36 }
 0x802   : > { %v4630_v25 = vpop.f32.mrf.mxu0 }
 0x803   : > { %v2877_v59 = vpack.c.bf16 %v4629_v50, %v4626_v38 }
 0x804   : > { %v4631_v15 = vpop.f32.mrf.mxu0 }
 0x805   : > { %4995 = vmatmul.mubr.bf16.gmra.mxu1 %v2877_v59  ;;  %v4632_v23 = vadd.f32 %v4631_v15, %v4630_v25 }
 0x806   : > { %v4633_v6 = vpop.f32.mrf.mxu0 }
 0x808   : > { %v4634_v44 = vpop.f32.mrf.mxu0 }
 0x809   : > { %v4635_v32 = vadd.f32 %v4634_v44, %v4633_v6 }
 0x80a   : > { %v4636_v10 = vpop.f32.mrf.mxu0 }
 0x80b   : > { %v2878_v45 = vpack.c.bf16 %v4635_v32, %v4632_v23 }
 0x80c   : > { %v4637_v1 = vpop.f32.mrf.mxu0 }
 0x80d   : > { %4998 = vmatprep.mubr.bf16.mxu1 %v2878_v45  ;;  %v4638_v20 = vadd.f32 %v4637_v1, %v4636_v10  ;;  %v5336_v1 = vld [vmem:[#allocation10 + $0x90] sm:$0xff]  }
 0x80e   : > { %v4639_v18 = vpop.f32.mrf.mxu0  ;;  %5028 = vmatprep.subr.bf16.mxu1 %v5336_v1 }
 0x80f   : > { %5029 = vmatpush3.bf16.msra.mxu1 %v5336_v1 }
 0x810   : > { %v4640_v9 = vpop.f32.mrf.mxu0 }
 0x811   : > { %v4641_v2 = vadd.f32 %v4640_v9, %v4639_v18 }
 0x812   : > { %v4642_v33 = vpop.f32.mrf.mxu0 }
 0x813   : > { %v2879_v53 = vpack.c.bf16 %v4641_v2, %v4638_v20 }
 0x814   : > { %v4643_v63 = vpop.f32.mrf.mxu0 }
 0x815   : > { %4999 = vmatmul.mubr.bf16.gmra.mxu1 %v2879_v53  ;;  %v4644_v19 = vadd.f32 %v4643_v63, %v4642_v33  ;;  %v5337_v33 = vld [vmem:[#allocation10 + $0x88] sm:$0xff]  }
 0x816   : > { %v4645_v46 = vpop.f32.mrf.mxu0  ;;  %5030 = vmatprep.subr.bf16.mxu1 %v5337_v33 }
 0x817   : > { %5031 = vmatpush3.bf16.msra.mxu1 %v5337_v33 }
 0x818   : > { %v4646_v36 = vpop.f32.mrf.mxu0 }
 0x819   : > { %v4647_v38 = vadd.f32 %v4646_v36, %v4645_v46  ;;  %v5338_v36 = vld [vmem:[#allocation10 + $0x80] sm:$0xff]  }
 0x81a   : > { %v4648_v50 = vpop.f32.mrf.mxu0  ;;  %5032 = vmatprep.subr.bf16.mxu1 %v5338_v36 }
 0x81b   : > { %v2880_v59 = vpack.c.bf16 %v4647_v38, %v4644_v19  ;;  %5033 = vmatpush3.bf16.msra.mxu1 %v5338_v36 }
 0x81c   : > { %v4649_v25 = vpop.f32.mrf.mxu0 }
 0x81d   : > { %5002 = vmatprep.mubr.bf16.mxu1 %v2880_v59  ;;  %v4650_v44 = vadd.f32 %v4649_v25, %v4648_v50 }
 0x81e   : > { %v4651_v15 = vpop.f32.mrf.mxu0 }
 0x820   : > { %v4652_v6 = vpop.f32.mrf.mxu0 }
 0x821   : > { %v4653_v45 = vadd.f32 %v4652_v6, %v4651_v15 }
 0x822   : > { %v4654_v23 = vpop.f32.mrf.mxu0 }
 0x823   : > { %v2881_v32 = vpack.c.bf16 %v4653_v45, %v4650_v44 }
 0x824   : > { %v4655_v10 = vpop.f32.mrf.mxu0 }
 0x825   : > { %5003 = vmatmul.mubr.bf16.gmra.mxu1 %v2881_v32  ;;  %v4656_v20 = vadd.f32 %v4655_v10, %v4654_v23 }
 0x826   : > { %v4657_v18 = vpop.f32.mrf.mxu0 }
 0x828   : > { %v4658_v9 = vpop.f32.mrf.mxu0 }
 0x829   : > { %v4659_v2 = vadd.f32 %v4658_v9, %v4657_v18 }
 0x82a   : > { %v4660_v53 = vpop.f32.mrf.mxu0 }
 0x82b   : > { %v2882_v63 = vpack.c.bf16 %v4659_v2, %v4656_v20 }
 0x82c   : > { %v4661_v46 = vpop.f32.mrf.mxu0 }
 0x82d   : > { %5006 = vmatprep.mubr.bf16.mxu1 %v2882_v63  ;;  %v4662_v50 = vadd.f32 %v4661_v46, %v4660_v53 }
 0x82e   : > { %v4663_v19 = vpop.f32.mrf.mxu0 }
 0x830   : > { %v4664_v38 = vpop.f32.mrf.mxu0 }
 0x831   : > { %v4665_v59 = vadd.f32 %v4664_v38, %v4663_v19 }
 0x832   : > { %v4666_v25 = vpop.f32.mrf.mxu0 }
 0x833   : > { %v2883_v15 = vpack.c.bf16 %v4665_v59, %v4662_v50 }
 0x834   : > { %v4667_v6 = vpop.f32.mrf.mxu0 }
 0x835   : > { %5007 = vmatmul.mubr.bf16.gmra.mxu1 %v2883_v15  ;;  %v4668_v23 = vadd.f32 %v4667_v6, %v4666_v25 }
 0x836   : > { %v4669_v44 = vpop.f32.mrf.mxu0 }
 0x838   : > { %v4670_v45 = vpop.f32.mrf.mxu0 }
 0x839   : > { %v4671_v32 = vadd.f32 %v4670_v45, %v4669_v44 }
 0x83a   : > { %v4672_v10 = vpop.f32.mrf.mxu0 }
 0x83b   : > { %v2884_v1 = vpack.c.bf16 %v4671_v32, %v4668_v23 }
 0x83c   : > { %v4673_v18 = vpop.f32.mrf.mxu0 }
 0x83d   : > { %5010 = vmatprep.mubr.bf16.mxu1 %v2884_v1  ;;  %v4674_v2 = vadd.f32 %v4673_v18, %v4672_v10  ;;  %v6846_v18 = vld [vmem:[%s7229_s5 + $0x2] ss:$0 sm:$0xff] }
 0x83e   : > { %v4675_v9 = vpop.f32.mrf.mxu0 }
 0x840   : > { %v4676_v20 = vpop.f32.mrf.mxu0 }
 0x841   : > { %v4677_v33 = vadd.f32 %v4676_v20, %v4675_v9 }
 0x842   : > { %v4678_v63 = vpop.f32.mrf.mxu0 }
 0x843   : > { %v2885_v36 = vpack.c.bf16 %v4677_v33, %v4674_v2 }
 0x844   : > { %v4679_v53 = vpop.f32.mrf.mxu0 }
 0x845   : > { %5011 = vmatmul.mubr.bf16.gmra.mxu1 %v2885_v36  ;;  %v4680_v38 = vadd.f32 %v4679_v53, %v4678_v63 }
 0x846   : > { %v4681_v46 = vpop.f32.mrf.mxu0 }
 0x848   : > { %v4682_v19 = vpop.f32.mrf.mxu0 }
 0x849   : > { %v4683_v50 = vadd.f32 %v4682_v19, %v4681_v46 }
 0x84a   : > { %v4684_v59 = vpop.f32.mrf.mxu0 }
 0x84b   : > { %v2886_v15 = vpack.c.bf16 %v4683_v50, %v4680_v38 }
 0x84c   : > { %v4685_v25 = vpop.f32.mrf.mxu0 }
 0x84d   : > { %5014 = vmatprep.mubr.bf16.mxu1 %v2886_v15  ;;  %v4686_v45 = vadd.f32 %v4685_v25, %v4684_v59 }
 0x84e   : > { %v4687_v6 = vpop.f32.mrf.mxu0 }
 0x850   : > { %v4688_v44 = vpop.f32.mrf.mxu0 }
 0x851   : > { %v4689_v23 = vadd.f32 %v4688_v44, %v4687_v6 }
 0x853   : > { %v2887_v32 = vpack.c.bf16 %v4689_v23, %v4686_v45 }
 0x855   : > { %5015 = vmatmul.mubr.bf16.gmra.mxu1 %v2887_v32 }
 0x8a5   : > { %v4988_v10 = vpop.f32.mrf.mxu1 }
 0x8a6   : > { %v3004_v33 = vadd.f32 %v4988_v10, %v6846_v18 }
 0x8a7   : > { %v2995_v1 = vpop.f32.mrf.mxu1 }
 0x8a8   : > { %v2996_v20 = vadd.f32 %v6846_v18, %v2995_v1  ;;  %v3124_v38 = vmax.f32 %v3004_v33, 0.0 }
 0x8a9   : > { %v4989_v9 = vpop.f32.mrf.mxu1 }
 0x8aa   : > { %v3007_v2 = vadd.f32 %v4989_v9, %v6846_v18  ;;  %v3122_v46 = vmax.f32 %v2996_v20, 0.0 }
 0x8ab   : > { %v2998_v63 = vpop.f32.mrf.mxu1 }
 0x8ac   : > { %v2999_v36 = vadd.f32 %v6846_v18, %v2998_v63  ;;  %v3125_v53 = vmax.f32 %v3007_v2, 0.0 }
 0x8ae   : > { %v3123_v19 = vmax.f32 %v2999_v36, 0.0  ;;  %v3155_v59 = vpack.c.bf16 %v3125_v53, %v3124_v38 }
 0x8b0   : > { %v3154_v50 = vpack.c.bf16 %v3123_v19, %v3122_v46 }
 0x8b2   : > { %5034 = vmatprep.mubr.bf16.mxu1 %v3154_v50 }
 0x8b3   : > { %5035 = vmatmul.mubr.bf16.vlgmr.msra.gmra.mxu1 %v3155_v59 }
 0x8b5   : > { %v4992_v15 = vpop.f32.mrf.mxu1 }
 0x8b6   : > { %v3020_v23 = vadd.f32 %v4992_v15, %v6846_v18 }
 0x8b7   : > { %v3011_v25 = vpop.f32.mrf.mxu1 }
 0x8b8   : > { %v3012_v44 = vadd.f32 %v6846_v18, %v3011_v25  ;;  %v3128_v2 = vmax.f32 %v3020_v23, 0.0 }
 0x8b9   : > { %v4993_v6 = vpop.f32.mrf.mxu1 }
 0x8ba   : > { %v3023_v45 = vadd.f32 %v4993_v6, %v6846_v18  ;;  %v3126_v9 = vmax.f32 %v3012_v44, 0.0 }
 0x8bb   : > { %v3014_v32 = vpop.f32.mrf.mxu1 }
 0x8bc   : > { %v3015_v10 = vadd.f32 %v6846_v18, %v3014_v32  ;;  %v3129_v1 = vmax.f32 %v3023_v45, 0.0 }
 0x8be   : > { %v3127_v20 = vmax.f32 %v3015_v10, 0.0  ;;  %v3157_v63 = vpack.c.bf16 %v3129_v1, %v3128_v2 }
 0x8c0   : > { %v3156_v33 = vpack.c.bf16 %v3127_v20, %v3126_v9 }
 0x8c2   : > { %5038 = vmatprep.mubr.bf16.mxu1 %v3156_v33 }
 0x8c3   : > { %5039 = vmatmul.mubr.bf16.gmra.mxu1 %v3157_v63 }
 0x8c5   : > { %v4996_v36 = vpop.f32.mrf.mxu1 }
 0x8c6   : > { %v3036_v50 = vadd.f32 %v4996_v36, %v6846_v18 }
 0x8c7   : > { %v3027_v53 = vpop.f32.mrf.mxu1 }
 0x8c8   : > { %v3028_v19 = vadd.f32 %v6846_v18, %v3027_v53  ;;  %v3132_v45 = vmax.f32 %v3036_v50, 0.0 }
 0x8c9   : > { %v4997_v46 = vpop.f32.mrf.mxu1 }
 0x8ca   : > { %v3039_v38 = vadd.f32 %v4997_v46, %v6846_v18  ;;  %v3130_v6 = vmax.f32 %v3028_v19, 0.0 }
 0x8cb   : > { %v3030_v59 = vpop.f32.mrf.mxu1 }
 0x8cc   : > { %v3031_v15 = vadd.f32 %v6846_v18, %v3030_v59  ;;  %v3133_v25 = vmax.f32 %v3039_v38, 0.0 }
 0x8ce   : > { %v3131_v44 = vmax.f32 %v3031_v15, 0.0  ;;  %v3159_v32 = vpack.c.bf16 %v3133_v25, %v3132_v45 }
 0x8d0   : > { %v3158_v23 = vpack.c.bf16 %v3131_v44, %v3130_v6 }
 0x8d2   : > { %5042 = vmatprep.mubr.bf16.mxu1 %v3158_v23 }
 0x8d3   : > { %5043 = vmatmul.mubr.bf16.gmra.mxu1 %v3159_v32 }
 0x8d5   : > { %v5000_v10 = vpop.f32.mrf.mxu1 }
 0x8d6   : > { %v3052_v33 = vadd.f32 %v5000_v10, %v6846_v18 }
 0x8d7   : > { %v3043_v1 = vpop.f32.mrf.mxu1 }
 0x8d8   : > { %v3044_v20 = vadd.f32 %v6846_v18, %v3043_v1  ;;  %v3136_v38 = vmax.f32 %v3052_v33, 0.0 }
 0x8d9   : > { %v5001_v9 = vpop.f32.mrf.mxu1 }
 0x8da   : > { %v3055_v2 = vadd.f32 %v5001_v9, %v6846_v18  ;;  %v3134_v46 = vmax.f32 %v3044_v20, 0.0 }
 0x8db   : > { %v3046_v63 = vpop.f32.mrf.mxu1 }
 0x8dc   : > { %v3047_v36 = vadd.f32 %v6846_v18, %v3046_v63  ;;  %v3137_v53 = vmax.f32 %v3055_v2, 0.0 }
 0x8de   : > { %v3135_v19 = vmax.f32 %v3047_v36, 0.0  ;;  %v3161_v59 = vpack.c.bf16 %v3137_v53, %v3136_v38 }
 0x8e0   : > { %v3160_v50 = vpack.c.bf16 %v3135_v19, %v3134_v46 }
 0x8e2   : > { %5046 = vmatprep.mubr.bf16.mxu1 %v3160_v50 }
 0x8e3   : > { %5047 = vmatmul.mubr.bf16.gmra.mxu1 %v3161_v59 }
 0x8e5   : > { %v5004_v15 = vpop.f32.mrf.mxu1 }
 0x8e6   : > { %v3068_v23 = vadd.f32 %v5004_v15, %v6846_v18 }
 0x8e7   : > { %v3059_v25 = vpop.f32.mrf.mxu1 }
 0x8e8   : > { %v3060_v44 = vadd.f32 %v6846_v18, %v3059_v25  ;;  %v3140_v2 = vmax.f32 %v3068_v23, 0.0 }
 0x8e9   : > { %v5005_v6 = vpop.f32.mrf.mxu1 }
 0x8ea   : > { %v3071_v45 = vadd.f32 %v5005_v6, %v6846_v18  ;;  %v3138_v9 = vmax.f32 %v3060_v44, 0.0 }
 0x8eb   : > { %v3062_v32 = vpop.f32.mrf.mxu1 }
 0x8ec   : > { %v3063_v10 = vadd.f32 %v6846_v18, %v3062_v32  ;;  %v3141_v1 = vmax.f32 %v3071_v45, 0.0 }
 0x8ee   : > { %v3139_v20 = vmax.f32 %v3063_v10, 0.0  ;;  %v3163_v63 = vpack.c.bf16 %v3141_v1, %v3140_v2 }
 0x8f0   : > { %v3162_v33 = vpack.c.bf16 %v3139_v20, %v3138_v9 }
 0x8f2   : > { %5050 = vmatprep.mubr.bf16.mxu1 %v3162_v33 }
 0x8f3   : > { %5051 = vmatmul.mubr.bf16.gmra.mxu1 %v3163_v63 }
 0x8f5   : > { %v5008_v36 = vpop.f32.mrf.mxu1 }
 0x8f6   : > { %v3084_v50 = vadd.f32 %v5008_v36, %v6846_v18 }
 0x8f7   : > { %v3075_v53 = vpop.f32.mrf.mxu1 }
 0x8f8   : > { %v3076_v19 = vadd.f32 %v6846_v18, %v3075_v53  ;;  %v3144_v45 = vmax.f32 %v3084_v50, 0.0 }
 0x8f9   : > { %v5009_v46 = vpop.f32.mrf.mxu1 }
 0x8fa   : > { %v3087_v38 = vadd.f32 %v5009_v46, %v6846_v18  ;;  %v3142_v6 = vmax.f32 %v3076_v19, 0.0 }
 0x8fb   : > { %v3078_v59 = vpop.f32.mrf.mxu1 }
 0x8fc   : > { %v3079_v15 = vadd.f32 %v6846_v18, %v3078_v59  ;;  %v3145_v25 = vmax.f32 %v3087_v38, 0.0 }
 0x8fe   : > { %v3143_v44 = vmax.f32 %v3079_v15, 0.0  ;;  %v3165_v32 = vpack.c.bf16 %v3145_v25, %v3144_v45 }
 0x900   : > { %v3164_v23 = vpack.c.bf16 %v3143_v44, %v3142_v6 }
 0x902   : > { %5054 = vmatprep.mubr.bf16.mxu1 %v3164_v23 }
 0x903   : > { %5055 = vmatmul.mubr.bf16.gmra.mxu1 %v3165_v32 }
 0x905   : > { %v5012_v10 = vpop.f32.mrf.mxu1 }
 0x906   : > { %v3100_v33 = vadd.f32 %v5012_v10, %v6846_v18 }
 0x907   : > { %v3091_v1 = vpop.f32.mrf.mxu1 }
 0x908   : > { %v3092_v20 = vadd.f32 %v6846_v18, %v3091_v1  ;;  %v3148_v38 = vmax.f32 %v3100_v33, 0.0 }
 0x909   : > { %v5013_v9 = vpop.f32.mrf.mxu1 }
 0x90a   : > { %v3103_v2 = vadd.f32 %v5013_v9, %v6846_v18  ;;  %v3146_v46 = vmax.f32 %v3092_v20, 0.0 }
 0x90b   : > { %v3094_v63 = vpop.f32.mrf.mxu1 }
 0x90c   : > { %v3095_v36 = vadd.f32 %v6846_v18, %v3094_v63  ;;  %v3149_v53 = vmax.f32 %v3103_v2, 0.0 }
 0x90e   : > { %v3147_v19 = vmax.f32 %v3095_v36, 0.0  ;;  %v3167_v59 = vpack.c.bf16 %v3149_v53, %v3148_v38  ;;  %v6883_v36 = vld [vmem:[%s7231_s7 + $0x2] ss:$0 sm:$0xff] }
 0x910   : > { %v3166_v50 = vpack.c.bf16 %v3147_v19, %v3146_v46 }
 0x912   : > { %5058 = vmatprep.mubr.bf16.mxu1 %v3166_v50 }
 0x913   : > { %5059 = vmatmul.mubr.bf16.gmra.mxu1 %v3167_v59  ;;  %v6895_v59 = vld [vmem:[%s7319_s11 + $0x2] ss:$0 sm:$0xff] }
 0x915   : > { %v5016_v15 = vpop.f32.mrf.mxu1 }
 0x916   : > { %v3116_v23 = vadd.f32 %v5016_v15, %v6846_v18 }
 0x917   : > { %v3107_v25 = vpop.f32.mrf.mxu1 }
 0x918   : > { %v3108_v44 = vadd.f32 %v6846_v18, %v3107_v25  ;;  %v3152_v2 = vmax.f32 %v3116_v23, 0.0 }
 0x919   : > { %v5017_v6 = vpop.f32.mrf.mxu1 }
 0x91a   : > { %v3119_v45 = vadd.f32 %v5017_v6, %v6846_v18  ;;  %v3150_v9 = vmax.f32 %v3108_v44, 0.0 }
 0x91b   : > { %v3110_v32 = vpop.f32.mrf.mxu1 }
 0x91c   : > { %v3111_v10 = vadd.f32 %v6846_v18, %v3110_v32  ;;  %v3153_v1 = vmax.f32 %v3119_v45, 0.0  ;;  %v6889_v18 = vld [vmem:[%s7232_s8 + $0x2] ss:$0 sm:$0xff]  ;;  %v2665_v45 = vmax.f32 %v6485_v39, %v6595_v0  ;;  %v2666_v39 = vmax.f32 %v6474_v40, %v6598_v13 }
 0x91e   : > { %v3151_v20 = vmax.f32 %v3111_v10, 0.0  ;;  %v3169_v63 = vpack.c.bf16 %v3153_v1, %v3152_v2 }
 0x920   : > { %v3168_v33 = vpack.c.bf16 %v3151_v20, %v3150_v9  ;;  %v2663_v20 = vmax.f32 %v6499_v22, %v6602_v16 }
 0x922   : > { %5062 = vmatprep.mubr.bf16.mxu1 %v3168_v33 }
 0x923   : > { %5063 = vmatmul.mubr.bf16.gmra.mxu1 %v3169_v63 }
 0x973   : > { %v5036_v53 = vpop.f32.mrf.mxu1 }
 0x974   : > { %v3286_v46 = vadd.f32 %v5036_v53, %v6883_v36 }
 0x975   : > { %v3277_v19 = vpop.f32.mrf.mxu1 }
 0x976   : > { %v3406_v38 = vmax.f32 %v3286_v46, 0.0  ;;  %v3278_v50 = vadd.f32 %v6883_v36, %v3277_v19 }
 0x977   : > { %v5037_v15 = vpop.f32.mrf.mxu1 }
 0x978   : > { %v3446_v25 = vmul.f32 %v6889_v18, %v3406_v38  ;;  %v3404_v6 = vmax.f32 %v3278_v50, 0.0  ;;  %v3289_v44 = vadd.f32 %v5037_v15, %v6883_v36  ;;  %v2664_v38 = vmax.f32 %v6494_v60, %v6607_v54 }
 0x979   : > { %v3280_v23 = vpop.f32.mrf.mxu1 }
 0x97a   : > { %v3486_v32 = vadd.f32 %v6895_v59, %v3446_v25  ;;  %v3444_v10 = vmul.f32 %v6889_v18, %v3404_v6  ;;  %v3407_v1 = vmax.f32 %v3289_v44, 0.0  ;;  %v3281_v9 = vadd.f32 %v6883_v36, %v3280_v23 }
 0x97c   : > { %v6906_v2 = vmax.f32 %v2665_v45, %v3486_v32  ;;  %v3484_v33 = vadd.f32 %v6895_v59, %v3444_v10  ;;  %v3447_v63 = vmul.f32 %v6889_v18, %v3407_v1  ;;  %v3405_v53 = vmax.f32 %v3281_v9, 0.0 }
 0x97d   : > { %v2669_v10 = vmax.f32 %v6446_v21, %v6619_v58  ;;  %v2670_v21 = vmax.f32 %v6431_v8, %v6622_v62 }
 0x97e   : > { %v6912_v0 = vmax.f32 %v2663_v20, %v3484_v33  ;;  %v3487_v46 = vadd.f32 %v6895_v59, %v3447_v63  ;;  %v3445_v19 = vmul.f32 %v6889_v18, %v3405_v53  ;;  %v2667_v53 = vmax.f32 %v6467_v55, %v6626_v3 }
 0x980   : > { %v6918_v22 = vmax.f32 %v2666_v39, %v3487_v46  ;;  %v3485_v16 = vadd.f32 %v6895_v59, %v3445_v19 }
 0x982   : > { %v6921_v50 = vmax.f32 %v2664_v38, %v3485_v16  ;;  %v3551_v15 = vpack.c.bf16 %v6918_v22, %v6906_v2  ;;  %v5348_v2 = vld [vmem:[#allocation12] sm:$0xff]  }
 0x983   : > { %v5040_v25 = vpop.f32.mrf.mxu1  ;;  %v5349_v22 = vld [vmem:[#allocation15 + $0x38] sm:$0xff]  }
 0x984   : > { %v3302_v40 = vadd.f32 %v5040_v25, %v6883_v36 }
 0x985   : > { %v3293_v6 = vpop.f32.mrf.mxu1 }
 0x986   : > { %v3410_v44 = vmax.f32 %v3302_v40, 0.0  ;;  %v3294_v45 = vadd.f32 %v6883_v36, %v3293_v6  ;;  %v2668_v40 = vmax.f32 %v6457_v35, %v6631_v43  ;;  %v6954_v6 = vld [vmem:[%s6128_s17] sm:$0xff]  ;;  %v5341_v43 = vld [vmem:[#allocation12 + $0x38] sm:$0xff]   ;;  %s4113_s17 = sshll.u32 %s7381_s24, 3 }
 0x987   : > { %v5041_v60 = vpop.f32.mrf.mxu1  ;;  %s721_s21 = scalar_lea.vmem %s7372_s30, %s4113_s17  ;;  %s717_s26 = scalar_lea.vmem %s7373_s27, %s4113_s17 }
 0x988   : > { %v3450_v54 = vmul.f32 %v6889_v18, %v3410_v44  ;;  %v3408_v23 = vmax.f32 %v3294_v45, 0.0  ;;  %v3305_v32 = vadd.f32 %v5041_v60, %v6883_v36  ;;  %v4232_v44 = vcombine.high %v6954_v6, %v6954_v6 }
 0x989   : > { %v3296_v1 = vpop.f32.mrf.mxu1 }
 0x98a   : > { %v3490_v9 = vadd.f32 %v6895_v59, %v3450_v54  ;;  %v3448_v20 = vmul.f32 %v6889_v18, %v3408_v23  ;;  %v3411_v33 = vmax.f32 %v3305_v32, 0.0  ;;  %v3297_v63 = vadd.f32 %v6883_v36, %v3296_v1  ;;  %3605 = vmatprep.mubr.bf16.mxu0 %v4232_v44  ;;  %v5342_v1 = vld [vmem:[#allocation12 + $0x30] sm:$0xff]  }
 0x98b   : > { %v7278_v23 = vmov 0.0   ;;  %v2674_v44 = vmax.f32 %v6374_v41, %v6723_v12 }
 0x98c   : > { %v6938_v39 = vmax.f32 %v2669_v10, %v3490_v9  ;;  %v3488_v46 = vadd.f32 %v6895_v59, %v3448_v20  ;;  %v3451_v19 = vmul.f32 %v6889_v18, %v3411_v33  ;;  %v3409_v38 = vmax.f32 %v3297_v63, 0.0  ;;  %5066 = vmatprep.subr.bf16.mxu1 %v7278_v23 }
 0x98d   : > { %5067 = vmatpush3.bf16.msra.mxu1 %v5341_v43 }
 0x98e   : > { %v6944_v58 = vmax.f32 %v2667_v53, %v3488_v46  ;;  %v3491_v16 = vadd.f32 %v6895_v59, %v3451_v19  ;;  %v3449_v25 = vmul.f32 %v6889_v18, %v3409_v38  ;;  %5068 = vmatprep.subr.bf16.mxu1 %v7278_v23 }
 0x990   : > { %v6950_v55 = vmax.f32 %v2670_v21, %v3491_v16  ;;  %v3489_v3 = vadd.f32 %v6895_v59, %v3449_v25  ;;  %v5343_v21 = vld [vmem:[#allocation12 + $0x28] sm:$0xff]  }
 0x991   : > { %5069 = vmatpush3.bf16.msra.mxu1 %v5342_v1 }
 0x992   : > { %v6958_v45 = vmax.f32 %v2668_v40, %v3489_v3  ;;  %v3553_v8 = vpack.c.bf16 %v6950_v55, %v6938_v39  ;;  %5070 = vmatprep.subr.bf16.mxu1 %v7278_v23  ;;  %v2673_v3 = vmax.f32 %v6393_v52, %v6737_v37  ;;  %v7369_v39 = vmov 0.0   ;;  %v5353_v55 = vld [vmem:[#allocation15 + $0x18] sm:$0xff]  }
 0x993   : > { %v5044_v62 = vpop.f32.mrf.mxu1  ;;  %5082 = vmatprep.mubr.msk.bf16.mxu1 %vm5767_vm0, %v7369_v39 }
 0x994   : > { %v3318_v60 = vadd.f32 %v5044_v62, %v6883_v36  ;;  %v3552_v35 = vpack.c.bf16 %v6958_v45, %v6944_v58  ;;  %v5347_v58 = vld [vmem:[#allocation12 + $0x8] sm:$0xff]  }
 0x995   : > { %v3309_v54 = vpop.f32.mrf.mxu1  ;;  %5071 = vmatpush3.bf16.msra.mxu1 %v5343_v21 }
 0x996   : > { %v3414_v32 = vmax.f32 %v3318_v60, 0.0  ;;  %v3310_v10 = vadd.f32 %v6883_v36, %v3309_v54  ;;  %v5344_v54 = vld [vmem:[#allocation12 + $0x20] sm:$0xff]   ;;  %5072 = vmatprep.subr.bf16.mxu1 %v7278_v23 }
 0x997   : > { %v5045_v9 = vpop.f32.mrf.mxu1 }
 0x998   : > { %v3454_v20 = vmul.f32 %v6889_v18, %v3414_v32  ;;  %v3412_v33 = vmax.f32 %v3310_v10, 0.0  ;;  %v3321_v63 = vadd.f32 %v5045_v9, %v6883_v36  ;;  %v2671_v32 = vmax.f32 %v6420_v7, %v6760_v57  ;;  %v5345_v7 = vld [vmem:[#allocation12 + $0x18] sm:$0xff]  }
 0x999   : > { %v3312_v53 = vpop.f32.mrf.mxu1  ;;  %v2672_v10 = vmax.f32 %v6405_v14, %v6749_v49  ;;  %5073 = vmatpush3.bf16.msra.mxu1 %v5344_v54  ;;  %v2678_v54 = vmax.f32 %v6320_v48, %v6672_v56 }
 0x99a   : > { %v3452_v46 = vmul.f32 %v6889_v18, %v3412_v33  ;;  %v3415_v19 = vmax.f32 %v3321_v63, 0.0  ;;  %v3313_v38 = vadd.f32 %v6883_v36, %v3312_v53  ;;  %v3494_v16 = vadd.f32 %v6895_v59, %v3454_v20  ;;  %5074 = vmatprep.subr.bf16.mxu1 %v7278_v23  ;;  %v5346_v53 = vld [vmem:[#allocation12 + $0x10] sm:$0xff]  }
 0x99c   : > { %v3455_v25 = vmul.f32 %v6889_v18, %v3415_v19  ;;  %v3413_v40 = vmax.f32 %v3313_v38, 0.0  ;;  %v3492_v62 = vadd.f32 %v6895_v59, %v3452_v46  ;;  %v6987_v52 = vmax.f32 %v2673_v3, %v3494_v16 }
 0x99d   : > { %5075 = vmatpush3.bf16.msra.mxu1 %v5345_v7  ;;  %v2675_v7 = vmax.f32 %v6365_v28, %v6714_v30 }
 0x99e   : > { %v3495_v60 = vadd.f32 %v6895_v59, %v3455_v25  ;;  %v3453_v43 = vmul.f32 %v6889_v18, %v3413_v40  ;;  %v6992_v12 = vmax.f32 %v2671_v32, %v3492_v62  ;;  %5076 = vmatprep.subr.bf16.mxu1 %v7278_v23 }
 0x9a0   : > { %v6989_v37 = vmax.f32 %v2674_v44, %v3495_v60  ;;  %v3493_v41 = vadd.f32 %v6895_v59, %v3453_v43  ;;  %v2677_v43 = vmax.f32 %v6333_v4, %v6685_v27 }
 0x9a1   : > { %5077 = vmatpush3.bf16.msra.mxu1 %v5346_v53 }
 0x9a2   : > { %v6994_v1 = vmax.f32 %v2672_v10, %v3493_v41  ;;  %v3555_v9 = vpack.c.bf16 %v6989_v37, %v6987_v52  ;;  %5078 = vmatprep.subr.bf16.mxu1 %v7278_v23 }
 0x9a3   : > { %v5048_v57 = vpop.f32.mrf.mxu1 }
 0x9a4   : > { %v3334_v14 = vadd.f32 %v5048_v57, %v6883_v36  ;;  %v3554_v49 = vpack.c.bf16 %v6994_v1, %v6992_v12  ;;  %v2676_v57 = vmax.f32 %v6350_v17, %v6701_v61 }
 0x9a5   : > { %v3325_v20 = vpop.f32.mrf.mxu1  ;;  %5079 = vmatpush3.bf16.msra.mxu1 %v5347_v58 }
 0x9a6   : > { %v3418_v33 = vmax.f32 %v3334_v14, 0.0  ;;  %v3326_v63 = vadd.f32 %v6883_v36, %v3325_v20  ;;  %5080 = vmatprep.subr.bf16.mxu1 %v7369_v39 }
 0x9a7   : > { %v5049_v46 = vpop.f32.mrf.mxu1 }
 0x9a8   : > { %v3458_v19 = vmul.f32 %v6889_v18, %v3418_v33  ;;  %v3416_v38 = vmax.f32 %v3326_v63, 0.0  ;;  %v3337_v21 = vadd.f32 %v5049_v46, %v6883_v36 }
 0x9a9   : > { %v3328_v16 = vpop.f32.mrf.mxu1  ;;  %5081 = vmatpush3.bf16.msra.mxu1 %v5348_v2 }
 0x9aa   : > { %v3456_v25 = vmul.f32 %v6889_v18, %v3416_v38  ;;  %v3419_v40 = vmax.f32 %v3337_v21, 0.0  ;;  %v3329_v3 = vadd.f32 %v6883_v36, %v3328_v16  ;;  %v3498_v44 = vadd.f32 %v6895_v59, %v3458_v19 }
 0x9ac   : > { %v3459_v62 = vmul.f32 %v6889_v18, %v3419_v40  ;;  %v3417_v60 = vmax.f32 %v3329_v3, 0.0  ;;  %v3496_v32 = vadd.f32 %v6895_v59, %v3456_v25  ;;  %v7022_v14 = vmax.f32 %v2677_v43, %v3498_v44  ;;  %v7346_v43 = vld [vmem:[#allocation40_spill] sm:$0xff] }
 0x9ae   : > { %v3499_v10 = vadd.f32 %v6895_v59, %v3459_v62  ;;  %v3457_v41 = vmul.f32 %v6889_v18, %v3417_v60  ;;  %v7027_v27 = vmax.f32 %v2675_v7, %v3496_v32  ;;  %v2681_v60 = vmax.f32 %v6470_v34, %v6790_v26  ;;  %v7347_v7 = vld [vmem:[#allocation42_spill] sm:$0xff] }
 0x9b0   : > { %v7024_v20 = vmax.f32 %v2678_v54, %v3499_v10  ;;  %v3497_v4 = vadd.f32 %v6895_v59, %v3457_v41  ;;  %v2682_v54 = vmax.f32 %v7346_v43, %v6781_v29 }
 0x9b2   : > { %v7029_v48 = vmax.f32 %v2676_v57, %v3497_v4  ;;  %v3557_v56 = vpack.c.bf16 %v7024_v20, %v7022_v14  ;;  %v2679_v57 = vmax.f32 %v7347_v7, %v6802_v31  ;;  %v7348_v4 = vld [vmem:[#allocation41_spill] sm:$0xff]  ;;  %v5356_v14 = vld [vmem:[#allocation15] sm:$0xff]   ;;  %v4233_v20 = vld [vmem:[#allocation13] ss:$0 sm:$0xff] }
 0x9b3   : > { %v5052_v33 = vpop.f32.mrf.mxu1 }
 0x9b4   : > { %v3350_v63 = vadd.f32 %v5052_v33, %v6883_v36  ;;  %v3556_v28 = vpack.c.bf16 %v7029_v48, %v7027_v27  ;;  %v2680_v33 = vmax.f32 %v7348_v4, %v6794_v24 }
 0x9b5   : > { %v3341_v17 = vpop.f32.mrf.mxu1 }
 0x9b6   : > { %v3422_v61 = vmax.f32 %v3350_v63, 0.0  ;;  %v3342_v30 = vadd.f32 %v6883_v36, %v3341_v17 }
 0x9b7   : > { %v5053_v53 = vpop.f32.mrf.mxu1 }
 0x9b8   : > { %v3462_v46 = vmul.f32 %v6889_v18, %v3422_v61  ;;  %v3420_v19 = vmax.f32 %v3342_v30, 0.0  ;;  %v3353_v38 = vadd.f32 %v5053_v53, %v6883_v36 }
 0x9b9   : > { %v3344_v21 = vpop.f32.mrf.mxu1 }
 0x9ba   : > { %v3460_v16 = vmul.f32 %v6889_v18, %v3420_v19  ;;  %v3423_v25 = vmax.f32 %v3353_v38, 0.0  ;;  %v3345_v40 = vadd.f32 %v6883_v36, %v3344_v21  ;;  %v3502_v3 = vadd.f32 %v6895_v59, %v3462_v46 }
 0x9bc   : > { %v3463_v44 = vmul.f32 %v6889_v18, %v3423_v25  ;;  %v3421_v62 = vmax.f32 %v3345_v40, 0.0  ;;  %v3500_v32 = vadd.f32 %v6895_v59, %v3460_v16  ;;  %v7055_v17 = vmax.f32 %v2681_v60, %v3502_v3 }
 0x9be   : > { %v3503_v10 = vadd.f32 %v6895_v59, %v3463_v44  ;;  %v3461_v41 = vmul.f32 %v6889_v18, %v3421_v62  ;;  %v7061_v26 = vmax.f32 %v2679_v57, %v3500_v32  ;;  %v7349_v32 = vld [vmem:[#allocation37_spill] sm:$0xff] }
 0x9c0   : > { %v3501_v63 = vadd.f32 %v6895_v59, %v3461_v41  ;;  %v7057_v34 = vmax.f32 %v2682_v54, %v3503_v10  ;;  %v2685_v10 = vmax.f32 %v7349_v32, %v6765_v47  ;;  %v7350_v41 = vld [vmem:[#allocation36_spill] sm:$0xff] }
 0x9c1   : > { %v2686_v7 = vmax.f32 %v7350_v41, %v6754_v51 }
 0x9c2   : > { %v3559_v29 = vpack.c.bf16 %v7057_v34, %v7055_v17  ;;  %v7063_v61 = vmax.f32 %v2680_v33, %v3501_v63  ;;  %v7351_v63 = vld [vmem:[#allocation39_spill] sm:$0xff] }
 0x9c3   : > { %v5056_v30 = vpop.f32.mrf.mxu1 }
 0x9c4   : > { %v3366_v53 = vadd.f32 %v5056_v30, %v6883_v36  ;;  %v3558_v31 = vpack.c.bf16 %v7063_v61, %v7061_v26  ;;  %v2683_v30 = vmax.f32 %v7351_v63, %v6778_v5  ;;  %v3842_v26 = vlaneseq }
 0x9c5   : > { %v3357_v24 = vpop.f32.mrf.mxu1 }
 0x9c6   : > { %v3426_v46 = vmax.f32 %v3366_v53, 0.0  ;;  %v3358_v19 = vadd.f32 %v6883_v36, %v3357_v24  ;;  %v7352_v53 = vld [vmem:[#allocation38_spill] sm:$0xff]  ;;  %v3843_v61 = vand.u32 127, %v3842_v26 }
 0x9c7   : > { %v5057_v38 = vpop.f32.mrf.mxu1  ;;  %v2684_v24 = vmax.f32 %v7352_v53, %v6772_v42  ;;  %v7355_v53 = vld [vmem:[#allocation32_spill] sm:$0xff] }
 0x9c8   : > { %v3466_v21 = vmul.f32 %v6889_v18, %v3426_v46  ;;  %v3424_v16 = vmax.f32 %v3358_v19, 0.0  ;;  %v3369_v25 = vadd.f32 %v5057_v38, %v6883_v36  ;;  %vm3844_vm2 = vcmp.lt.s32.totalorder %v3843_v61, 4 }
 0x9c9   : > { %v3360_v40 = vpop.f32.mrf.mxu1 }
 0x9ca   : > { %v3464_v3 = vmul.f32 %v6889_v18, %v3424_v16  ;;  %v3427_v44 = vmax.f32 %v3369_v25, 0.0  ;;  %v3361_v62 = vadd.f32 %v6883_v36, %v3360_v40  ;;  %v3506_v60 = vadd.f32 %v6895_v59, %v3466_v21 }
 0x9cc   : > { %v3467_v43 = vmul.f32 %v6889_v18, %v3427_v44  ;;  %v3425_v54 = vmax.f32 %v3361_v62, 0.0  ;;  %v3504_v57 = vadd.f32 %v6895_v59, %v3464_v3  ;;  %v7087_v19 = vmax.f32 %v2685_v10, %v3506_v60 }
 0x9ce   : > { %v3507_v4 = vadd.f32 %v6895_v59, %v3467_v43  ;;  %v3465_v33 = vmul.f32 %v6889_v18, %v3425_v54  ;;  %v7093_v38 = vmax.f32 %v2683_v30, %v3504_v57  ;;  %v7354_v30 = vld [vmem:[#allocation47_spill] sm:$0xff] }
 0x9d0   : > { %v3505_v46 = vadd.f32 %v6895_v59, %v3465_v33  ;;  %v7089_v47 = vmax.f32 %v2686_v7, %v3507_v4  ;;  %v7353_v33 = vld [vmem:[#allocation33_spill] sm:$0xff] }
 0x9d1   : > { %v2689_v63 = vmax.f32 %v7353_v33, %v6719_v11 }
 0x9d2   : > { %v3561_v51 = vpack.c.bf16 %v7089_v47, %v7087_v19  ;;  %v7095_v21 = vmax.f32 %v2684_v24, %v3505_v46  ;;  %v2690_v24 = vmax.f32 %v7355_v53, %v7354_v30 }
 0x9d3   : > { %v5060_v16 = vpop.f32.mrf.mxu1 }
 0x9d4   : > { %v3382_v25 = vadd.f32 %v5060_v16, %v6883_v36  ;;  %v3560_v5 = vpack.c.bf16 %v7095_v21, %v7093_v38 }
 0x9d5   : > { %v3373_v42 = vpop.f32.mrf.mxu1 }
 0x9d6   : > { %v3430_v40 = vmax.f32 %v3382_v25, 0.0  ;;  %v3374_v3 = vadd.f32 %v6883_v36, %v3373_v42  ;;  %v7356_v42 = vld [vmem:[#allocation49_spill] sm:$0xff] }
 0x9d7   : > { %v5061_v44 = vpop.f32.mrf.mxu1 }
 0x9d8   : > { %v3470_v62 = vmul.f32 %v6889_v18, %v3430_v40  ;;  %v3428_v60 = vmax.f32 %v3374_v3, 0.0  ;;  %v3385_v43 = vadd.f32 %v5061_v44, %v6883_v36  ;;  %v7357_v40 = vld [vmem:[#allocation35_spill] sm:$0xff]  ;;  %v7358_v44 = vld [vmem:[#allocation48_spill] sm:$0xff] }
 0x9d9   : > { %v3376_v54 = vpop.f32.mrf.mxu1  ;;  %v2687_v3 = vmax.f32 %v7357_v40, %v7356_v42 }
 0x9da   : > { %v3468_v32 = vmul.f32 %v6889_v18, %v3428_v60  ;;  %v3431_v10 = vmax.f32 %v3385_v43, 0.0  ;;  %v3377_v41 = vadd.f32 %v6883_v36, %v3376_v54  ;;  %v3510_v7 = vadd.f32 %v6895_v59, %v3470_v62  ;;  %v7359_v62 = vld [vmem:[#allocation34_spill] sm:$0xff] }
 0x9db   : > { %v2688_v60 = vmax.f32 %v7359_v62, %v7358_v44  ;;  %v7360_v62 = vld [vmem:[#allocation43_spill] sm:$0xff] }
 0x9dc   : > { %v3471_v57 = vmul.f32 %v6889_v18, %v3431_v10  ;;  %v3429_v4 = vmax.f32 %v3377_v41, 0.0  ;;  %v3508_v46 = vadd.f32 %v6895_v59, %v3468_v32  ;;  %v3542_v54 = vmax.f32 %v2689_v63, %v3510_v7 }
 0x9de   : > { %v3511_v16 = vadd.f32 %v6895_v59, %v3471_v57  ;;  %v3469_v25 = vmul.f32 %v6889_v18, %v3429_v4  ;;  %v3540_v41 = vmax.f32 %v2687_v3, %v3508_v46 }
 0x9e0   : > { %v3509_v43 = vadd.f32 %v6895_v59, %v3469_v25  ;;  %v3543_v10 = vmax.f32 %v2690_v24, %v3511_v16 }
 0x9e2   : > { %v3563_v11 = vpack.c.bf16 %v3543_v10, %v3542_v54  ;;  %v3541_v33 = vmax.f32 %v2688_v60, %v3509_v43  ;;  %v7361_v60 = vld [vmem:[#allocation28_spill] sm:$0xff]  ;;  %v7363_v10 = vld [vmem:[#allocation29_spill] sm:$0xff] }
 0x9e3   : > { %v5064_v30 = vpop.f32.mrf.mxu1  ;;  %v2693_v43 = vmax.f32 %v7361_v60, %v7360_v62  ;;  %v7362_v54 = vld [vmem:[#allocation44_spill] sm:$0xff] }
 0x9e4   : > { %v3398_v32 = vadd.f32 %v5064_v30, %v6883_v36  ;;  %v3562_v53 = vpack.c.bf16 %v3541_v33, %v3540_v41  ;;  %v7364_v30 = vld [vmem:[#allocation45_spill] sm:$0xff] }
 0x9e5   : > { %v3389_v57 = vpop.f32.mrf.mxu1 }
 0x9e6   : > { %v3434_v23 = vmax.f32 %v3398_v32, 0.0  ;;  %v3390_v4 = vadd.f32 %v6883_v36, %v3389_v57  ;;  %v7365_v32 = vld [vmem:[#allocation30_spill] sm:$0xff] }
 0x9e7   : > { %v5065_v13 = vpop.f32.mrf.mxu1  ;;  %v7366_v57 = vld [vmem:[#allocation46_spill] sm:$0xff] }
 0x9e8   : > { %v3474_v42 = vmul.f32 %v6889_v18, %v3434_v23  ;;  %v3432_v40 = vmax.f32 %v3390_v4, 0.0  ;;  %v3401_v44 = vadd.f32 %v5065_v13, %v6883_v36  ;;  %v2694_v23 = vmax.f32 %v7363_v10, %v7362_v54  ;;  %v7367_v4 = vld [vmem:[#allocation31_spill] sm:$0xff] }
 0x9e9   : > { %v3392_v25 = vpop.f32.mrf.mxu1 }
 0x9ea   : > { %v3472_v7 = vmul.f32 %v6889_v18, %v3432_v40  ;;  %v3435_v63 = vmax.f32 %v3401_v44, 0.0  ;;  %v3393_v24 = vadd.f32 %v6883_v36, %v3392_v25  ;;  %v3514_v46 = vadd.f32 %v6895_v59, %v3474_v42 }
 0x9eb   : > { %v2691_v36 = vmax.f32 %v7365_v32, %v7364_v30  ;;  %v2692_v42 = vmax.f32 %v7367_v4, %v7366_v57 }
 0x9ec   : > { %v3475_v16 = vmul.f32 %v6889_v18, %v3435_v63  ;;  %v3433_v3 = vmax.f32 %v3393_v24, 0.0  ;;  %v3512_v41 = vadd.f32 %v6895_v59, %v3472_v7  ;;  %v3546_v44 = vmax.f32 %v2693_v43, %v3514_v46 }
 0x9ee   : > { %v3515_v13 = vadd.f32 %v6895_v59, %v3475_v16  ;;  %v3473_v33 = vmul.f32 %v6889_v18, %v3433_v3  ;;  %v3544_v24 = vmax.f32 %v2691_v36, %v3512_v41  ;;  %v4231_v18 = vcombine.low %v6954_v6, %v6954_v6  ;;  %v5354_v6 = vld [vmem:[#allocation15 + $0x10] sm:$0xff]  }
 0x9f0   : > { %v3513_v40 = vadd.f32 %v6895_v59, %v3473_v33  ;;  %v3547_v25 = vmax.f32 %v2694_v23, %v3515_v13  ;;  %v7368_v59 = vpack.c.bf16 %v6921_v50, %v6912_v0  ;;  %v5351_v0 = vld [vmem:[#allocation15 + $0x28] sm:$0xff]   ;;  %v5352_v50 = vld [vmem:[#allocation15 + $0x20] sm:$0xff]  }
 0x9f2   : > { %v3565_v63 = vpack.c.bf16 %v3547_v25, %v3546_v44  ;;  %v3545_v62 = vmax.f32 %v2692_v42, %v3513_v40 }
 0x9f4   : > { %4738 = vmatprep.subr.bf16.mxu0 %v3565_v63  ;;  %v3564_v60 = vpack.c.bf16 %v3545_v62, %v3544_v24 }
 0x9f5   : > { %4739 = vmatpush3.bf16.msra.mxu0 %v3557_v56 }
 0x9f6   : > { %4740 = vmatprep.subr.bf16.mxu0 %v3564_v60 }
 0x9f9   : > { %4741 = vmatpush3.bf16.msra.mxu0 %v3556_v28 }
 0x9fa   : > { %4742 = vmatprep.subr.bf16.mxu0 %v3563_v11 }
 0x9fd   : > { %4743 = vmatpush3.bf16.msra.mxu0 %v3555_v9 }
 0x9fe   : > { %4744 = vmatprep.subr.bf16.mxu0 %v3562_v53 }
 0xa01   : > { %4745 = vmatpush3.bf16.msra.mxu0 %v3554_v49  ;;  %v5355_v49 = vld [vmem:[#allocation15 + $0x8] sm:$0xff]  }
 0xa02   : > { %4746 = vmatprep.subr.bf16.mxu0 %v3561_v51 }
 0xa05   : > { %4747 = vmatpush3.bf16.msra.mxu0 %v3553_v8  ;;  %v3548_v8 = vld [vmem:[%s6130_s16] sm:$0xff] }
 0xa06   : > { %4748 = vmatprep.subr.bf16.mxu0 %v3560_v5  ;;  %vm3841_vm1 = vcmp.gt.f32.partialorder %v3548_v8, 0.0 }
 0xa07   : > { %vm7195_vm3 = vmand %vm3841_vm1, %vm3844_vm2 }
 0xa09   : > { %4749 = vmatpush3.bf16.msra.mxu0 %v3552_v35 }
 0xa0a   : > { %4750 = vmatprep.subr.bf16.mxu0 %v3559_v29 }
 0xa0d   : > { %4751 = vmatpush3.bf16.msra.mxu0 %v3551_v15  ;;  %v5350_v15 = vld [vmem:[#allocation15 + $0x30] sm:$0xff]  }
 0xa0e   : > { %4752 = vmatprep.subr.bf16.mxu0 %v3558_v31  ;;  %v4242_v31 = vld [vmem:[#allocation16] ss:$0 sm:$0xff] }
 0xa11   : > { %4753 = vmatpush3.bf16.msra.mxu0 %v7368_v59 }
 0xa12   : > { %5086 = vmatprep.subr.bf16.mxu0 %v7369_v39 }
 0xa14   : > { %3606 = vmatmul.mubr.bf16.vlgmr.msra.gmra.mxu0 %v4231_v18 }
 0xa15   : > { %5102 = vmatprep.mubr.msk.bf16.mxu0 %vm5767_vm0, %v7369_v39  ;;  %5087 = vmatpush3.bf16.msra.mxu0 %v5349_v22 }
 0xa16   : > { %5088 = vmatprep.subr.bf16.mxu0 %v7369_v39 }
 0xa19   : > { %5089 = vmatpush3.bf16.msra.mxu0 %v5350_v15 }
 0xa1a   : > { %5090 = vmatprep.subr.bf16.mxu0 %v7369_v39 }
 0xa1d   : > { %5091 = vmatpush3.bf16.msra.mxu0 %v5351_v0 }
 0xa1e   : > { %5092 = vmatprep.subr.bf16.mxu0 %v7369_v39 }
 0xa21   : > { %5093 = vmatpush3.bf16.msra.mxu0 %v5352_v50 }
 0xa22   : > { %5094 = vmatprep.subr.bf16.mxu0 %v7369_v39 }
 0xa25   : > { %5095 = vmatpush3.bf16.msra.mxu0 %v5353_v55 }
 0xa26   : > { %5096 = vmatprep.subr.bf16.mxu0 %v7369_v39 }
 0xa29   : > { %5097 = vmatpush3.bf16.msra.mxu0 %v5354_v6 }
 0xa2a   : > { %5098 = vmatprep.subr.bf16.mxu0 %v7369_v39 }
 0xa2d   : > { %5099 = vmatpush3.bf16.msra.mxu0 %v5355_v49 }
 0xa2e   : > { %5100 = vmatprep.subr.bf16.mxu0 %v7369_v39 }
 0xa31   : > { %5101 = vmatpush3.bf16.msra.mxu0 %v5356_v14 }
 0xad4   : > { %v4754_v45 = vpop.f32.mrf.mxu0 }
 0xad6   : > { %v4755_v35 = vpop.f32.mrf.mxu0 }
 0xad7   : > { %v4756_v52 = vadd.f32 %v4755_v35, %v4754_v45 }
 0xad8   : > { %v4757_v37 = vpop.f32.mrf.mxu0 }
 0xad9   : > { %v3613_v12 = vmul.f32 %v4756_v52, %v3548_v8 }
 0xada   : > { %v4758_v1 = vpop.f32.mrf.mxu0 }
 0xadb   : > { %v3614_v9 = vpack.c.bf16 %v3613_v12, %v3613_v12 }
 0xadd   : > { %5083 = vmatmul.mubr.bf16.vlgmr.msra.gmra.mxu1 %v3614_v9 }
 0xb9d   : > { %v3720_v27 = vpop.f32.mrf.mxu1 }
 0xb9e   : > { %v3721_v48 = vadd.f32 %v4233_v20, %v3720_v27 }
 0xb9f   : > { %v5084_v56 = vpop.f32.mrf.mxu1 }
 0xba0   : > { %v3726_v28 = vmax.f32 %v3721_v48, 0.0 }
 0xba1   : > { %v3723_v17 = vpop.f32.mrf.mxu1 }
 0xba2   : > { %v3727_v34 = vpack.c.bf16 %v3726_v28, %v3726_v28 }
 0xba3   : > { %v5085_v29 = vpop.f32.mrf.mxu1 }
 0xba4   : > { %5103 = vmatmul.mubr.bf16.vlgmr.msra.gmra.mxu0 %v3727_v34 }
 0xc64   : > { %v3833_v19 = vpop.f32.mrf.mxu0 }
 0xc65   : > { %v3834_v47 = vadd.f32 %v4242_v31, %v3833_v19 }
 0xc66   : > { %v5104_v38 = vpop.f32.mrf.mxu0 }
 0xc67   : > { %v4251_v21 = vclamps-f32 %v3834_v47, 10.0 }
 0xc68   : > { %v3836_v5 = vpop.f32.mrf.mxu0 }
 0xc69   : > { %v3846_v11 = vsel %vm3844_vm2, %v4251_v21, -1e+30  ;;  %v3860_v53 = vsel %vm7195_vm3, %v4251_v21, 0.0 }
 0xc6a   : > { %3861 = vst [vmem:[%s721_s21] sm:$0xff] %v3860_v53  ;;  %3847 = vmax.xlane.f32.xlu0 %v3846_v11  ;;  %v5105_v7 = vpop.f32.mrf.mxu0 }
 0xcf3   : > { %v3848_v46 = vpop.xlane.xlu0 %3847 }
 0xcf4   : > { %v3849_v16 = vsub.f32 %v3846_v11, %v3848_v46 }
 0xcf6   : > { %v3850_v3 = vmul.f32 1.442695, %v3849_v16 }
 0xcf8   : > { %5357 = vpow2.f32 %v3850_v3 }
 0xd05   : > { %v5358_v43 = vpop.eup %5357 }
 0xd06   : > { %v3852_v54 = vsel %vm3844_vm2, %v5358_v43, 0.0 }
 0xd07   : > { %3853 = vadd.xlane.f32.xlu0 %v3852_v54 }
 0xd90   : > { %v3854_v10 = vpop.xlane.xlu0 %3853 }
 0xd91   : > { %5359 = vlog2.f32 %v3854_v10 }
 0xd9e   : > { %v5360_v23 = vpop.eup %5359 }
 0xd9f   : > { %v3856_v41 = vmul.f32 0.6931472, %v5360_v23 }
 0xda1   : > { %v3857_v13 = vsub.f32 %v3849_v16, %v3856_v41 }
 0xda3   : > { %v3858_v33 = vsel %vm7195_vm3, %v3857_v13, 0.0 }
 0xda4   : > { %3859 = vst [vmem:[%s717_s26] sm:$0xff] %v3858_v33 }
 0xda5 PF: > { %s7374_s21 = sld [smem:[#allocation26_spill]]  ;;  %s7377_s18 = smov %s5742_s19 }
 0xda6   : > { %s7375_s20 = sld [smem:[#allocation25_spill]] }
 0xda7   : > { %s7376_s9 = sld [smem:[#allocation27_spill]] }
 0xdab   : > { %p35_p12 = scmp.ge.s32.totalorder %s7374_s21, 4  }
 0xdac   : > { %s7378_s19 = smov %s7375_s20 }
 0xdad   : > { %s7379_s20 = smov %s7376_s9  ;;  %37 = sbr.rel (!%p35_p12) target bundleno = 20 (0x14), region = 201 }
 0xdb2   :  { %3895 = vsyncpa [#allocation3], 1 }
 0xdb3   :  { %3897 = vsyncpa [#allocation3 + $0x1], 1 }
 0xdb4   :  { %3898 = vsyncpa [#allocation5], 1 }
 0xdb5   :  { %3900 = vsyncpa [#allocation5 + $0x1], 1 }
 0xdb6   :  { %3901 = vsyncpa [#allocation8], 1 }
 0xdb7   :  { %3903 = vsyncpa [#allocation8 + $0x1], 1 }
 0xdb8   :  { %3904 = vsyncpa [#allocation11], 1 }
 0xdb9   :  { %3905 = vsyncpa [#allocation14], 1 }
 0xdba   :  { %3906 = vsyncpa [#allocation17], 1 }

</bundles_post_ra>
